<compile_context>
chip_gen: v6e
topology: v6e:2x2x1
jax: 0.10.0
libtpu: 0.0.40
codegen_flags: <defaults>
</compile_context>

<pallas_src>
import math
from functools import partial

import jax
import jax.numpy as jnp
from jax import lax
from jax.experimental import pallas as pl
from jax.experimental.pallas import tpu as pltpu


# ---------------------------------------------------------------------------
# Kernel 1: K / V projections, hoisted out of the per-query-tile loop.
# ---------------------------------------------------------------------------
def kv_proj_kernel(num_heads, d_k,
                   k_in_ref, v_in_ref,
                   wk_ref, bk_ref, wv_ref, bv_ref,
                   k_out_ref, v_out_ref):
    # k_in_ref / v_in_ref : (1, tkv, D)      bf16 token tiles
    # wk/wv               : (D, D)           bf16 (constant index, single-buffered)
    # bk/bv               : (1, D)           f32
    # k_out/v_out         : (1, H, tkv, d_k) bf16, head-major layout
    xk = k_in_ref[0]
    xv = v_in_ref[0]
    kp = (jnp.dot(xk, wk_ref[...], preferred_element_type=jnp.float32)
          + bk_ref[...]).astype(jnp.bfloat16)                       # (tkv, D)
    vp = (jnp.dot(xv, wv_ref[...], preferred_element_type=jnp.float32)
          + bv_ref[...]).astype(jnp.bfloat16)                       # (tkv, D)
    # Split heads here, once per token (amortized over all query tiles).
    for h in range(num_heads):
        lo = h * d_k
        k_out_ref[0, h] = kp[:, lo:lo + d_k]
        v_out_ref[0, h] = vp[:, lo:lo + d_k]


# ---------------------------------------------------------------------------
# Kernel 2: flash-style attention + fused Q projection + fused output proj.
# ---------------------------------------------------------------------------
def attn_kernel(scale,
                q_in_ref, k_ref, v_ref,
                wq_ref, bq_ref, wo_ref, bo_ref,
                o_ref,
                q_scr, m_scr, l_scr, acc_scr):
    # grid = (B, Sq//tq, H, Sk//tk); head and kv axes are "arbitrary".
    h = pl.program_id(2)
    kv = pl.program_id(3)
    n_kv = pl.num_programs(3)

    # Output block (1, tq, D) stays resident across (h, kv); init once w/ bias.
    @pl.when((h == 0) & (kv == 0))
    def _():
        o_ref[0] = jnp.broadcast_to(bo_ref[...], o_ref.shape[1:]).astype(o_ref.dtype)

    # Per (q-tile, head): project the query tile once, fold in 1/sqrt(d_k),
    # and reset the online-softmax state.
    @pl.when(kv == 0)
    def _():
        q = jnp.dot(q_in_ref[0], wq_ref[0],
                    preferred_element_type=jnp.float32) + bq_ref[0]   # (tq, d_k)
        q_scr[...] = (q * scale).astype(jnp.bfloat16)
        m_scr[...] = jnp.full(m_scr.shape, -jnp.inf, m_scr.dtype)
        l_scr[...] = jnp.zeros(l_scr.shape, l_scr.dtype)
        acc_scr[...] = jnp.zeros(acc_scr.shape, acc_scr.dtype)

    k = k_ref[0, 0]                                                   # (tk, d_k) bf16
    v = v_ref[0, 0]                                                   # (tk, d_k) bf16

    # scores = q @ k.T  (contract last dims; no materialized transpose)
    s = lax.dot_general(q_scr[...], k, (((1,), (1,)), ((), ())),
                        preferred_element_type=jnp.float32)           # (tq, tk) f32
    # TODO(synk): optional attention mask would be applied to `s` here.

    m_prev = m_scr[...]
    m_new = jnp.maximum(m_prev, jnp.max(s, axis=-1, keepdims=True))
    alpha = jnp.exp(m_prev - m_new)
    p = jnp.exp(s - m_new)
    # TODO(synk): training-mode dropout of p would go here (eval -> identity).
    l_scr[...] = alpha * l_scr[...] + jnp.sum(p, axis=-1, keepdims=True)
    acc_scr[...] = alpha * acc_scr[...] + jnp.dot(
        p.astype(jnp.bfloat16), v, preferred_element_type=jnp.float32)
    m_scr[...] = m_new

    # Last kv step of this head: normalize (EUP approx reciprocal) and fold
    # this head's slice of Wo into the resident (tq, D) output accumulator.
    @pl.when(kv == n_kv - 1)
    def _():
        ctx = acc_scr[...] * pl.reciprocal(l_scr[...], approx=True)    # (tq, d_k)
        contrib = jnp.dot(ctx.astype(jnp.bfloat16), wo_ref[0],
                          preferred_element_type=jnp.float32)          # (tq, D)
        o_ref[0] = o_ref[0] + contrib.astype(o_ref.dtype)


# ---------------------------------------------------------------------------
# Wrapper
# ---------------------------------------------------------------------------
def _tpu_defaults():
    """Generation-aware (query_tile, vmem_limit_bytes)."""
    kind = ""
    try:
        kind = jax.devices()[0].device_kind.lower()
    except Exception:
        pass
    if "v5 lite" in kind or "v5lite" in kind or "v5e" in kind:
        # v5e: 4x128x128 MXU -> M=128 already fills it; 128 MiB physical VMEM.
        return 128, 64 * 1024 * 1024
    if "v7" in kind:
        # v7x: 2x256x256 MXU wants M=256, but only 64 MiB VMEM -> leave headroom.
        return 256, 48 * 1024 * 1024
    # v6e (and default): 2x256x256 MXU, 128 MiB physical VMEM.
    return 256, 64 * 1024 * 1024


def _pick_tile(desired, full):
    t = max(1, min(desired, full))
    while full % t:
        t //= 2
    return max(t, 1)


def _const_spec(shape, single_buffer):
    """BlockSpec for a block whose index never changes (weights / biases)."""
    idx = lambda *_: (0,) * len(shape)
    if single_buffer:
        return pl.BlockSpec(shape, idx, pipeline_mode=pl.Buffered(1))
    return pl.BlockSpec(shape, idx)


def _mha_impl(query, key, value, params, *, num_heads, tq, tk, single_buffer_consts):
    B, Sq, D = query.shape
    Bk, Sk, Dk = key.shape
    assert Bk == B and Dk == D and value.shape == key.shape
    assert D % num_heads == 0
    d_k = D // num_heads
    scale = 1.0 / math.sqrt(d_k)

    tq_def, vmem_limit = _tpu_defaults()
    tq = _pick_tile(tq if tq is not None else tq_def, Sq)
    tk = _pick_tile(tk if tk is not None else 128, Sk)
    tkv = tk

    bf = jnp.bfloat16
    f32 = jnp.float32
    # bf16 inputs & weights -> halved HBM->VMEM DMA; f32 accumulation on MXU.
    qx = query.astype(bf)
    kx = key.astype(bf)
    vx = value.astype(bf)
    wq = params["wq"].astype(bf)
    wk = params["wk"].astype(bf)
    wv = params["wv"].astype(bf)
    wo = params["wo"].astype(bf)
    bq = params["bq"].astype(f32)
    bk = params["bk"].astype(f32).reshape(1, D)
    bv = params["bv"].astype(f32).reshape(1, D)
    bo = params["bo"].astype(f32).reshape(1, D)

    # Head-major weight layouts for the attention kernel.
    wq_r = wq.reshape(D, num_heads, d_k).transpose(1, 0, 2)   # (H, D, d_k)
    bq_r = bq.reshape(num_heads, 1, d_k)                      # (H, 1, d_k)
    wo_r = wo.reshape(num_heads, d_k, D)                      # (H, d_k, D)

    # ---- Pass 1: K / V projections, once per token. ----
    k_proj, v_proj = pl.pallas_call(
        partial(kv_proj_kernel, num_heads, d_k),
        out_shape=(jax.ShapeDtypeStruct((B, num_heads, Sk, d_k), bf),
                   jax.ShapeDtypeStruct((B, num_heads, Sk, d_k), bf)),
        grid_spec=pltpu.PrefetchScalarGridSpec(
            num_scalar_prefetch=0,
            grid=(B, Sk // tkv),
            in_specs=[
                pl.BlockSpec((1, tkv, D), lambda b, j: (b, j, 0)),   # key tokens
                pl.BlockSpec((1, tkv, D), lambda b, j: (b, j, 0)),   # value tokens
                _const_spec((D, D), single_buffer_consts),           # Wk
                _const_spec((1, D), single_buffer_consts),           # bk
                _const_spec((D, D), single_buffer_consts),           # Wv
                _const_spec((1, D), single_buffer_consts),           # bv
            ],
            out_specs=(
                pl.BlockSpec((1, num_heads, tkv, d_k), lambda b, j: (b, 0, j, 0)),
                pl.BlockSpec((1, num_heads, tkv, d_k), lambda b, j: (b, 0, j, 0)),
            ),
        ),
        compiler_params=pltpu.CompilerParams(
            dimension_semantics=("parallel", "parallel"),
            vmem_limit_bytes=vmem_limit),
    )(kx, vx, wk, bk, wv, bv)

    # ---- Pass 2: flash attention + Q projection + output projection. ----
    out = pl.pallas_call(
        partial(attn_kernel, scale),
        out_shape=jax.ShapeDtypeStruct((B, Sq, D), jnp.float32),
        grid_spec=pltpu.PrefetchScalarGridSpec(
            num_scalar_prefetch=0,
            grid=(B, Sq // tq, num_heads, Sk // tk),
            in_specs=[
                pl.BlockSpec((1, tq, D), lambda b, i, h, kv: (b, i, 0)),          # query tokens
                pl.BlockSpec((1, 1, tk, d_k), lambda b, i, h, kv: (b, h, kv, 0)), # K (head-major)
                pl.BlockSpec((1, 1, tk, d_k), lambda b, i, h, kv: (b, h, kv, 0)), # V (head-major)
                pl.BlockSpec((1, D, d_k), lambda b, i, h, kv: (h, 0, 0)),         # Wq[:, head]
                pl.BlockSpec((1, 1, d_k), lambda b, i, h, kv: (h, 0, 0)),         # bq[head]
                pl.BlockSpec((1, d_k, D), lambda b, i, h, kv: (h, 0, 0)),         # Wo[head, :]
                _const_spec((1, D), single_buffer_consts),                        # bo
            ],
            out_specs=pl.BlockSpec((1, tq, D), lambda b, i, h, kv: (b, i, 0)),
            scratch_shapes=[
                pltpu.VMEM((tq, d_k), bf),            # scaled projected q (this head)
                pltpu.VMEM((tq, 1), jnp.float32),     # running max
                pltpu.VMEM((tq, 1), jnp.float32),     # running sum
                pltpu.VMEM((tq, d_k), jnp.float32),   # context accumulator
            ]),
        compiler_params=pltpu.CompilerParams(
            dimension_semantics=("parallel", "parallel", "arbitrary", "arbitrary"),
            vmem_limit_bytes=vmem_limit),
    )(qx, k_proj, v_proj, wq_r, bq_r, wo_r, bo)
    return out


def multi_head_attention(query, key, value, params, *, num_heads, tq=None, tk=None):
    """query/key/value: (B, S, D) float32. Weights in math layout (in, out)."""
    try:
        return _mha_impl(query, key, value, params, num_heads=num_heads,
                         tq=tq, tk=tk, single_buffer_consts=True)
    except Exception:
        # pl.Buffered(1) single-buffering of constant weight blocks is a VMEM
        # optimization only; fall back to default double buffering if this
        # JAX / libtpu build rejects the pipeline_mode request.
        return _mha_impl(query, key, value, params, num_heads=num_heads,
                         tq=tq, tk=tk, single_buffer_consts=False)


# ---------------------------------------------------------------------------
# Pure-JAX reference with the same bf16-operand / f32-accumulation policy.
# ---------------------------------------------------------------------------
def reference_mha(query, key, value, params, *, num_heads):
    B, Sq, D = query.shape
    Sk = key.shape[1]
    d_k = D // num_heads
    bf = jnp.bfloat16

    def proj(x, w, b):
        y = jnp.einsum("bsd,de->bse", x.astype(bf), w.astype(bf),
                       preferred_element_type=jnp.float32)
        return y + b.astype(jnp.float32)

    q = proj(query, params["wq"], params["bq"])
    k = proj(key, params["wk"], params["bk"])
    v = proj(value, params["wv"], params["bv"])

    def split(x, S):
        return x.reshape(B, S, num_heads, d_k).transpose(0, 2, 1, 3)

    qh, kh, vh = split(q, Sq).astype(bf), split(k, Sk).astype(bf), split(v, Sk).astype(bf)
    s = jnp.einsum("bhqd,bhkd->bhqk", qh, kh,
                   preferred_element_type=jnp.float32) / math.sqrt(d_k)
    attn = jax.nn.softmax(s, axis=-1)
    ctx = jnp.einsum("bhqk,bhkd->bhqd", attn.astype(bf), vh,
                     preferred_element_type=jnp.float32)
    ctx = ctx.transpose(0, 2, 1, 3).reshape(B, Sq, D)
    out = jnp.einsum("bsd,de->bse", ctx.astype(bf), params["wo"].astype(bf),
                     preferred_element_type=jnp.float32) + params["bo"]
    return out


if __name__ == "__main__":
    # Small shapes; d_model multiple of 128 (lane-dense) and Sk//tk = 2 so the
    # online-softmax accumulation across kv tiles is exercised.
    batch, seq, d_model, num_heads = 2, 256, 128, 4

    root = jax.random.PRNGKey(0)
    keys = jax.random.split(root, 9)
    x = jax.random.normal(keys[0], (batch, seq, d_model), dtype=jnp.float32)

    # nn.Linear-style init: uniform(-1/sqrt(fan_in), 1/sqrt(fan_in)).
    lim = 1.0 / math.sqrt(d_model)
    params = {
        "wq": jax.random.uniform(keys[1], (d_model, d_model), jnp.float32, -lim, lim),
        "bq": jax.random.uniform(keys[2], (d_model,), jnp.float32, -lim, lim),
        "wk": jax.random.uniform(keys[3], (d_model, d_model), jnp.float32, -lim, lim),
        "bk": jax.random.uniform(keys[4], (d_model,), jnp.float32, -lim, lim),
        "wv": jax.random.uniform(keys[5], (d_model, d_model), jnp.float32, -lim, lim),
        "bv": jax.random.uniform(keys[6], (d_model,), jnp.float32, -lim, lim),
        "wo": jax.random.uniform(keys[7], (d_model, d_model), jnp.float32, -lim, lim),
        "bo": jax.random.uniform(keys[8], (d_model,), jnp.float32, -lim, lim),
    }

    # Self-attention: query = key = value = x (mask=None path, eval mode).
    out = multi_head_attention(x, x, x, params, num_heads=num_heads)
    out = jax.block_until_ready(out)

    ref = reference_mha(x, x, x, params, num_heads=num_heads)
    assert out.shape == (batch, seq, d_model)
    err = float(jnp.max(jnp.abs(out - ref)))
    assert jnp.allclose(out, ref, atol=2e-2, rtol=2e-2), f"max abs err = {err}"

    print("KERNEL_OK")
</pallas_src>

<mosaic_0001>
module attributes {stable_mosaic.version = 11 : i64} {
  func.func @kv_proj_kernel(%arg0: i32, %arg1: i32, %arg2: memref<1x128x128xbf16, #tpu.memory_space<vmem>>, %arg3: memref<1x128x128xbf16, #tpu.memory_space<vmem>>, %arg4: memref<128x128xbf16, #tpu.memory_space<vmem>>, %arg5: memref<1x128xf32, #tpu.memory_space<vmem>>, %arg6: memref<128x128xbf16, #tpu.memory_space<vmem>>, %arg7: memref<1x128xf32, #tpu.memory_space<vmem>>, %arg8: memref<1x4x128x32xbf16, #tpu.memory_space<vmem>>, %arg9: memref<1x4x128x32xbf16, #tpu.memory_space<vmem>>) attributes {dimension_semantics = [#tpu.dimension_semantics<parallel>, #tpu.dimension_semantics<parallel>], iteration_bounds = array<i64: 2, 2>, scalar_prefetch = 0 : i64, scratch_operands = 0 : i64, tpu.core_type = #tpu.core_type<tc>, window_params = [{transform_indices = @transform_0, window_bounds = array<i64: 1, 128, 128>}, {transform_indices = @transform_1, window_bounds = array<i64: 1, 128, 128>}, {pipeline_mode = #tpu.pipeline_mode<synchronous>, transform_indices = @transform_2, window_bounds = array<i64: 128, 128>}, {pipeline_mode = #tpu.pipeline_mode<synchronous>, transform_indices = @transform_3, window_bounds = array<i64: 1, 128>}, {pipeline_mode = #tpu.pipeline_mode<synchronous>, transform_indices = @transform_4, window_bounds = array<i64: 128, 128>}, {pipeline_mode = #tpu.pipeline_mode<synchronous>, transform_indices = @transform_5, window_bounds = array<i64: 1, 128>}, {transform_indices = @transform_6, window_bounds = array<i64: 1, 4, 128, 32>}, {transform_indices = @transform_7, window_bounds = array<i64: 1, 4, 128, 32>}]} {
    %c0 = arith.constant 0 : index
    %c0_0 = arith.constant 0 : index
    %c0_1 = arith.constant 0 : index
    %0 = vector.load %arg2[%c0, %c0_0, %c0_1] : memref<1x128x128xbf16, #tpu.memory_space<vmem>>, vector<1x128x128xbf16>
    %1 = vector.shape_cast %0 : vector<1x128x128xbf16> to vector<128x128xbf16>
    %c0_2 = arith.constant 0 : index
    %c0_3 = arith.constant 0 : index
    %c0_4 = arith.constant 0 : index
    %2 = vector.load %arg3[%c0_2, %c0_3, %c0_4] : memref<1x128x128xbf16, #tpu.memory_space<vmem>>, vector<1x128x128xbf16>
    %3 = vector.shape_cast %2 : vector<1x128x128xbf16> to vector<128x128xbf16>
    %c0_5 = arith.constant 0 : index
    %c0_6 = arith.constant 0 : index
    %4 = vector.load %arg4[%c0_5, %c0_6] : memref<128x128xbf16, #tpu.memory_space<vmem>>, vector<128x128xbf16>
    %cst = arith.constant dense<0.000000e+00> : vector<128x128xf32>
    %5 = tpu.matmul %1, %4, %cst {dimension_numbers = #tpu.dot_dimension_numbers<[1], [0], [0], [1], [0, 0, 1, 1], [], []>} : vector<128x128xbf16>, vector<128x128xbf16>, vector<128x128xf32> -> vector<128x128xf32>
    %c0_7 = arith.constant 0 : index
    %c0_8 = arith.constant 0 : index
    %6 = vector.load %arg5[%c0_7, %c0_8] : memref<1x128xf32, #tpu.memory_space<vmem>>, vector<1x128xf32>
    %7 = vector.broadcast %6 : vector<1x128xf32> to vector<128x128xf32>
    %8 = arith.addf %5, %7 : vector<128x128xf32>
    %9 = arith.truncf %8 : vector<128x128xf32> to vector<128x128xbf16>
    %c0_9 = arith.constant 0 : index
    %c0_10 = arith.constant 0 : index
    %10 = vector.load %arg6[%c0_9, %c0_10] : memref<128x128xbf16, #tpu.memory_space<vmem>>, vector<128x128xbf16>
    %cst_11 = arith.constant dense<0.000000e+00> : vector<128x128xf32>
    %11 = tpu.matmul %3, %10, %cst_11 {dimension_numbers = #tpu.dot_dimension_numbers<[1], [0], [0], [1], [0, 0, 1, 1], [], []>} : vector<128x128xbf16>, vector<128x128xbf16>, vector<128x128xf32> -> vector<128x128xf32>
    %c0_12 = arith.constant 0 : index
    %c0_13 = arith.constant 0 : index
    %12 = vector.load %arg7[%c0_12, %c0_13] : memref<1x128xf32, #tpu.memory_space<vmem>>, vector<1x128xf32>
    %13 = vector.broadcast %12 : vector<1x128xf32> to vector<128x128xf32>
    %14 = arith.addf %11, %13 : vector<128x128xf32>
    %15 = arith.truncf %14 : vector<128x128xf32> to vector<128x128xbf16>
    %16 = vector.extract_strided_slice %9 {offsets = [0, 0], sizes = [128, 32], strides = [1, 1]} : vector<128x128xbf16> to vector<128x32xbf16>
    %c0_14 = arith.constant 0 : index
    %c0_15 = arith.constant 0 : index
    %c0_16 = arith.constant 0 : index
    %c0_17 = arith.constant 0 : index
    %17 = vector.load %arg8[%c0_14, %c0_15, %c0_16, %c0_17] : memref<1x4x128x32xbf16, #tpu.memory_space<vmem>>, vector<1x1x128x32xbf16>
    %18 = vector.shape_cast %17 : vector<1x1x128x32xbf16> to vector<128x32xbf16>
    %19 = vector.shape_cast %16 : vector<128x32xbf16> to vector<1x1x128x32xbf16>
    tpu.vector_store %arg8[%c0_14, %c0_15, %c0_16, %c0_17], %19 {strides = array<i32>} : memref<1x4x128x32xbf16, #tpu.memory_space<vmem>>, vector<1x1x128x32xbf16>,
    %20 = vector.extract_strided_slice %15 {offsets = [0, 0], sizes = [128, 32], strides = [1, 1]} : vector<128x128xbf16> to vector<128x32xbf16>
    %c0_18 = arith.constant 0 : index
    %c0_19 = arith.constant 0 : index
    %c0_20 = arith.constant 0 : index
    %c0_21 = arith.constant 0 : index
    %21 = vector.load %arg9[%c0_18, %c0_19, %c0_20, %c0_21] : memref<1x4x128x32xbf16, #tpu.memory_space<vmem>>, vector<1x1x128x32xbf16>
    %22 = vector.shape_cast %21 : vector<1x1x128x32xbf16> to vector<128x32xbf16>
    %23 = vector.shape_cast %20 : vector<128x32xbf16> to vector<1x1x128x32xbf16>
    tpu.vector_store %arg9[%c0_18, %c0_19, %c0_20, %c0_21], %23 {strides = array<i32>} : memref<1x4x128x32xbf16, #tpu.memory_space<vmem>>, vector<1x1x128x32xbf16>,
    %24 = vector.extract_strided_slice %9 {offsets = [0, 32], sizes = [128, 32], strides = [1, 1]} : vector<128x128xbf16> to vector<128x32xbf16>
    %c0_22 = arith.constant 0 : index
    %c1 = arith.constant 1 : index
    %c0_23 = arith.constant 0 : index
    %c0_24 = arith.constant 0 : index
    %25 = vector.load %arg8[%c0_22, %c1, %c0_23, %c0_24] : memref<1x4x128x32xbf16, #tpu.memory_space<vmem>>, vector<1x1x128x32xbf16>
    %26 = vector.shape_cast %25 : vector<1x1x128x32xbf16> to vector<128x32xbf16>
    %27 = vector.shape_cast %24 : vector<128x32xbf16> to vector<1x1x128x32xbf16>
    tpu.vector_store %arg8[%c0_22, %c1, %c0_23, %c0_24], %27 {strides = array<i32>} : memref<1x4x128x32xbf16, #tpu.memory_space<vmem>>, vector<1x1x128x32xbf16>,
    %28 = vector.extract_strided_slice %15 {offsets = [0, 32], sizes = [128, 32], strides = [1, 1]} : vector<128x128xbf16> to vector<128x32xbf16>
    %c0_25 = arith.constant 0 : index
    %c1_26 = arith.constant 1 : index
    %c0_27 = arith.constant 0 : index
    %c0_28 = arith.constant 0 : index
    %29 = vector.load %arg9[%c0_25, %c1_26, %c0_27, %c0_28] : memref<1x4x128x32xbf16, #tpu.memory_space<vmem>>, vector<1x1x128x32xbf16>
    %30 = vector.shape_cast %29 : vector<1x1x128x32xbf16> to vector<128x32xbf16>
    %31 = vector.shape_cast %28 : vector<128x32xbf16> to vector<1x1x128x32xbf16>
    tpu.vector_store %arg9[%c0_25, %c1_26, %c0_27, %c0_28], %31 {strides = array<i32>} : memref<1x4x128x32xbf16, #tpu.memory_space<vmem>>, vector<1x1x128x32xbf16>,
    %32 = vector.extract_strided_slice %9 {offsets = [0, 64], sizes = [128, 32], strides = [1, 1]} : vector<128x128xbf16> to vector<128x32xbf16>
    %c0_29 = arith.constant 0 : index
    %c2 = arith.constant 2 : index
    %c0_30 = arith.constant 0 : index
    %c0_31 = arith.constant 0 : index
    %33 = vector.load %arg8[%c0_29, %c2, %c0_30, %c0_31] : memref<1x4x128x32xbf16, #tpu.memory_space<vmem>>, vector<1x1x128x32xbf16>
    %34 = vector.shape_cast %33 : vector<1x1x128x32xbf16> to vector<128x32xbf16>
    %35 = vector.shape_cast %32 : vector<128x32xbf16> to vector<1x1x128x32xbf16>
    tpu.vector_store %arg8[%c0_29, %c2, %c0_30, %c0_31], %35 {strides = array<i32>} : memref<1x4x128x32xbf16, #tpu.memory_space<vmem>>, vector<1x1x128x32xbf16>,
    %36 = vector.extract_strided_slice %15 {offsets = [0, 64], sizes = [128, 32], strides = [1, 1]} : vector<128x128xbf16> to vector<128x32xbf16>
    %c0_32 = arith.constant 0 : index
    %c2_33 = arith.constant 2 : index
    %c0_34 = arith.constant 0 : index
    %c0_35 = arith.constant 0 : index
    %37 = vector.load %arg9[%c0_32, %c2_33, %c0_34, %c0_35] : memref<1x4x128x32xbf16, #tpu.memory_space<vmem>>, vector<1x1x128x32xbf16>
    %38 = vector.shape_cast %37 : vector<1x1x128x32xbf16> to vector<128x32xbf16>
    %39 = vector.shape_cast %36 : vector<128x32xbf16> to vector<1x1x128x32xbf16>
    tpu.vector_store %arg9[%c0_32, %c2_33, %c0_34, %c0_35], %39 {strides = array<i32>} : memref<1x4x128x32xbf16, #tpu.memory_space<vmem>>, vector<1x1x128x32xbf16>,
    %40 = vector.extract_strided_slice %9 {offsets = [0, 96], sizes = [128, 32], strides = [1, 1]} : vector<128x128xbf16> to vector<128x32xbf16>
    %c0_36 = arith.constant 0 : index
    %c3 = arith.constant 3 : index
    %c0_37 = arith.constant 0 : index
    %c0_38 = arith.constant 0 : index
    %41 = vector.load %arg8[%c0_36, %c3, %c0_37, %c0_38] : memref<1x4x128x32xbf16, #tpu.memory_space<vmem>>, vector<1x1x128x32xbf16>
    %42 = vector.shape_cast %41 : vector<1x1x128x32xbf16> to vector<128x32xbf16>
    %43 = vector.shape_cast %40 : vector<128x32xbf16> to vector<1x1x128x32xbf16>
    tpu.vector_store %arg8[%c0_36, %c3, %c0_37, %c0_38], %43 {strides = array<i32>} : memref<1x4x128x32xbf16, #tpu.memory_space<vmem>>, vector<1x1x128x32xbf16>,
    %44 = vector.extract_strided_slice %15 {offsets = [0, 96], sizes = [128, 32], strides = [1, 1]} : vector<128x128xbf16> to vector<128x32xbf16>
    %c0_39 = arith.constant 0 : index
    %c3_40 = arith.constant 3 : index
    %c0_41 = arith.constant 0 : index
    %c0_42 = arith.constant 0 : index
    %45 = vector.load %arg9[%c0_39, %c3_40, %c0_41, %c0_42] : memref<1x4x128x32xbf16, #tpu.memory_space<vmem>>, vector<1x1x128x32xbf16>
    %46 = vector.shape_cast %45 : vector<1x1x128x32xbf16> to vector<128x32xbf16>
    %47 = vector.shape_cast %44 : vector<128x32xbf16> to vector<1x1x128x32xbf16>
    tpu.vector_store %arg9[%c0_39, %c3_40, %c0_41, %c0_42], %47 {strides = array<i32>} : memref<1x4x128x32xbf16, #tpu.memory_space<vmem>>, vector<1x1x128x32xbf16>,
    return
  }
  func.func @transform_0(%arg0: i32, %arg1: i32) -> (i32, i32, i32) {
    %c0_i32 = arith.constant 0 : i32
    %c0_i32_0 = arith.constant 0 : i32
    return %arg0, %arg1, %c0_i32 : i32, i32, i32
  }
  func.func @transform_1(%arg0: i32, %arg1: i32) -> (i32, i32, i32) {
    %c0_i32 = arith.constant 0 : i32
    %c0_i32_0 = arith.constant 0 : i32
    return %arg0, %arg1, %c0_i32 : i32, i32, i32
  }
  func.func @transform_2(%arg0: i32, %arg1: i32) -> (i32, i32) {
    %c0_i32 = arith.constant 0 : i32
    %c0_i32_0 = arith.constant 0 : i32
    %c0_i32_1 = arith.constant 0 : i32
    return %c0_i32, %c0_i32_0 : i32, i32
  }
  func.func @transform_3(%arg0: i32, %arg1: i32) -> (i32, i32) {
    %c0_i32 = arith.constant 0 : i32
    %c0_i32_0 = arith.constant 0 : i32
    %c0_i32_1 = arith.constant 0 : i32
    return %c0_i32, %c0_i32_0 : i32, i32
  }
  func.func @transform_4(%arg0: i32, %arg1: i32) -> (i32, i32) {
    %c0_i32 = arith.constant 0 : i32
    %c0_i32_0 = arith.constant 0 : i32
    %c0_i32_1 = arith.constant 0 : i32
    return %c0_i32, %c0_i32_0 : i32, i32
  }
  func.func @transform_5(%arg0: i32, %arg1: i32) -> (i32, i32) {
    %c0_i32 = arith.constant 0 : i32
    %c0_i32_0 = arith.constant 0 : i32
    %c0_i32_1 = arith.constant 0 : i32
    return %c0_i32, %c0_i32_0 : i32, i32
  }
  func.func @transform_6(%arg0: i32, %arg1: i32) -> (i32, i32, i32, i32) {
    %c0_i32 = arith.constant 0 : i32
    %c0_i32_0 = arith.constant 0 : i32
    %c0_i32_1 = arith.constant 0 : i32
    return %arg0, %c0_i32, %arg1, %c0_i32_0 : i32, i32, i32, i32
  }
  func.func @transform_7(%arg0: i32, %arg1: i32) -> (i32, i32, i32, i32) {
    %c0_i32 = arith.constant 0 : i32
    %c0_i32_0 = arith.constant 0 : i32
    %c0_i32_1 = arith.constant 0 : i32
    return %arg0, %c0_i32, %arg1, %c0_i32_0 : i32, i32, i32, i32
  }
}

module attributes {stable_mosaic.version = 11 : i64} {
  func.func @kv_proj_kernel(%arg0: i32, %arg1: i32, %arg2: memref<1x128x128xbf16, #tpu.memory_space<vmem>>, %arg3: memref<1x128x128xbf16, #tpu.memory_space<vmem>>, %arg4: memref<128x128xbf16, #tpu.memory_space<vmem>>, %arg5: memref<1x128xf32, #tpu.memory_space<vmem>>, %arg6: memref<128x128xbf16, #tpu.memory_space<vmem>>, %arg7: memref<1x128xf32, #tpu.memory_space<vmem>>, %arg8: memref<1x4x128x32xbf16, #tpu.memory_space<vmem>>, %arg9: memref<1x4x128x32xbf16, #tpu.memory_space<vmem>>) attributes {dimension_semantics = [#tpu.dimension_semantics<parallel>, #tpu.dimension_semantics<parallel>], iteration_bounds = array<i64: 2, 2>, scalar_prefetch = 0 : i64, scratch_operands = 0 : i64, tpu.core_type = #tpu.core_type<tc>, window_params = [{transform_indices = @transform_0, window_bounds = array<i64: 1, 128, 128>}, {transform_indices = @transform_1, window_bounds = array<i64: 1, 128, 128>}, {pipeline_mode = #tpu.pipeline_mode<synchronous>, transform_indices = @transform_2, window_bounds = array<i64: 128, 128>}, {pipeline_mode = #tpu.pipeline_mode<synchronous>, transform_indices = @transform_3, window_bounds = array<i64: 1, 128>}, {pipeline_mode = #tpu.pipeline_mode<synchronous>, transform_indices = @transform_4, window_bounds = array<i64: 128, 128>}, {pipeline_mode = #tpu.pipeline_mode<synchronous>, transform_indices = @transform_5, window_bounds = array<i64: 1, 128>}, {transform_indices = @transform_6, window_bounds = array<i64: 1, 4, 128, 32>}, {transform_indices = @transform_7, window_bounds = array<i64: 1, 4, 128, 32>}]} {
    %c0 = arith.constant 0 : index
    %c0_0 = arith.constant 0 : index
    %c0_1 = arith.constant 0 : index
    %0 = vector.load %arg2[%c0, %c0_0, %c0_1] : memref<1x128x128xbf16, #tpu.memory_space<vmem>>, vector<1x128x128xbf16>
    %1 = vector.shape_cast %0 : vector<1x128x128xbf16> to vector<128x128xbf16>
    %c0_2 = arith.constant 0 : index
    %c0_3 = arith.constant 0 : index
    %c0_4 = arith.constant 0 : index
    %2 = vector.load %arg3[%c0_2, %c0_3, %c0_4] : memref<1x128x128xbf16, #tpu.memory_space<vmem>>, vector<1x128x128xbf16>
    %3 = vector.shape_cast %2 : vector<1x128x128xbf16> to vector<128x128xbf16>
    %c0_5 = arith.constant 0 : index
    %c0_6 = arith.constant 0 : index
    %4 = vector.load %arg4[%c0_5, %c0_6] : memref<128x128xbf16, #tpu.memory_space<vmem>>, vector<128x128xbf16>
    %cst = arith.constant dense<0.000000e+00> : vector<128x128xf32>
    %5 = tpu.matmul %1, %4, %cst {dimension_numbers = #tpu.dot_dimension_numbers<[1], [0], [0], [1], [0, 0, 1, 1], [], []>} : vector<128x128xbf16>, vector<128x128xbf16>, vector<128x128xf32> -> vector<128x128xf32>
    %c0_7 = arith.constant 0 : index
    %c0_8 = arith.constant 0 : index
    %6 = vector.load %arg5[%c0_7, %c0_8] : memref<1x128xf32, #tpu.memory_space<vmem>>, vector<1x128xf32>
    %7 = vector.broadcast %6 : vector<1x128xf32> to vector<128x128xf32>
    %8 = arith.addf %5, %7 : vector<128x128xf32>
    %9 = arith.truncf %8 : vector<128x128xf32> to vector<128x128xbf16>
    %c0_9 = arith.constant 0 : index
    %c0_10 = arith.constant 0 : index
    %10 = vector.load %arg6[%c0_9, %c0_10] : memref<128x128xbf16, #tpu.memory_space<vmem>>, vector<128x128xbf16>
    %cst_11 = arith.constant dense<0.000000e+00> : vector<128x128xf32>
    %11 = tpu.matmul %3, %10, %cst_11 {dimension_numbers = #tpu.dot_dimension_numbers<[1], [0], [0], [1], [0, 0, 1, 1], [], []>} : vector<128x128xbf16>, vector<128x128xbf16>, vector<128x128xf32> -> vector<128x128xf32>
    %c0_12 = arith.constant 0 : index
    %c0_13 = arith.constant 0 : index
    %12 = vector.load %arg7[%c0_12, %c0_13] : memref<1x128xf32, #tpu.memory_space<vmem>>, vector<1x128xf32>
    %13 = vector.broadcast %12 : vector<1x128xf32> to vector<128x128xf32>
    %14 = arith.addf %11, %13 : vector<128x128xf32>
    %15 = arith.truncf %14 : vector<128x128xf32> to vector<128x128xbf16>
    %16 = vector.extract_strided_slice %9 {offsets = [0, 0], sizes = [128, 32], strides = [1, 1]} : vector<128x128xbf16> to vector<128x32xbf16>
    %c0_14 = arith.constant 0 : index
    %c0_15 = arith.constant 0 : index
    %c0_16 = arith.constant 0 : index
    %c0_17 = arith.constant 0 : index
    %17 = vector.load %arg8[%c0_14, %c0_15, %c0_16, %c0_17] : memref<1x4x128x32xbf16, #tpu.memory_space<vmem>>, vector<1x1x128x32xbf16>
    %18 = vector.shape_cast %17 : vector<1x1x128x32xbf16> to vector<128x32xbf16>
    %19 = vector.shape_cast %16 : vector<128x32xbf16> to vector<1x1x128x32xbf16>
    tpu.vector_store %arg8[%c0_14, %c0_15, %c0_16, %c0_17], %19 {strides = array<i32>} : memref<1x4x128x32xbf16, #tpu.memory_space<vmem>>, vector<1x1x128x32xbf16>,
    %20 = vector.extract_strided_slice %15 {offsets = [0, 0], sizes = [128, 32], strides = [1, 1]} : vector<128x128xbf16> to vector<128x32xbf16>
    %c0_18 = arith.constant 0 : index
    %c0_19 = arith.constant 0 : index
    %c0_20 = arith.constant 0 : index
    %c0_21 = arith.constant 0 : index
    %21 = vector.load %arg9[%c0_18, %c0_19, %c0_20, %c0_21] : memref<1x4x128x32xbf16, #tpu.memory_space<vmem>>, vector<1x1x128x32xbf16>
    %22 = vector.shape_cast %21 : vector<1x1x128x32xbf16> to vector<128x32xbf16>
    %23 = vector.shape_cast %20 : vector<128x32xbf16> to vector<1x1x128x32xbf16>
    tpu.vector_store %arg9[%c0_18, %c0_19, %c0_20, %c0_21], %23 {strides = array<i32>} : memref<1x4x128x32xbf16, #tpu.memory_space<vmem>>, vector<1x1x128x32xbf16>,
    %24 = vector.extract_strided_slice %9 {offsets = [0, 32], sizes = [128, 32], strides = [1, 1]} : vector<128x128xbf16> to vector<128x32xbf16>
    %c0_22 = arith.constant 0 : index
    %c1 = arith.constant 1 : index
    %c0_23 = arith.constant 0 : index
    %c0_24 = arith.constant 0 : index
    %25 = vector.load %arg8[%c0_22, %c1, %c0_23, %c0_24] : memref<1x4x128x32xbf16, #tpu.memory_space<vmem>>, vector<1x1x128x32xbf16>
    %26 = vector.shape_cast %25 : vector<1x1x128x32xbf16> to vector<128x32xbf16>
    %27 = vector.shape_cast %24 : vector<128x32xbf16> to vector<1x1x128x32xbf16>
    tpu.vector_store %arg8[%c0_22, %c1, %c0_23, %c0_24], %27 {strides = array<i32>} : memref<1x4x128x32xbf16, #tpu.memory_space<vmem>>, vector<1x1x128x32xbf16>,
    %28 = vector.extract_strided_slice %15 {offsets = [0, 32], sizes = [128, 32], strides = [1, 1]} : vector<128x128xbf16> to vector<128x32xbf16>
    %c0_25 = arith.constant 0 : index
    %c1_26 = arith.constant 1 : index
    %c0_27 = arith.constant 0 : index
    %c0_28 = arith.constant 0 : index
    %29 = vector.load %arg9[%c0_25, %c1_26, %c0_27, %c0_28] : memref<1x4x128x32xbf16, #tpu.memory_space<vmem>>, vector<1x1x128x32xbf16>
    %30 = vector.shape_cast %29 : vector<1x1x128x32xbf16> to vector<128x32xbf16>
    %31 = vector.shape_cast %28 : vector<128x32xbf16> to vector<1x1x128x32xbf16>
    tpu.vector_store %arg9[%c0_25, %c1_26, %c0_27, %c0_28], %31 {strides = array<i32>} : memref<1x4x128x32xbf16, #tpu.memory_space<vmem>>, vector<1x1x128x32xbf16>,
    %32 = vector.extract_strided_slice %9 {offsets = [0, 64], sizes = [128, 32], strides = [1, 1]} : vector<128x128xbf16> to vector<128x32xbf16>
    %c0_29 = arith.constant 0 : index
    %c2 = arith.constant 2 : index
    %c0_30 = arith.constant 0 : index
    %c0_31 = arith.constant 0 : index
    %33 = vector.load %arg8[%c0_29, %c2, %c0_30, %c0_31] : memref<1x4x128x32xbf16, #tpu.memory_space<vmem>>, vector<1x1x128x32xbf16>
    %34 = vector.shape_cast %33 : vector<1x1x128x32xbf16> to vector<128x32xbf16>
    %35 = vector.shape_cast %32 : vector<128x32xbf16> to vector<1x1x128x32xbf16>
    tpu.vector_store %arg8[%c0_29, %c2, %c0_30, %c0_31], %35 {strides = array<i32>} : memref<1x4x128x32xbf16, #tpu.memory_space<vmem>>, vector<1x1x128x32xbf16>,
    %36 = vector.extract_strided_slice %15 {offsets = [0, 64], sizes = [128, 32], strides = [1, 1]} : vector<128x128xbf16> to vector<128x32xbf16>
    %c0_32 = arith.constant 0 : index
    %c2_33 = arith.constant 2 : index
    %c0_34 = arith.constant 0 : index
    %c0_35 = arith.constant 0 : index
    %37 = vector.load %arg9[%c0_32, %c2_33, %c0_34, %c0_35] : memref<1x4x128x32xbf16, #tpu.memory_space<vmem>>, vector<1x1x128x32xbf16>
    %38 = vector.shape_cast %37 : vector<1x1x128x32xbf16> to vector<128x32xbf16>
    %39 = vector.shape_cast %36 : vector<128x32xbf16> to vector<1x1x128x32xbf16>
    tpu.vector_store %arg9[%c0_32, %c2_33, %c0_34, %c0_35], %39 {strides = array<i32>} : memref<1x4x128x32xbf16, #tpu.memory_space<vmem>>, vector<1x1x128x32xbf16>,
    %40 = vector.extract_strided_slice %9 {offsets = [0, 96], sizes = [128, 32], strides = [1, 1]} : vector<128x128xbf16> to vector<128x32xbf16>
    %c0_36 = arith.constant 0 : index
    %c3 = arith.constant 3 : index
    %c0_37 = arith.constant 0 : index
    %c0_38 = arith.constant 0 : index
    %41 = vector.load %arg8[%c0_36, %c3, %c0_37, %c0_38] : memref<1x4x128x32xbf16, #tpu.memory_space<vmem>>, vector<1x1x128x32xbf16>
    %42 = vector.shape_cast %41 : vector<1x1x128x32xbf16> to vector<128x32xbf16>
    %43 = vector.shape_cast %40 : vector<128x32xbf16> to vector<1x1x128x32xbf16>
    tpu.vector_store %arg8[%c0_36, %c3, %c0_37, %c0_38], %43 {strides = array<i32>} : memref<1x4x128x32xbf16, #tpu.memory_space<vmem>>, vector<1x1x128x32xbf16>,
    %44 = vector.extract_strided_slice %15 {offsets = [0, 96], sizes = [128, 32], strides = [1, 1]} : vector<128x128xbf16> to vector<128x32xbf16>
    %c0_39 = arith.constant 0 : index
    %c3_40 = arith.constant 3 : index
    %c0_41 = arith.constant 0 : index
    %c0_42 = arith.constant 0 : index
    %45 = vector.load %arg9[%c0_39, %c3_40, %c0_41, %c0_42] : memref<1x4x128x32xbf16, #tpu.memory_space<vmem>>, vector<1x1x128x32xbf16>
    %46 = vector.shape_cast %45 : vector<1x1x128x32xbf16> to vector<128x32xbf16>
    %47 = vector.shape_cast %44 : vector<128x32xbf16> to vector<1x1x128x32xbf16>
    tpu.vector_store %arg9[%c0_39, %c3_40, %c0_41, %c0_42], %47 {strides = array<i32>} : memref<1x4x128x32xbf16, #tpu.memory_space<vmem>>, vector<1x1x128x32xbf16>,
    return
  }
  func.func @transform_0(%arg0: i32, %arg1: i32) -> (i32, i32, i32) {
    %c0_i32 = arith.constant 0 : i32
    %c0_i32_0 = arith.constant 0 : i32
    return %arg0, %arg1, %c0_i32 : i32, i32, i32
  }
  func.func @transform_1(%arg0: i32, %arg1: i32) -> (i32, i32, i32) {
    %c0_i32 = arith.constant 0 : i32
    %c0_i32_0 = arith.constant 0 : i32
    return %arg0, %arg1, %c0_i32 : i32, i32, i32
  }
  func.func @transform_2(%arg0: i32, %arg1: i32) -> (i32, i32) {
    %c0_i32 = arith.constant 0 : i32
    %c0_i32_0 = arith.constant 0 : i32
    %c0_i32_1 = arith.constant 0 : i32
    return %c0_i32, %c0_i32_0 : i32, i32
  }
  func.func @transform_3(%arg0: i32, %arg1: i32) -> (i32, i32) {
    %c0_i32 = arith.constant 0 : i32
    %c0_i32_0 = arith.constant 0 : i32
    %c0_i32_1 = arith.constant 0 : i32
    return %c0_i32, %c0_i32_0 : i32, i32
  }
  func.func @transform_4(%arg0: i32, %arg1: i32) -> (i32, i32) {
    %c0_i32 = arith.constant 0 : i32
    %c0_i32_0 = arith.constant 0 : i32
    %c0_i32_1 = arith.constant 0 : i32
    return %c0_i32, %c0_i32_0 : i32, i32
  }
  func.func @transform_5(%arg0: i32, %arg1: i32) -> (i32, i32) {
    %c0_i32 = arith.constant 0 : i32
    %c0_i32_0 = arith.constant 0 : i32
    %c0_i32_1 = arith.constant 0 : i32
    return %c0_i32, %c0_i32_0 : i32, i32
  }
  func.func @transform_6(%arg0: i32, %arg1: i32) -> (i32, i32, i32, i32) {
    %c0_i32 = arith.constant 0 : i32
    %c0_i32_0 = arith.constant 0 : i32
    %c0_i32_1 = arith.constant 0 : i32
    return %arg0, %c0_i32, %arg1, %c0_i32_0 : i32, i32, i32, i32
  }
  func.func @transform_7(%arg0: i32, %arg1: i32) -> (i32, i32, i32, i32) {
    %c0_i32 = arith.constant 0 : i32
    %c0_i32_0 = arith.constant 0 : i32
    %c0_i32_1 = arith.constant 0 : i32
    return %arg0, %c0_i32, %arg1, %c0_i32_0 : i32, i32, i32, i32
  }
}

</mosaic_0001>

<bundles_post_ra>
// kernel: tpu_custom_call.1
= control target key start
LH: loop header
LB: loop body
LE: loop exit
PB: predicated region body
PF: predicated region fallthrough
CT: control target
= control target key end

     0   :  { %s3835_s0 = inlined_call_operand.hbm [shape: bf16[2,256,128], index: 0, kind: input, shape index: {}]   ;;  %s3836_s1 = inlined_call_operand.hbm [shape: bf16[2,256,128], index: 1, kind: input, shape index: {}]   ;;  %s3837_s2 = inlined_call_operand.hbm [shape: bf16[128,128], index: 2, kind: input, shape index: {}]   ;;  %s3838_s3 = inlined_call_operand.vmem [shape: f32[1,128], index: 3, kind: input, shape index: {}]   ;;  %s3839_s4 = inlined_call_operand.hbm [shape: bf16[128,128], index: 4, kind: input, shape index: {}]   ;;  %s3840_s5 = inlined_call_operand.vmem [shape: f32[1,128], index: 5, kind: input, shape index: {}]   ;;  %s3841_s6 = inlined_call_operand.vmem [shape: bf16[2,4,256,32], index: 6, kind: output, shape index: {0}]   ;;  %s3842_s7 = inlined_call_operand.vmem [shape: bf16[2,4,256,32], index: 7, kind: output, shape index: {1}]  }
   0x1   :  { %3850 = sst [smem:[#allocation18_spill]] %s3837_s2 }
   0x2   :  { %3851 = sst [smem:[#allocation19_spill]] %s3839_s4 }
   0x3   :  { %3852 = sst [smem:[#allocation20_spill]] %s3841_s6 }
   0x4   :  { %3853 = sst [smem:[#allocation21_spill]] %s3842_s7 }
   0x5   :  { %13 = vsyncpa [#allocation3], 0 }
   0x6   :  { %15 = vsyncpa [#allocation3 + $0x1], 0 }
   0x7   :  { %16 = vsyncpa [#allocation5], 0 }
   0x8   :  { %18 = vsyncpa [#allocation5 + $0x1], 0 }
   0x9   :  { %19 = vsyncpa [#allocation8], 0  ;;  %s2870_s24 = smov 0   ;;  %s2872_s25 = smov 0  }
   0xa   :  { %s2874_s26 = smov 0   ;;  %s2876_s27 = smov 0  }
   0xb   :  { %s2878_s28 = smov 0   ;;  %s2880_s29 = smov 0  }
   0xc   :  { %s2882_s30 = smov 0   ;;  %s2884_s8 = smov 0  }
   0xd LB: > { %3854 = sst [smem:[#allocation15_spill]] %s2815_s30  ;;  %s2909_s9 = sadd.s32 4294967295, %s2819_s8   ;;  %s2819_s8 = sphi %s2884_s8, %s25_s8   ;;  %s2815_s30 = sphi %s2882_s30, %s3871_s30   ;;  %s2811_s29 = sphi %s2880_s29, %s3876_s29   ;;  %s2807_s28 = sphi %s2878_s28, %s3869_s28   ;;  %s2803_s27 = sphi %s2876_s27, %s3875_s27   ;;  %s2799_s26 = sphi %s2874_s26, %s3874_s26   ;;  %s2795_s25 = sphi %s2872_s25, %s3873_s25   ;;  %s2791_s24 = sphi %s2870_s24, %s3872_s24  }
   0xe   : > { %p59_p0 = scmp.ne.s32.totalorder %s2795_s25, %s2791_s24  ;;  %p60_p1 = scmp.eq.s32.totalorder %s2909_s9, 0 }
   0xf   : > { %p197_p2 = scmp.eq.s32.totalorder %s2909_s9, 3  ;;  %p2180_p3 = scmp.ge.s32.totalorder %s2819_s8, 1 }
  0x10   : > { %p238_p4 = scmp.lt.s32.totalorder %s2819_s8, 5  ;;  %p2918_p5 = por %p60_p1, %p59_p0 }
  0x11   : > { %s2821_s12 = smov [#allocation6]   ;;  %s2822_s15 = smov [#allocation7]  }
  0x12   : > { %p2922_p6 = pnand %p2180_p3, %p238_p4  ;;  %s250_s13 = sshll.u32 %s2821_s12, 4  ;;  %s251_s13 = int_to_ptr.vmem [resolvable:$true] %s250_s13 }
  0x13   : > { %s266_s16 = sshll.u32 %s2822_s15, 4  ;;  %s2644_s17 = scalar_lea.vmem %s251_s13, 1024  ;;  %s267_s16 = int_to_ptr.vmem [resolvable:$true] %s266_s16 }
  0x14   : > { %p2511_p7 = pneg %p2922_p6  ;;  %p2645_p10 = scmp.ne.s32.totalorder %s251_s13, %s2644_s17 }
  0x15   : > { %p2652_p13 = scmp.lt.s32.totalorder %s251_s13, %s251_s13  ;;  %p2653_p0 = scmp.lt.s32.totalorder %s2644_s17, %s2644_s17 }
  0x16   : > { %p2930_p8 = pnand %p2511_p7, %p60_p1 }
  0x17   : > { %p2654_p3 = por %p2653_p0, %p2652_p13 }
  0x18   : > { %p2635_p9 = pneg %p2930_p8 }
  0x1a   : > { %p2647_p11 = pnand %p2645_p10, %p2635_p9 }
  0x1c   : > { %p2648_p12 = pneg %p2647_p11 }
  0x1e   : > { %p2655_p4 = pnand %p2654_p3, %p2648_p12 }
  0x20   : > { %2658 = shalt.err (!%p2655_p4)
}
  0x21   : > { %s3843_s18 = smov 64   ;;  %s3845_s19 = smov 4  }
  0x22   : > { %s3858_s2 = sld [smem:[#allocation18_spill]]  ;;  %s2670_s22 = scalar_lea.vmem %s267_s16, 1024 }
  0x23   : > { %p2671_p7 = scmp.ne.s32.totalorder %s267_s16, %s2670_s22  ;;  %p2678_p12 = scmp.lt.s32.totalorder %s267_s16, %s267_s16 }
  0x24   : > { %p2679_p13 = scmp.lt.s32.totalorder %s2670_s22, %s2670_s22 }
  0x25   : > { %p2673_p10 = pnand %p2671_p7, %p2635_p9 }
  0x26   : > { %p2680_p0 = por %p2679_p13, %p2678_p12 }
  0x27   : > { %p2674_p11 = pneg %p2673_p10 }
  0x28   : > { %2514 = dma.hbm_to_vmem [thread:$0]  (!%p2930_p8), %s3858_s2, 1024, %s251_s13, [#allocation5], %s3843_s18, %s3843_s18, %s3845_s19  }
  0x29   : > { %p2681_p3 = pnand %p2680_p0, %p2674_p11 }
  0x2b   : > { %2684 = shalt.err (!%p2681_p3)
}
  0x2c   : > { %s3859_s4 = sld [smem:[#allocation19_spill]]  ;;  %s34_s12 = sadd.s32 1, %s2811_s29 }
  0x2d   : > { %p35_p9 = scmp.ge.s32.totalorder %s34_s12, 2  ;;  %s37_s13 = sadd.s32 1, %s2815_s30 }
  0x2e   : > { %s46_s14 = sadd.s32 1, %s2799_s26  ;;  %p53_p4 = scmp.ne.s32.totalorder %s2799_s26, %s2795_s25 }
  0x2f   : > { %s3878_s12 = smov (%p35_p9, %s34_s12), 0  ;;  %s3880_s13 = smov (!%p35_p9, %s37_s13), %s2815_s30 }
  0x30   : > { %3860 = sst [smem:[#allocation16_spill]] %s3878_s12  ;;  %s42_s15 = ssub.s32 %s2811_s29, %s3878_s12 }
  0x31   : > { %p54_p7 = scmp.eq.s32.totalorder %s2819_s8, 0  ;;  %p39_p10 = scmp.ge.s32.totalorder %s3880_s13, 2 }
  0x32   : > { %2517 = dma.hbm_to_vmem [thread:$0]  (!%p2930_p8), %s3859_s4, 1024, %s267_s16, [#allocation8], %s3843_s18, %s3843_s18, %s3845_s19  }
  0x33   : > { %p2971_p11 = por %p197_p2, %p53_p4  ;;  %p2975_p8 = por %p54_p7, %p53_p4 }
  0x34   : > { %p2527_p12 = scmp.lt.s32.totalorder %s2819_s8, 4  ;;  %s3882_s13 = smov (%p39_p10, %s3880_s13), 0 }
  0x35   : > { %3863 = sst [smem:[#allocation17_spill]] %s3882_s13  ;;  %s283_s20 = sand.u32 1, %s2799_s26  }
  0x36   : > { %s2185_s21 = sshll.u32 %s2811_s29, 4  ;;  %s41_s22 = ssub.s32 %s2815_s30, %s3882_s13 }
  0x37   : > { %s43_s23 = sor.u32 %s42_s15, %s41_s22  ;;  %s2986_s24 = sshll.u32 %s283_s20, 6 }
  0x38   : > { %p44_p2 = scmp.eq.s32.totalorder %s43_s23, 0  ;;  %s2186_s18 = sshll.u32 %s2815_s30, 5 }
  0x39   : > { %s287_s19 = scalar_lea.vmem [#allocation2], %s2986_s24  ;;  %s293_s12 = sadd.s32 %s2186_s18, %s2185_s21 }
  0x3a   : > { %s296_s2 = sshll.u32 %s287_s19, 4  ;;  %s2187_s7 = sshll.u32 %s293_s12, 6  ;;  %s297_s2 = int_to_ptr.vmem [resolvable:$true] %s296_s2 }
  0x3b   : > { %s2991_s4 = scalar_select %p44_p2, %s2799_s26, %s46_s14  }
  0x3c   : > { %p2997_p13 = pnand %p2527_p12, %p2975_p8  ;;  %s295_s22 = scalar_lea.hbm %s3835_s0, %s2187_s7 }
  0x3d   : > { %s3007_s19 = scalar_lea.hbm %s3836_s1, %s2187_s7  ;;  %s284_s18 = scalar_lea.sflag [#allocation3], %s283_s20 }
  0x3e   : > { %p2687_p0 = pneg %p2997_p13  ;;  %s2698_s12 = scalar_lea.vmem %s297_s2, 1024 }
  0x3f   : > { %p2699_p3 = scmp.ne.s32.totalorder %s297_s2, %s2698_s12  ;;  %s2825_s14 = smov [#allocation2]  }
  0x40   : > { %s2703_s16 = sshll.u32 %s2825_s14, 4  ;;  %s2704_s16 = int_to_ptr.vmem [resolvable:$false] %s2703_s16 }
  0x41   : > { %p2701_p9 = pnand %p2699_p3, %p2687_p0  ;;  %s2705_s13 = scalar_lea.vmem %s2704_s16, 2048 }
  0x42   : > { %p2706_p7 = scmp.lt.s32.totalorder %s297_s2, %s2704_s16  ;;  %p2707_p10 = scmp.lt.s32.totalorder %s2705_s13, %s2698_s12 }
  0x43   : > { %p2702_p4 = pneg %p2701_p9 }
  0x44   : > { %p2708_p8 = por %p2707_p10, %p2706_p7 }
  0x46   : > { %p2709_p12 = pnand %p2708_p8, %p2702_p4 }
  0x48   : > { %2712 = shalt.err (!%p2709_p12)
}
  0x49   : > { %s3865_s7 = smov 4   ;;  %s3866_s30 = smov 64  }
  0x4a   : > { %2521 = dma.hbm_to_vmem [thread:$0]  (!%p2997_p13), %s295_s22, 1024, %s297_s2, %s284_s18, %s3866_s30, %s3866_s30, %s3865_s7  }
  0x4b   : > { %s310_s20 = scalar_lea.vmem [#allocation4], %s2986_s24  ;;  %s306_s15 = sand.u32 1, %s2819_s8  }
  0x4c   : > { %s319_s21 = sshll.u32 %s310_s20, 4  ;;  %s307_s23 = scalar_lea.sflag [#allocation5], %s306_s15  ;;  %s320_s21 = int_to_ptr.vmem [resolvable:$true] %s319_s21 }
  0x4d   : > { %s2726_s14 = scalar_lea.vmem %s320_s21, 1024  ;;  %s2826_s12 = smov [#allocation4]  }
  0x4e   : > { %p2727_p2 = scmp.ne.s32.totalorder %s320_s21, %s2726_s14  ;;  %s2731_s16 = sshll.u32 %s2826_s12, 4  ;;  %s2732_s16 = int_to_ptr.vmem [resolvable:$false] %s2731_s16 }
  0x4f   : > { %s2733_s13 = scalar_lea.vmem %s2732_s16, 2048  ;;  %p2734_p4 = scmp.lt.s32.totalorder %s320_s21, %s2732_s16 }
  0x50   : > { %p2729_p3 = pnand %p2727_p2, %p2687_p0  ;;  %p2735_p7 = scmp.lt.s32.totalorder %s2733_s13, %s2726_s14 }
  0x52   : > { %p2730_p9 = pneg %p2729_p3  ;;  %p2736_p10 = por %p2735_p7, %p2734_p4 }
  0x54   : > { %p2737_p8 = pnand %p2736_p10, %p2730_p9 }
  0x56   : > { %2740 = shalt.err (!%p2737_p8)
}
  0x57   : > { %2524 = dma.hbm_to_vmem [thread:$0]  (!%p2997_p13), %s3007_s19, 1024, %s320_s21, %s307_s23, %s3866_s30, %s3866_s30, %s3865_s7  }
  0x58   : > { %331 = sbr.rel (%p2922_p6) target bundleno = 660 (0x294), region = 44  ;;  %s3033_s2 = sand.u32 (!%p2922_p6), 1, %s2795_s25  }
  0x59   : > { %s2193_s24 = sshll.u32 (!%p2922_p6), %s3033_s2, 6  ;;  %s334_s22 = scalar_lea.sflag (!%p2922_p6), [#allocation3], %s3033_s2 }
  0x5a   : > { %s3037_s18 = scalar_lea.vmem (!%p2922_p6), [#allocation2], %s2193_s24 }
  0x5d   : > { %2774 = dma.done.wait (%p2918_p5), %s334_s22, 1024  }
  0x5e   : > { %2776 = vsyncadd (%p2918_p5), %s334_s22, 4294966272  ;;  %s342_s6 = sand.u32 1, %s2909_s9   ;;  %s3044_s19 = scalar_lea.vmem [#allocation4], %s2193_s24 }
  0x5f   : > { %s343_s11 = scalar_lea.sflag [#allocation5], %s342_s6 }
  0x60   : > { %2778 = dma.done.wait (%p2918_p5), %s343_s11, 1024  }
  0x61   : > { %2780 = vsyncadd (%p2918_p5), %s343_s11, 4294966272 }
  0x62   : > { %2782 = dma.done.wait (%p60_p1), [#allocation5], 1024  }
  0x63   : > { %2784 = vsyncadd (%p60_p1), [#allocation5], 4294966272 }
  0x64   : > { %2786 = dma.done.wait (%p60_p1), [#allocation8], 1024  }
  0x65   : > { %2788 = vsyncadd (%p60_p1), [#allocation8], 4294966272  ;;  %v2601_v0 = vld [vmem:[#allocation6 + $0x38] sm:$0xff]   ;;  %v2603_v2 = vld [vmem:[#allocation6 + $0x30] sm:$0xff]   ;;  %s2197_s7 = sshll.u32 %s3033_s2, 8  ;;  %vm934_vm0 = vcmask 257024  }
  0x66   : > { %v2602_v1 = vld [vmem:[#allocation7 + $0x38] sm:$0xff]   ;;  %2435 = vmatprep.subr.bf16.mxu0 %v2601_v0  ;;  %v2604_v3 = vld [vmem:[#allocation7 + $0x30] sm:$0xff]   ;;  %v2605_v4 = vld [vmem:[#allocation6 + $0x28] sm:$0xff]   ;;  %s3093_s21 = scalar_lea.vmem [#allocation9], %s2197_s7  ;;  %s2827_s15 = smov 96  }
  0x67   : > { %2467 = vmatprep.subr.bf16.mxu1 %v2602_v1  ;;  %2436 = vmatpush3.bf16.msra.mxu0 %v2601_v0  ;;  %v2606_v5 = vld [vmem:[#allocation7 + $0x28] sm:$0xff]   ;;  %v2607_v6 = vld [vmem:[#allocation6 + $0x20] sm:$0xff]   ;;  %v2609_v8 = vld [vmem:[#allocation6 + $0x18] sm:$0xff]   ;;  %s3103_s23 = scalar_lea.vmem [#allocation10], %s2197_s7  ;;  %s2828_s14 = smov 64  }
  0x68   : > { %2468 = vmatpush3.bf16.msra.mxu1 %v2602_v1  ;;  %2437 = vmatprep.subr.bf16.mxu0 %v2603_v2  ;;  %v2608_v7 = vld [vmem:[#allocation7 + $0x20] sm:$0xff]   ;;  %v2610_v9 = vld [vmem:[#allocation7 + $0x18] sm:$0xff]   ;;  %v2611_v10 = vld [vmem:[#allocation6 + $0x10] sm:$0xff]   ;;  %s2829_s12 = smov 32   ;;  %s2363_s16 = sshll.u32 (%p2971_p11), %s2803_s27, 4 }
  0x69   : > { %2469 = vmatprep.subr.bf16.mxu1 %v2604_v3  ;;  %v2612_v11 = vld [vmem:[#allocation7 + $0x10] sm:$0xff]   ;;  %v2617_v12 = vld [vmem:[%s3037_s18] sm:$0xff]   ;;  %v2613_v14 = vld [vmem:[#allocation6 + $0x8] sm:$0xff]   ;;  %s2364_s13 = sshll.u32 (%p2971_p11), %s2807_s28, 7  ;;  %s3867_s6 = sld [smem:[#allocation20_spill]] (%p2971_p11) }
  0x6a   : > { %v2618_v13 = vld [vmem:[%s3044_s19] sm:$0xff]   ;;  %2451 = vmatprep.mubr.bf16.mxu0 %v2617_v12  ;;  %v2614_v15 = vld [vmem:[#allocation7 + $0x8] sm:$0xff]   ;;  %v2621_v20 = vld [vmem:[%s3037_s18 + $0x10] sm:$0xff]   ;;  %s1426_s2 = sadd.s32 (%p2971_p11), %s2364_s13, %s2363_s16 }
  0x6b   : > { %2438 = vmatpush3.bf16.msra.mxu0 %v2603_v2  ;;  %2483 = vmatprep.mubr.bf16.mxu1 %v2618_v13  ;;  %v2615_v16 = vld [vmem:[#allocation6] sm:$0xff]   ;;  %v2619_v18 = vld [vmem:[%s3037_s18 + $0x8] sm:$0xff]   ;;  %v2623_v21 = vld [vmem:[%s3044_s19 + $0x10] sm:$0xff]   ;;  %s2365_s24 = sshll.u32 (%p2971_p11), %s1426_s2, 2 }
  0x6c   : > { %2470 = vmatpush3.bf16.msra.mxu1 %v2604_v3  ;;  %2439 = vmatprep.subr.bf16.mxu0 %v2605_v4  ;;  %v2616_v17 = vld [vmem:[#allocation7] sm:$0xff]   ;;  %v2620_v19 = vld [vmem:[%s3044_s19 + $0x8] sm:$0xff]   ;;  %v2622_v22 = vld [vmem:[%s3037_s18 + $0x18] sm:$0xff]  }
  0x6d   : > { %2471 = vmatprep.subr.bf16.mxu1 %v2606_v5  ;;  %v2624_v23 = vld [vmem:[%s3044_s19 + $0x18] sm:$0xff]   ;;  %v2625_v24 = vld [vmem:[%s3037_s18 + $0x20] sm:$0xff]   ;;  %v2626_v26 = vld [vmem:[%s3037_s18 + $0x28] sm:$0xff]  }
  0x6e   : > { %v2627_v25 = vld [vmem:[%s3044_s19 + $0x20] sm:$0xff]   ;;  %v2628_v27 = vld [vmem:[%s3044_s19 + $0x28] sm:$0xff]   ;;  %v2629_v28 = vld [vmem:[%s3037_s18 + $0x30] sm:$0xff]  }
  0x6f   : > { %2440 = vmatpush3.bf16.msra.mxu0 %v2605_v4  ;;  %v2631_v29 = vld [vmem:[%s3044_s19 + $0x30] sm:$0xff]   ;;  %v2630_v30 = vld [vmem:[%s3037_s18 + $0x38] sm:$0xff]   ;;  %v3077_v32 = vld [vmem:[%s3838_s3] ss:$0 sm:$0xff]  ;;  %s3681_s11 = scalar_lea.vmem (%p2971_p11), %s3867_s6, %s2365_s24 }
  0x70   : > { %2472 = vmatpush3.bf16.msra.mxu1 %v2606_v5  ;;  %2441 = vmatprep.subr.bf16.mxu0 %v2607_v6  ;;  %v2632_v31 = vld [vmem:[%s3044_s19 + $0x38] sm:$0xff]   ;;  %v3083_v33 = vld [vmem:[%s3840_s5] ss:$0 sm:$0xff] }
  0x71   : > { %2473 = vmatprep.subr.bf16.mxu1 %v2608_v7 }
  0x73   : > { %2442 = vmatpush3.bf16.msra.mxu0 %v2607_v6 }
  0x74   : > { %2474 = vmatpush3.bf16.msra.mxu1 %v2608_v7  ;;  %2443 = vmatprep.subr.bf16.mxu0 %v2609_v8 }
  0x75   : > { %2475 = vmatprep.subr.bf16.mxu1 %v2610_v9 }
  0x77   : > { %2444 = vmatpush3.bf16.msra.mxu0 %v2609_v8 }
  0x78   : > { %2476 = vmatpush3.bf16.msra.mxu1 %v2610_v9  ;;  %2445 = vmatprep.subr.bf16.mxu0 %v2611_v10 }
  0x79   : > { %2477 = vmatprep.subr.bf16.mxu1 %v2612_v11 }
  0x7b   : > { %2446 = vmatpush3.bf16.msra.mxu0 %v2611_v10 }
  0x7c   : > { %2478 = vmatpush3.bf16.msra.mxu1 %v2612_v11  ;;  %2447 = vmatprep.subr.bf16.mxu0 %v2613_v14 }
  0x7d   : > { %2479 = vmatprep.subr.bf16.mxu1 %v2614_v15 }
  0x7f   : > { %2448 = vmatpush3.bf16.msra.mxu0 %v2613_v14 }
  0x80   : > { %2480 = vmatpush3.bf16.msra.mxu1 %v2614_v15  ;;  %2449 = vmatprep.subr.bf16.mxu0 %v2615_v16 }
  0x81   : > { %2481 = vmatprep.subr.bf16.mxu1 %v2616_v17 }
  0x83   : > { %2450 = vmatpush3.bf16.msra.mxu0 %v2615_v16 }
  0x84   : > { %2482 = vmatpush3.bf16.msra.mxu1 %v2616_v17 }
  0x86   : > { %2452 = vmatmul.mubr.bf16.vlgmr.msra.gmra.mxu0 %v2619_v18 }
  0x87   : > { %2484 = vmatmul.mubr.bf16.vlgmr.msra.gmra.mxu1 %v2620_v19  ;;  %2455 = vmatprep.mubr.bf16.mxu0 %v2621_v20 }
  0x88   : > { %2487 = vmatprep.mubr.bf16.mxu1 %v2623_v21 }
  0x8e   : > { %2456 = vmatmul.mubr.bf16.gmra.mxu0 %v2622_v22 }
  0x8f   : > { %2488 = vmatmul.mubr.bf16.gmra.mxu1 %v2624_v23  ;;  %2459 = vmatprep.mubr.bf16.mxu0 %v2625_v24 }
  0x90   : > { %2491 = vmatprep.mubr.bf16.mxu1 %v2627_v25 }
  0x96   : > { %2460 = vmatmul.mubr.bf16.gmra.mxu0 %v2626_v26 }
  0x97   : > { %2492 = vmatmul.mubr.bf16.gmra.mxu1 %v2628_v27  ;;  %2463 = vmatprep.mubr.bf16.mxu0 %v2629_v28 }
  0x98   : > { %2495 = vmatprep.mubr.bf16.mxu1 %v2631_v29 }
  0x9e   : > { %2464 = vmatmul.mubr.bf16.gmra.mxu0 %v2630_v30 }
  0x9f   : > { %2496 = vmatmul.mubr.bf16.gmra.mxu1 %v2632_v31 }
 0x146   : > { %v2453_v34 = vpop.f32.mrf.mxu0 }
 0x147   : > { %v592_v35 = vadd.f32 %v2453_v34, %v3077_v32  ;;  %v2485_v36 = vpop.f32.mrf.mxu1 }
 0x148   : > { %v816_v37 = vadd.f32 %v2485_v36, %v3083_v33  ;;  %v583_v38 = vpop.f32.mrf.mxu0 }
 0x149   : > { %v3087_v39 = vpack.c.bf16 %v592_v35, %v592_v35  ;;  %v584_v40 = vadd.f32 %v3077_v32, %v583_v38  ;;  %v807_v41 = vpop.f32.mrf.mxu1 }
 0x14a   : > { %v3090_v42 = vpack.c.bf16 %v816_v37, %v816_v37  ;;  %v808_v43 = vadd.f32 %v3083_v33, %v807_v41  ;;  %v2454_v44 = vpop.f32.mrf.mxu0 }
 0x14b   : > { %937 = vst.msk [vmem:[%s3093_s21 + $0x8] sm:$0xf] %vm934_vm0, %v3087_v39  ;;  %v3098_v45 = vpack.c.bf16 %v584_v40, %v584_v40  ;;  %v595_v46 = vadd.f32 %v2454_v44, %v3077_v32  ;;  %v2486_v47 = vpop.f32.mrf.mxu1  ;;  %1027 = vrot.lane.b32.xlu1 %v3087_v39, %s2827_s15 }
 0x14c   : > { %1009 = vst.msk [vmem:[%s3103_s23 + $0x8] sm:$0xf] %vm934_vm0, %v3090_v42  ;;  %v3108_v48 = vpack.c.bf16 %v808_v43, %v808_v43  ;;  %v819_v49 = vadd.f32 %v2486_v47, %v3083_v33  ;;  %1092 = vrot.lane.b32.xlu0 %v3090_v42, %s2827_s15  ;;  %v586_v50 = vpop.f32.mrf.mxu0 }
 0x14d   : > { %935 = vst.msk [vmem:[%s3093_s21] sm:$0xf] %vm934_vm0, %v3098_v45  ;;  %v3116_v51 = vpack.c.bf16 %v595_v46, %v595_v46  ;;  %v587_v52 = vadd.f32 %v3077_v32, %v586_v50  ;;  %v810_v53 = vpop.f32.mrf.mxu1 }
 0x14e   : > { %1007 = vst.msk [vmem:[%s3103_s23] sm:$0xf] %vm934_vm0, %v3108_v48  ;;  %v3122_v54 = vpack.c.bf16 %v819_v49, %v819_v49  ;;  %v811_v55 = vadd.f32 %v3083_v33, %v810_v53  ;;  %v2457_v56 = vpop.f32.mrf.mxu0 }
 0x14f   : > { %938 = vst.msk [vmem:[%s3093_s21 + $0xc] sm:$0xf] %vm934_vm0, %v3116_v51  ;;  %v3128_v57 = vpack.c.bf16 %v587_v52, %v587_v52  ;;  %1029 = vrot.lane.b32.xlu1 %v3116_v51, %s2827_s15  ;;  %v608_v58 = vadd.f32 %v2457_v56, %v3077_v32  ;;  %v2489_v59 = vpop.f32.mrf.mxu1 }
 0x150   : > { %1010 = vst.msk [vmem:[%s3103_s23 + $0xc] sm:$0xf] %vm934_vm0, %v3122_v54  ;;  %v3136_v60 = vpack.c.bf16 %v811_v55, %v811_v55  ;;  %1157 = vrot.lane.b32.xlu0 %v3087_v39, %s2828_s14  ;;  %v599_v61 = vpop.f32.mrf.mxu0  ;;  %v832_v62 = vadd.f32 %v2489_v59, %v3083_v33 }
 0x151   : > { %936 = vst.msk [vmem:[%s3093_s21 + $0x4] sm:$0xf] %vm934_vm0, %v3128_v57  ;;  %v3144_v63 = vpack.c.bf16 %v608_v58, %v608_v58  ;;  %v600_v0 = vadd.f32 %v3077_v32, %v599_v61  ;;  %v823_v1 = vpop.f32.mrf.mxu1 }
 0x152   : > { %1008 = vst.msk [vmem:[%s3103_s23 + $0x4] sm:$0xf] %vm934_vm0, %v3136_v60  ;;  %v2458_v2 = vpop.f32.mrf.mxu0  ;;  %v3150_v3 = vpack.c.bf16 %v832_v62, %v832_v62  ;;  %v824_v4 = vadd.f32 %v3083_v33, %v823_v1 }
 0x153   : > { %1094 = vrot.lane.b32.xlu1 %v3122_v54, %s2827_s15  ;;  %941 = vst.msk [vmem:[%s3093_s21 + $0x18] sm:$0xf] %vm934_vm0, %v3144_v63  ;;  %v3158_v5 = vpack.c.bf16 %v600_v0, %v600_v0  ;;  %v611_v6 = vadd.f32 %v2458_v2, %v3077_v32  ;;  %v2490_v7 = vpop.f32.mrf.mxu1 }
 0x154   : > { %1222 = vrot.lane.b32.xlu0 %v3090_v42, %s2828_s14  ;;  %1013 = vst.msk [vmem:[%s3103_s23 + $0x18] sm:$0xf] %vm934_vm0, %v3150_v3  ;;  %v602_v8 = vpop.f32.mrf.mxu0  ;;  %v3166_v9 = vpack.c.bf16 %v824_v4, %v824_v4  ;;  %v835_v10 = vadd.f32 %v2490_v7, %v3083_v33 }
 0x155   : > { %939 = vst.msk [vmem:[%s3093_s21 + $0x10] sm:$0xf] %vm934_vm0, %v3158_v5  ;;  %v3172_v11 = vpack.c.bf16 %v611_v6, %v611_v6  ;;  %v603_v12 = vadd.f32 %v3077_v32, %v602_v8  ;;  %v826_v13 = vpop.f32.mrf.mxu1 }
 0x156   : > { %1011 = vst.msk [vmem:[%s3103_s23 + $0x10] sm:$0xf] %vm934_vm0, %v3166_v9  ;;  %v3178_v14 = vpack.c.bf16 %v835_v10, %v835_v10  ;;  %v827_v15 = vadd.f32 %v3083_v33, %v826_v13  ;;  %v2461_v16 = vpop.f32.mrf.mxu0 }
 0x157   : > { %1159 = vrot.lane.b32.xlu1 %v3116_v51, %s2828_s14  ;;  %942 = vst.msk [vmem:[%s3093_s21 + $0x1c] sm:$0xf] %vm934_vm0, %v3172_v11  ;;  %v3186_v17 = vpack.c.bf16 %v603_v12, %v603_v12  ;;  %v624_v18 = vadd.f32 %v2461_v16, %v3077_v32  ;;  %v2493_v19 = vpop.f32.mrf.mxu1 }
 0x158   : > { %1287 = vrot.lane.b32.xlu0 %v3087_v39, %s2829_s12  ;;  %1014 = vst.msk [vmem:[%s3103_s23 + $0x1c] sm:$0xf] %vm934_vm0, %v3178_v14  ;;  %v3194_v20 = vpack.c.bf16 %v827_v15, %v827_v15  ;;  %v615_v21 = vpop.f32.mrf.mxu0  ;;  %v848_v22 = vadd.f32 %v2493_v19, %v3083_v33 }
 0x159   : > { %940 = vst.msk [vmem:[%s3093_s21 + $0x14] sm:$0xf] %vm934_vm0, %v3186_v17  ;;  %v3200_v23 = vpack.c.bf16 %v624_v18, %v624_v18  ;;  %v616_v24 = vadd.f32 %v3077_v32, %v615_v21  ;;  %v839_v25 = vpop.f32.mrf.mxu1 }
 0x15a   : > { %1012 = vst.msk [vmem:[%s3103_s23 + $0x14] sm:$0xf] %vm934_vm0, %v3194_v20  ;;  %v2462_v26 = vpop.f32.mrf.mxu0  ;;  %v3206_v27 = vpack.c.bf16 %v848_v22, %v848_v22  ;;  %v840_v28 = vadd.f32 %v3083_v33, %v839_v25 }
 0x15b   : > { %1224 = vrot.lane.b32.xlu1 %v3122_v54, %s2828_s14  ;;  %945 = vst.msk [vmem:[%s3093_s21 + $0x28] sm:$0xf] %vm934_vm0, %v3200_v23  ;;  %v3214_v29 = vpack.c.bf16 %v616_v24, %v616_v24  ;;  %v627_v30 = vadd.f32 %v2462_v26, %v3077_v32  ;;  %v2494_v31 = vpop.f32.mrf.mxu1 }
 0x15c   : > { %1352 = vrot.lane.b32.xlu0 %v3090_v42, %s2829_s12  ;;  %1017 = vst.msk [vmem:[%s3103_s23 + $0x28] sm:$0xf] %vm934_vm0, %v3206_v27  ;;  %v618_v34 = vpop.f32.mrf.mxu0  ;;  %v3222_v35 = vpack.c.bf16 %v840_v28, %v840_v28  ;;  %v851_v36 = vadd.f32 %v2494_v31, %v3083_v33 }
 0x15d   : > { %943 = vst.msk [vmem:[%s3093_s21 + $0x20] sm:$0xf] %vm934_vm0, %v3214_v29  ;;  %v3228_v37 = vpack.c.bf16 %v627_v30, %v627_v30  ;;  %v619_v38 = vadd.f32 %v3077_v32, %v618_v34  ;;  %v842_v39 = vpop.f32.mrf.mxu1 }
 0x15e   : > { %1015 = vst.msk [vmem:[%s3103_s23 + $0x20] sm:$0xf] %vm934_vm0, %v3222_v35  ;;  %v3234_v40 = vpack.c.bf16 %v851_v36, %v851_v36  ;;  %v843_v41 = vadd.f32 %v3083_v33, %v842_v39  ;;  %v2465_v42 = vpop.f32.mrf.mxu0 }
 0x15f   : > { %1289 = vrot.lane.b32.xlu1 %v3116_v51, %s2829_s12  ;;  %946 = vst.msk [vmem:[%s3093_s21 + $0x2c] sm:$0xf] %vm934_vm0, %v3228_v37  ;;  %v3242_v43 = vpack.c.bf16 %v619_v38, %v619_v38  ;;  %v640_v44 = vadd.f32 %v2465_v42, %v3077_v32  ;;  %v2497_v46 = vpop.f32.mrf.mxu1 }
 0x160   : > { %1023 = vrot.lane.b32.xlu0 %v3098_v45, %s2827_s15  ;;  %1018 = vst.msk [vmem:[%s3103_s23 + $0x2c] sm:$0xf] %vm934_vm0, %v3234_v40  ;;  %v3250_v47 = vpack.c.bf16 %v843_v41, %v843_v41  ;;  %v631_v49 = vpop.f32.mrf.mxu0  ;;  %v864_v50 = vadd.f32 %v2497_v46, %v3083_v33 }
 0x161   : > { %944 = vst.msk [vmem:[%s3093_s21 + $0x24] sm:$0xf] %vm934_vm0, %v3242_v43  ;;  %v3256_v51 = vpack.c.bf16 %v640_v44, %v640_v44  ;;  %v632_v52 = vadd.f32 %v3077_v32, %v631_v49  ;;  %v855_v53 = vpop.f32.mrf.mxu1 }
 0x162   : > { %1016 = vst.msk [vmem:[%s3103_s23 + $0x24] sm:$0xf] %vm934_vm0, %v3250_v47  ;;  %v2466_v55 = vpop.f32.mrf.mxu0  ;;  %v3262_v56 = vpack.c.bf16 %v864_v50, %v864_v50  ;;  %v856_v58 = vadd.f32 %v3083_v33, %v855_v53 }
 0x163   : > { %1354 = vrot.lane.b32.xlu1 %v3122_v54, %s2829_s12  ;;  %949 = vst.msk [vmem:[%s3093_s21 + $0x38] sm:$0xf] %vm934_vm0, %v3256_v51  ;;  %v3270_v59 = vpack.c.bf16 %v632_v52, %v632_v52  ;;  %v643_v61 = vadd.f32 %v2466_v55, %v3077_v32  ;;  %v2498_v62 = vpop.f32.mrf.mxu1 }
 0x164   : > { %1088 = vrot.lane.b32.xlu0 %v3108_v48, %s2827_s15  ;;  %1021 = vst.msk [vmem:[%s3103_s23 + $0x38] sm:$0xf] %vm934_vm0, %v3262_v56  ;;  %v634_v0 = vpop.f32.mrf.mxu0  ;;  %v3278_v1 = vpack.c.bf16 %v856_v58, %v856_v58  ;;  %v867_v54 = vadd.f32 %v2498_v62, %v3083_v33 }
 0x165   : > { %947 = vst.msk [vmem:[%s3093_s21 + $0x30] sm:$0xf] %vm934_vm0, %v3270_v59  ;;  %v3284_v2 = vpack.c.bf16 %v643_v61, %v643_v61  ;;  %v635_v4 = vadd.f32 %v3077_v32, %v634_v0  ;;  %v858_v6 = vpop.f32.mrf.mxu1 }
 0x166   : > { %1019 = vst.msk [vmem:[%s3103_s23 + $0x30] sm:$0xf] %vm934_vm0, %v3278_v1  ;;  %v3290_v7 = vpack.c.bf16 %v867_v54, %v867_v54  ;;  %v859_v8 = vadd.f32 %v3083_v33, %v858_v6 }
 0x167   : > { %1090 = vrot.lane.b32.xlu1 %v3136_v60, %s2827_s15  ;;  %950 = vst.msk [vmem:[%s3093_s21 + $0x3c] sm:$0xf] %vm934_vm0, %v3284_v2  ;;  %v3298_v10 = vpack.c.bf16 %v635_v4, %v635_v4 }
 0x168   : > { %1153 = vrot.lane.b32.xlu0 %v3098_v45, %s2828_s14  ;;  %1022 = vst.msk [vmem:[%s3103_s23 + $0x3c] sm:$0xf] %vm934_vm0, %v3290_v7  ;;  %v3305_v32 = vpack.c.bf16 %v859_v8, %v859_v8 }
 0x169   : > { %948 = vst.msk [vmem:[%s3093_s21 + $0x34] sm:$0xf] %vm934_vm0, %v3298_v10 }
 0x16a   : > { %1020 = vst.msk [vmem:[%s3103_s23 + $0x34] sm:$0xf] %vm934_vm0, %v3305_v32 }
 0x16b   : > { %1155 = vrot.lane.b32.xlu1 %v3128_v57, %s2828_s14 }
 0x16c   : > { %1218 = vrot.lane.b32.xlu0 %v3108_v48, %s2828_s14 }
 0x16f   : > { %1220 = vrot.lane.b32.xlu1 %v3136_v60, %s2828_s14 }
 0x170   : > { %1283 = vrot.lane.b32.xlu0 %v3098_v45, %s2829_s12 }
 0x173   : > { %1285 = vrot.lane.b32.xlu1 %v3128_v57, %s2829_s12 }
 0x174   : > { %1348 = vrot.lane.b32.xlu0 %v3108_v48, %s2829_s12 }
 0x177   : > { %1350 = vrot.lane.b32.xlu1 %v3136_v60, %s2829_s12 }
 0x178   : > { %1025 = vrot.lane.b32.xlu0 %v3128_v57, %s2827_s15 }
 0x17b   : > { %1037 = vrot.lane.b32.xlu1 %v3172_v11, %s2827_s15 }
 0x17c   : > { %1035 = vrot.lane.b32.xlu0 %v3144_v63, %s2827_s15 }
 0x17f   : > { %1102 = vrot.lane.b32.xlu1 %v3178_v14, %s2827_s15 }
 0x180   : > { %1100 = vrot.lane.b32.xlu0 %v3150_v3, %s2827_s15 }
 0x183   : > { %1167 = vrot.lane.b32.xlu1 %v3172_v11, %s2828_s14 }
 0x184   : > { %1165 = vrot.lane.b32.xlu0 %v3144_v63, %s2828_s14 }
 0x187   : > { %1232 = vrot.lane.b32.xlu1 %v3178_v14, %s2828_s14 }
 0x188   : > { %1230 = vrot.lane.b32.xlu0 %v3150_v3, %s2828_s14 }
 0x18b   : > { %1297 = vrot.lane.b32.xlu1 %v3172_v11, %s2829_s12 }
 0x18c   : > { %1295 = vrot.lane.b32.xlu0 %v3144_v63, %s2829_s12 }
 0x18f   : > { %1362 = vrot.lane.b32.xlu1 %v3178_v14, %s2829_s12 }
 0x190   : > { %1360 = vrot.lane.b32.xlu0 %v3150_v3, %s2829_s12 }
 0x193   : > { %1033 = vrot.lane.b32.xlu1 %v3186_v17, %s2827_s15 }
 0x194   : > { %1031 = vrot.lane.b32.xlu0 %v3158_v5, %s2827_s15 }
 0x197   : > { %1098 = vrot.lane.b32.xlu1 %v3194_v20, %s2827_s15 }
 0x198   : > { %1096 = vrot.lane.b32.xlu0 %v3166_v9, %s2827_s15 }
 0x19b   : > { %1163 = vrot.lane.b32.xlu1 %v3186_v17, %s2828_s14 }
 0x19c   : > { %1161 = vrot.lane.b32.xlu0 %v3158_v5, %s2828_s14 }
 0x19f   : > { %1228 = vrot.lane.b32.xlu1 %v3194_v20, %s2828_s14 }
 0x1a0   : > { %1226 = vrot.lane.b32.xlu0 %v3166_v9, %s2828_s14 }
 0x1a3   : > { %1293 = vrot.lane.b32.xlu1 %v3186_v17, %s2829_s12 }
 0x1a4   : > { %1291 = vrot.lane.b32.xlu0 %v3158_v5, %s2829_s12 }
 0x1a7   : > { %1358 = vrot.lane.b32.xlu1 %v3194_v20, %s2829_s12 }
 0x1a8   : > { %1356 = vrot.lane.b32.xlu0 %v3166_v9, %s2829_s12 }
 0x1ab   : > { %1045 = vrot.lane.b32.xlu1 %v3228_v37, %s2827_s15 }
 0x1ac   : > { %1043 = vrot.lane.b32.xlu0 %v3200_v23, %s2827_s15 }
 0x1af   : > { %1110 = vrot.lane.b32.xlu1 %v3234_v40, %s2827_s15 }
 0x1b0   : > { %1108 = vrot.lane.b32.xlu0 %v3206_v27, %s2827_s15 }
 0x1b3   : > { %1175 = vrot.lane.b32.xlu1 %v3228_v37, %s2828_s14 }
 0x1b4   : > { %1173 = vrot.lane.b32.xlu0 %v3200_v23, %s2828_s14 }
 0x1b7   : > { %1240 = vrot.lane.b32.xlu1 %v3234_v40, %s2828_s14 }
 0x1b8   : > { %1238 = vrot.lane.b32.xlu0 %v3206_v27, %s2828_s14 }
 0x1bb   : > { %1305 = vrot.lane.b32.xlu1 %v3228_v37, %s2829_s12 }
 0x1bc   : > { %1303 = vrot.lane.b32.xlu0 %v3200_v23, %s2829_s12 }
 0x1bd   : > { %v1028_v33 = vpop.permute.xlu1 %1027 }
 0x1be   : > { %v1093_v45 = vpop.permute.xlu0 %1092  ;;  %2267 = vst.msk [vmem:[%s3093_s21 + $0x48] sm:$0xf] %vm934_vm0, %v1028_v33 }
 0x1bf   : > { %2283 = vst.msk [vmem:[%s3103_s23 + $0x48] sm:$0xf] %vm934_vm0, %v1093_v45  ;;  %1370 = vrot.lane.b32.xlu1 %v3234_v40, %s2829_s12 }
 0x1c0   : > { %1368 = vrot.lane.b32.xlu0 %v3206_v27, %s2829_s12 }
 0x1c1   : > { %v1030_v48 = vpop.permute.xlu1 %1029 }
 0x1c2   : > { %v1158_v57 = vpop.permute.xlu0 %1157  ;;  %2268 = vst.msk [vmem:[%s3093_s21 + $0x4c] sm:$0xf] %vm934_vm0, %v1030_v48 }
 0x1c3   : > { %2299 = vst.msk [vmem:[%s3093_s21 + $0x88] sm:$0xf] %vm934_vm0, %v1158_v57  ;;  %1041 = vrot.lane.b32.xlu1 %v3242_v43, %s2827_s15 }
 0x1c4   : > { %1039 = vrot.lane.b32.xlu0 %v3214_v29, %s2827_s15 }
 0x1c5   : > { %v1095_v60 = vpop.permute.xlu1 %1094 }
 0x1c6   : > { %v1223_v63 = vpop.permute.xlu0 %1222  ;;  %2284 = vst.msk [vmem:[%s3103_s23 + $0x4c] sm:$0xf] %vm934_vm0, %v1095_v60 }
 0x1c7   : > { %2315 = vst.msk [vmem:[%s3103_s23 + $0x88] sm:$0xf] %vm934_vm0, %v1223_v63  ;;  %1106 = vrot.lane.b32.xlu1 %v3250_v47, %s2827_s15 }
 0x1c8   : > { %1104 = vrot.lane.b32.xlu0 %v3222_v35, %s2827_s15 }
 0x1c9   : > { %v1160_v3 = vpop.permute.xlu1 %1159 }
 0x1ca   : > { %v1288_v5 = vpop.permute.xlu0 %1287  ;;  %2300 = vst.msk [vmem:[%s3093_s21 + $0x8c] sm:$0xf] %vm934_vm0, %v1160_v3 }
 0x1cb   : > { %2331 = vst.msk [vmem:[%s3093_s21 + $0xc8] sm:$0xf] %vm934_vm0, %v1288_v5  ;;  %1171 = vrot.lane.b32.xlu1 %v3242_v43, %s2828_s14 }
 0x1cc   : > { %1169 = vrot.lane.b32.xlu0 %v3214_v29, %s2828_s14 }
 0x1cd   : > { %v1225_v9 = vpop.permute.xlu1 %1224 }
 0x1ce   : > { %v1353_v11 = vpop.permute.xlu0 %1352  ;;  %2316 = vst.msk [vmem:[%s3103_s23 + $0x8c] sm:$0xf] %vm934_vm0, %v1225_v9 }
 0x1cf   : > { %2347 = vst.msk [vmem:[%s3103_s23 + $0xc8] sm:$0xf] %vm934_vm0, %v1353_v11  ;;  %1236 = vrot.lane.b32.xlu1 %v3250_v47, %s2828_s14 }
 0x1d0   : > { %1234 = vrot.lane.b32.xlu0 %v3222_v35, %s2828_s14 }
 0x1d1   : > { %v1290_v12 = vpop.permute.xlu1 %1289 }
 0x1d2   : > { %2332 = vst.msk [vmem:[%s3093_s21 + $0xcc] sm:$0xf] %vm934_vm0, %v1290_v12  ;;  %v1024_v13 = vpop.permute.xlu0 %1023 }
 0x1d3   : > { %2265 = vst.msk [vmem:[%s3093_s21 + $0x40] sm:$0xf] %vm934_vm0, %v1024_v13  ;;  %1301 = vrot.lane.b32.xlu1 %v3242_v43, %s2829_s12 }
 0x1d4   : > { %1299 = vrot.lane.b32.xlu0 %v3214_v29, %s2829_s12 }
 0x1d5   : > { %v1355_v14 = vpop.permute.xlu1 %1354 }
 0x1d6   : > { %2348 = vst.msk [vmem:[%s3103_s23 + $0xcc] sm:$0xf] %vm934_vm0, %v1355_v14  ;;  %v1089_v15 = vpop.permute.xlu0 %1088 }
 0x1d7   : > { %2281 = vst.msk [vmem:[%s3103_s23 + $0x40] sm:$0xf] %vm934_vm0, %v1089_v15  ;;  %1366 = vrot.lane.b32.xlu1 %v3250_v47, %s2829_s12 }
 0x1d8   : > { %1364 = vrot.lane.b32.xlu0 %v3222_v35, %s2829_s12 }
 0x1d9   : > { %v1091_v16 = vpop.permute.xlu1 %1090 }
 0x1da   : > { %2282 = vst.msk [vmem:[%s3103_s23 + $0x44] sm:$0xf] %vm934_vm0, %v1091_v16  ;;  %v1154_v17 = vpop.permute.xlu0 %1153 }
 0x1db   : > { %2297 = vst.msk [vmem:[%s3093_s21 + $0x80] sm:$0xf] %vm934_vm0, %v1154_v17  ;;  %1053 = vrot.lane.b32.xlu1 %v3284_v2, %s2827_s15 }
 0x1dc   : > { %1051 = vrot.lane.b32.xlu0 %v3256_v51, %s2827_s15 }
 0x1dd   : > { %v1156_v18 = vpop.permute.xlu1 %1155 }
 0x1de   : > { %2298 = vst.msk [vmem:[%s3093_s21 + $0x84] sm:$0xf] %vm934_vm0, %v1156_v18  ;;  %v1219_v19 = vpop.permute.xlu0 %1218 }
 0x1df   : > { %2313 = vst.msk [vmem:[%s3103_s23 + $0x80] sm:$0xf] %vm934_vm0, %v1219_v19  ;;  %1118 = vrot.lane.b32.xlu1 %v3290_v7, %s2827_s15 }
 0x1e0   : > { %1116 = vrot.lane.b32.xlu0 %v3262_v56, %s2827_s15 }
 0x1e1   : > { %v1221_v20 = vpop.permute.xlu1 %1220 }
 0x1e2   : > { %2314 = vst.msk [vmem:[%s3103_s23 + $0x84] sm:$0xf] %vm934_vm0, %v1221_v20  ;;  %v1284_v21 = vpop.permute.xlu0 %1283 }
 0x1e3   : > { %2329 = vst.msk [vmem:[%s3093_s21 + $0xc0] sm:$0xf] %vm934_vm0, %v1284_v21  ;;  %1183 = vrot.lane.b32.xlu1 %v3284_v2, %s2828_s14 }
 0x1e4   : > { %1181 = vrot.lane.b32.xlu0 %v3256_v51, %s2828_s14 }
 0x1e5   : > { %v1286_v22 = vpop.permute.xlu1 %1285 }
 0x1e6   : > { %2330 = vst.msk [vmem:[%s3093_s21 + $0xc4] sm:$0xf] %vm934_vm0, %v1286_v22  ;;  %v1349_v23 = vpop.permute.xlu0 %1348 }
 0x1e7   : > { %2345 = vst.msk [vmem:[%s3103_s23 + $0xc0] sm:$0xf] %vm934_vm0, %v1349_v23  ;;  %1248 = vrot.lane.b32.xlu1 %v3290_v7, %s2828_s14 }
 0x1e8   : > { %1246 = vrot.lane.b32.xlu0 %v3262_v56, %s2828_s14 }
 0x1e9   : > { %v1351_v24 = vpop.permute.xlu1 %1350 }
 0x1ea   : > { %2346 = vst.msk [vmem:[%s3103_s23 + $0xc4] sm:$0xf] %vm934_vm0, %v1351_v24  ;;  %v1026_v25 = vpop.permute.xlu0 %1025 }
 0x1eb   : > { %2266 = vst.msk [vmem:[%s3093_s21 + $0x44] sm:$0xf] %vm934_vm0, %v1026_v25  ;;  %1313 = vrot.lane.b32.xlu1 %v3284_v2, %s2829_s12 }
 0x1ec   : > { %1311 = vrot.lane.b32.xlu0 %v3256_v51, %s2829_s12 }
 0x1ed   : > { %v1038_v26 = vpop.permute.xlu1 %1037 }
 0x1ee   : > { %2272 = vst.msk [vmem:[%s3093_s21 + $0x5c] sm:$0xf] %vm934_vm0, %v1038_v26  ;;  %v1036_v27 = vpop.permute.xlu0 %1035 }
 0x1ef   : > { %2271 = vst.msk [vmem:[%s3093_s21 + $0x58] sm:$0xf] %vm934_vm0, %v1036_v27  ;;  %1049 = vrot.lane.b32.xlu1 %v3298_v10, %s2827_s15 }
 0x1f0   : > { %1047 = vrot.lane.b32.xlu0 %v3270_v59, %s2827_s15 }
 0x1f1   : > { %v1103_v28 = vpop.permute.xlu1 %1102 }
 0x1f2   : > { %2288 = vst.msk [vmem:[%s3103_s23 + $0x5c] sm:$0xf] %vm934_vm0, %v1103_v28  ;;  %v1101_v29 = vpop.permute.xlu0 %1100 }
 0x1f3   : > { %2287 = vst.msk [vmem:[%s3103_s23 + $0x58] sm:$0xf] %vm934_vm0, %v1101_v29  ;;  %1114 = vrot.lane.b32.xlu1 %v3305_v32, %s2827_s15 }
 0x1f4   : > { %1112 = vrot.lane.b32.xlu0 %v3278_v1, %s2827_s15 }
 0x1f5   : > { %v1168_v30 = vpop.permute.xlu1 %1167 }
 0x1f6   : > { %2304 = vst.msk [vmem:[%s3093_s21 + $0x9c] sm:$0xf] %vm934_vm0, %v1168_v30  ;;  %v1166_v31 = vpop.permute.xlu0 %1165 }
 0x1f7   : > { %2303 = vst.msk [vmem:[%s3093_s21 + $0x98] sm:$0xf] %vm934_vm0, %v1166_v31  ;;  %1179 = vrot.lane.b32.xlu1 %v3298_v10, %s2828_s14 }
 0x1f8   : > { %1177 = vrot.lane.b32.xlu0 %v3270_v59, %s2828_s14 }
 0x1f9   : > { %v1233_v34 = vpop.permute.xlu1 %1232 }
 0x1fa   : > { %2320 = vst.msk [vmem:[%s3103_s23 + $0x9c] sm:$0xf] %vm934_vm0, %v1233_v34  ;;  %v1231_v35 = vpop.permute.xlu0 %1230 }
 0x1fb   : > { %2319 = vst.msk [vmem:[%s3103_s23 + $0x98] sm:$0xf] %vm934_vm0, %v1231_v35  ;;  %1244 = vrot.lane.b32.xlu1 %v3305_v32, %s2828_s14 }
 0x1fc   : > { %1242 = vrot.lane.b32.xlu0 %v3278_v1, %s2828_s14 }
 0x1fd   : > { %v1298_v36 = vpop.permute.xlu1 %1297 }
 0x1fe   : > { %2336 = vst.msk [vmem:[%s3093_s21 + $0xdc] sm:$0xf] %vm934_vm0, %v1298_v36  ;;  %v1296_v37 = vpop.permute.xlu0 %1295  ;;  %v1445_v36 = vld [vmem:[%s3093_s21] sm:$0xff] (%p2971_p11)  }
 0x1ff   : > { %2335 = vst.msk [vmem:[%s3093_s21 + $0xd8] sm:$0xf] %vm934_vm0, %v1296_v37  ;;  %1309 = vrot.lane.b32.xlu1 %v3298_v10, %s2829_s12  ;;  %v1449_v37 = vld [vmem:[%s3093_s21 + $0x8] sm:$0xff] (%p2971_p11)   ;;  %1446 = vst [vmem:[%s3681_s11] sm:$0xff] (%p2971_p11), %v1445_v36  }
 0x200   : > { %1307 = vrot.lane.b32.xlu0 %v3270_v59, %s2829_s12  ;;  %1450 = vst [vmem:[%s3681_s11 + $0x8] sm:$0xff] (%p2971_p11), %v1449_v37  }
 0x201   : > { %v1363_v38 = vpop.permute.xlu1 %1362 }
 0x202   : > { %2352 = vst.msk [vmem:[%s3103_s23 + $0xdc] sm:$0xf] %vm934_vm0, %v1363_v38  ;;  %v1361_v39 = vpop.permute.xlu0 %1360  ;;  %v1453_v38 = vld [vmem:[%s3093_s21 + $0x10] sm:$0xff] (%p2971_p11)  }
 0x203   : > { %2351 = vst.msk [vmem:[%s3103_s23 + $0xd8] sm:$0xf] %vm934_vm0, %v1361_v39  ;;  %1374 = vrot.lane.b32.xlu1 %v3305_v32, %s2829_s12  ;;  %v1457_v39 = vld [vmem:[%s3093_s21 + $0x18] sm:$0xff] (%p2971_p11)   ;;  %1454 = vst [vmem:[%s3681_s11 + $0x10] sm:$0xff] (%p2971_p11), %v1453_v38  }
 0x204   : > { %1372 = vrot.lane.b32.xlu0 %v3278_v1, %s2829_s12  ;;  %1458 = vst [vmem:[%s3681_s11 + $0x18] sm:$0xff] (%p2971_p11), %v1457_v39  }
 0x205   : > { %v1034_v40 = vpop.permute.xlu1 %1033 }
 0x206   : > { %2270 = vst.msk [vmem:[%s3093_s21 + $0x54] sm:$0xf] %vm934_vm0, %v1034_v40  ;;  %v1032_v41 = vpop.permute.xlu0 %1031  ;;  %v1461_v40 = vld [vmem:[%s3093_s21 + $0x20] sm:$0xff] (%p2971_p11)  }
 0x207   : > { %2269 = vst.msk [vmem:[%s3093_s21 + $0x50] sm:$0xf] %vm934_vm0, %v1032_v41  ;;  %1378 = vrot.lane.b32.xlu1 %v3290_v7, %s2829_s12  ;;  %v1465_v41 = vld [vmem:[%s3093_s21 + $0x28] sm:$0xff] (%p2971_p11)   ;;  %1462 = vst [vmem:[%s3681_s11 + $0x20] sm:$0xff] (%p2971_p11), %v1461_v40  }
 0x208   : > { %1376 = vrot.lane.b32.xlu0 %v3262_v56, %s2829_s12  ;;  %1466 = vst [vmem:[%s3681_s11 + $0x28] sm:$0xff] (%p2971_p11), %v1465_v41  }
 0x209   : > { %v1099_v42 = vpop.permute.xlu1 %1098 }
 0x20a   : > { %2286 = vst.msk [vmem:[%s3103_s23 + $0x54] sm:$0xf] %vm934_vm0, %v1099_v42  ;;  %v1097_v43 = vpop.permute.xlu0 %1096  ;;  %v1469_v42 = vld [vmem:[%s3093_s21 + $0x30] sm:$0xff] (%p2971_p11)  }
 0x20b   : > { %2285 = vst.msk [vmem:[%s3103_s23 + $0x50] sm:$0xf] %vm934_vm0, %v1097_v43  ;;  %v1473_v43 = vld [vmem:[%s3093_s21 + $0x38] sm:$0xff] (%p2971_p11)   ;;  %1470 = vst [vmem:[%s3681_s11 + $0x30] sm:$0xff] (%p2971_p11), %v1469_v42  }
 0x20c   : > { %1474 = vst [vmem:[%s3681_s11 + $0x38] sm:$0xff] (%p2971_p11), %v1473_v43  }
 0x20d   : > { %v1164_v44 = vpop.permute.xlu1 %1163 }
 0x20e   : > { %2302 = vst.msk [vmem:[%s3093_s21 + $0x94] sm:$0xf] %vm934_vm0, %v1164_v44  ;;  %v1162_v46 = vpop.permute.xlu0 %1161  ;;  %v1477_v44 = vld [vmem:[%s3093_s21 + $0x40] sm:$0xff] (%p2971_p11)  }
 0x20f   : > { %2301 = vst.msk [vmem:[%s3093_s21 + $0x90] sm:$0xf] %vm934_vm0, %v1162_v46  ;;  %v1481_v46 = vld [vmem:[%s3093_s21 + $0x48] sm:$0xff] (%p2971_p11)   ;;  %1478 = vst [vmem:[%s3681_s11 + $0x80] sm:$0xff] (%p2971_p11), %v1477_v44  }
 0x210   : > { %1482 = vst [vmem:[%s3681_s11 + $0x88] sm:$0xff] (%p2971_p11), %v1481_v46  }
 0x211   : > { %v1229_v47 = vpop.permute.xlu1 %1228 }
 0x212   : > { %2318 = vst.msk [vmem:[%s3103_s23 + $0x94] sm:$0xf] %vm934_vm0, %v1229_v47  ;;  %v1227_v49 = vpop.permute.xlu0 %1226  ;;  %v1485_v47 = vld [vmem:[%s3093_s21 + $0x50] sm:$0xff] (%p2971_p11)  }
 0x213   : > { %2317 = vst.msk [vmem:[%s3103_s23 + $0x90] sm:$0xf] %vm934_vm0, %v1227_v49  ;;  %v1489_v49 = vld [vmem:[%s3093_s21 + $0x58] sm:$0xff] (%p2971_p11)   ;;  %1486 = vst [vmem:[%s3681_s11 + $0x90] sm:$0xff] (%p2971_p11), %v1485_v47  }
 0x214   : > { %1490 = vst [vmem:[%s3681_s11 + $0x98] sm:$0xff] (%p2971_p11), %v1489_v49  }
 0x215   : > { %v1294_v50 = vpop.permute.xlu1 %1293 }
 0x216   : > { %2334 = vst.msk [vmem:[%s3093_s21 + $0xd4] sm:$0xf] %vm934_vm0, %v1294_v50  ;;  %v1292_v51 = vpop.permute.xlu0 %1291 }
 0x217   : > { %2333 = vst.msk [vmem:[%s3093_s21 + $0xd0] sm:$0xf] %vm934_vm0, %v1292_v51 }
 0x219   : > { %v1359_v52 = vpop.permute.xlu1 %1358 }
 0x21a   : > { %2350 = vst.msk [vmem:[%s3103_s23 + $0xd4] sm:$0xf] %vm934_vm0, %v1359_v52  ;;  %v1357_v53 = vpop.permute.xlu0 %1356 }
 0x21b   : > { %2349 = vst.msk [vmem:[%s3103_s23 + $0xd0] sm:$0xf] %vm934_vm0, %v1357_v53 }
 0x21d   : > { %v1046_v55 = vpop.permute.xlu1 %1045 }
 0x21e   : > { %2276 = vst.msk [vmem:[%s3093_s21 + $0x6c] sm:$0xf] %vm934_vm0, %v1046_v55  ;;  %v1044_v56 = vpop.permute.xlu0 %1043  ;;  %v1509_v55 = vld [vmem:[%s3093_s21 + $0x80] sm:$0xff] (%p2971_p11)  }
 0x21f   : > { %2275 = vst.msk [vmem:[%s3093_s21 + $0x68] sm:$0xf] %vm934_vm0, %v1044_v56  ;;  %v1513_v56 = vld [vmem:[%s3093_s21 + $0x88] sm:$0xff] (%p2971_p11)   ;;  %1510 = vst [vmem:[%s3681_s11 + $0x100] sm:$0xff] (%p2971_p11), %v1509_v55  }
 0x220   : > { %1514 = vst [vmem:[%s3681_s11 + $0x108] sm:$0xff] (%p2971_p11), %v1513_v56  }
 0x221   : > { %v1111_v58 = vpop.permute.xlu1 %1110 }
 0x222   : > { %2292 = vst.msk [vmem:[%s3103_s23 + $0x6c] sm:$0xf] %vm934_vm0, %v1111_v58  ;;  %v1109_v59 = vpop.permute.xlu0 %1108  ;;  %v1517_v58 = vld [vmem:[%s3093_s21 + $0x90] sm:$0xff] (%p2971_p11)  }
 0x223   : > { %2291 = vst.msk [vmem:[%s3103_s23 + $0x68] sm:$0xf] %vm934_vm0, %v1109_v59  ;;  %v1521_v59 = vld [vmem:[%s3093_s21 + $0x98] sm:$0xff] (%p2971_p11)   ;;  %1518 = vst [vmem:[%s3681_s11 + $0x110] sm:$0xff] (%p2971_p11), %v1517_v58  }
 0x224   : > { %1522 = vst [vmem:[%s3681_s11 + $0x118] sm:$0xff] (%p2971_p11), %v1521_v59  }
 0x225   : > { %v1176_v61 = vpop.permute.xlu1 %1175 }
 0x226   : > { %2308 = vst.msk [vmem:[%s3093_s21 + $0xac] sm:$0xf] %vm934_vm0, %v1176_v61  ;;  %v1174_v62 = vpop.permute.xlu0 %1173  ;;  %v1497_v51 = vld [vmem:[%s3093_s21 + $0x68] sm:$0xff] (%p2971_p11)  }
 0x227   : > { %2307 = vst.msk [vmem:[%s3093_s21 + $0xa8] sm:$0xf] %vm934_vm0, %v1174_v62  ;;  %1498 = vst [vmem:[%s3681_s11 + $0xa8] sm:$0xff] (%p2971_p11), %v1497_v51  }
 0x229   : > { %v1241_v0 = vpop.permute.xlu1 %1240 }
 0x22a   : > { %2324 = vst.msk [vmem:[%s3103_s23 + $0xac] sm:$0xf] %vm934_vm0, %v1241_v0  ;;  %v1239_v1 = vpop.permute.xlu0 %1238 }
 0x22b   : > { %2323 = vst.msk [vmem:[%s3103_s23 + $0xa8] sm:$0xf] %vm934_vm0, %v1239_v1 }
 0x22d   : > { %v1306_v54 = vpop.permute.xlu1 %1305 }
 0x22e   : > { %2340 = vst.msk [vmem:[%s3093_s21 + $0xec] sm:$0xf] %vm934_vm0, %v1306_v54  ;;  %v1304_v2 = vpop.permute.xlu0 %1303  ;;  %v1529_v62 = vld [vmem:[%s3093_s21 + $0xa8] sm:$0xff] (%p2971_p11)   ;;  %v1541_v54 = vld [vmem:[%s3093_s21 + $0xc0] sm:$0xff] (%p2971_p11)  }
 0x22f   : > { %2339 = vst.msk [vmem:[%s3093_s21 + $0xe8] sm:$0xf] %vm934_vm0, %v1304_v2  ;;  %1530 = vst [vmem:[%s3681_s11 + $0x128] sm:$0xff] (%p2971_p11), %v1529_v62   ;;  %v1545_v2 = vld [vmem:[%s3093_s21 + $0xc8] sm:$0xff] (%p2971_p11)  }
 0x230   : > { %1542 = vst [vmem:[%s3681_s11 + $0x180] sm:$0xff] (%p2971_p11), %v1541_v54   ;;  %1546 = vst [vmem:[%s3681_s11 + $0x188] sm:$0xff] (%p2971_p11), %v1545_v2  }
 0x231   : > { %v1371_v4 = vpop.permute.xlu1 %1370 }
 0x232   : > { %2356 = vst.msk [vmem:[%s3103_s23 + $0xec] sm:$0xf] %vm934_vm0, %v1371_v4  ;;  %v1369_v6 = vpop.permute.xlu0 %1368  ;;  %v1549_v4 = vld [vmem:[%s3093_s21 + $0xd0] sm:$0xff] (%p2971_p11)  }
 0x233   : > { %2355 = vst.msk [vmem:[%s3103_s23 + $0xe8] sm:$0xf] %vm934_vm0, %v1369_v6  ;;  %1550 = vst [vmem:[%s3681_s11 + $0x190] sm:$0xff] (%p2971_p11), %v1549_v4   ;;  %v1553_v6 = vld [vmem:[%s3093_s21 + $0xd8] sm:$0xff] (%p2971_p11)  }
 0x234   : > { %1554 = vst [vmem:[%s3681_s11 + $0x198] sm:$0xff] (%p2971_p11), %v1553_v6  }
 0x235   : > { %v1042_v7 = vpop.permute.xlu1 %1041 }
 0x236   : > { %2274 = vst.msk [vmem:[%s3093_s21 + $0x64] sm:$0xf] %vm934_vm0, %v1042_v7  ;;  %v1040_v8 = vpop.permute.xlu0 %1039 }
 0x237   : > { %2273 = vst.msk [vmem:[%s3093_s21 + $0x60] sm:$0xf] %vm934_vm0, %v1040_v8  ;;  %v1561_v8 = vld [vmem:[%s3093_s21 + $0xe8] sm:$0xff] (%p2971_p11)  }
 0x238   : > { %1562 = vst [vmem:[%s3681_s11 + $0x1a8] sm:$0xff] (%p2971_p11), %v1561_v8  }
 0x239   : > { %v1107_v10 = vpop.permute.xlu1 %1106 }
 0x23a   : > { %2290 = vst.msk [vmem:[%s3103_s23 + $0x64] sm:$0xf] %vm934_vm0, %v1107_v10  ;;  %v1105_v32 = vpop.permute.xlu0 %1104 }
 0x23b   : > { %2289 = vst.msk [vmem:[%s3103_s23 + $0x60] sm:$0xf] %vm934_vm0, %v1105_v32 }
 0x23d   : > { %v1172_v33 = vpop.permute.xlu1 %1171 }
 0x23e   : > { %2306 = vst.msk [vmem:[%s3093_s21 + $0xa4] sm:$0xf] %vm934_vm0, %v1172_v33  ;;  %v1170_v45 = vpop.permute.xlu0 %1169  ;;  %v1493_v50 = vld [vmem:[%s3093_s21 + $0x60] sm:$0xff] (%p2971_p11)  }
 0x23f   : > { %2305 = vst.msk [vmem:[%s3093_s21 + $0xa0] sm:$0xf] %vm934_vm0, %v1170_v45  ;;  %1494 = vst [vmem:[%s3681_s11 + $0xa0] sm:$0xff] (%p2971_p11), %v1493_v50  }
 0x241   : > { %v1237_v48 = vpop.permute.xlu1 %1236 }
 0x242   : > { %2322 = vst.msk [vmem:[%s3103_s23 + $0xa4] sm:$0xf] %vm934_vm0, %v1237_v48  ;;  %v1235_v57 = vpop.permute.xlu0 %1234 }
 0x243   : > { %2321 = vst.msk [vmem:[%s3103_s23 + $0xa0] sm:$0xf] %vm934_vm0, %v1235_v57 }
 0x245   : > { %v1302_v60 = vpop.permute.xlu1 %1301 }
 0x246   : > { %2338 = vst.msk [vmem:[%s3093_s21 + $0xe4] sm:$0xf] %vm934_vm0, %v1302_v60  ;;  %v1300_v63 = vpop.permute.xlu0 %1299  ;;  %v1525_v61 = vld [vmem:[%s3093_s21 + $0xa0] sm:$0xff] (%p2971_p11)  }
 0x247   : > { %2337 = vst.msk [vmem:[%s3093_s21 + $0xe0] sm:$0xf] %vm934_vm0, %v1300_v63  ;;  %1526 = vst [vmem:[%s3681_s11 + $0x120] sm:$0xff] (%p2971_p11), %v1525_v61  }
 0x249   : > { %v1367_v3 = vpop.permute.xlu1 %1366 }
 0x24a   : > { %2354 = vst.msk [vmem:[%s3103_s23 + $0xe4] sm:$0xf] %vm934_vm0, %v1367_v3  ;;  %v1365_v5 = vpop.permute.xlu0 %1364 }
 0x24b   : > { %2353 = vst.msk [vmem:[%s3103_s23 + $0xe0] sm:$0xf] %vm934_vm0, %v1365_v5 }
 0x24d   : > { %v1054_v9 = vpop.permute.xlu1 %1053 }
 0x24e   : > { %2280 = vst.msk [vmem:[%s3093_s21 + $0x7c] sm:$0xf] %vm934_vm0, %v1054_v9  ;;  %v1052_v11 = vpop.permute.xlu0 %1051  ;;  %v1557_v7 = vld [vmem:[%s3093_s21 + $0xe0] sm:$0xff] (%p2971_p11)  }
 0x24f   : > { %2279 = vst.msk [vmem:[%s3093_s21 + $0x78] sm:$0xf] %vm934_vm0, %v1052_v11  ;;  %1558 = vst [vmem:[%s3681_s11 + $0x1a0] sm:$0xff] (%p2971_p11), %v1557_v7  }
 0x251   : > { %v1119_v12 = vpop.permute.xlu1 %1118 }
 0x252   : > { %2296 = vst.msk [vmem:[%s3103_s23 + $0x7c] sm:$0xf] %vm934_vm0, %v1119_v12  ;;  %v1117_v13 = vpop.permute.xlu0 %1116 }
 0x253   : > { %2295 = vst.msk [vmem:[%s3103_s23 + $0x78] sm:$0xf] %vm934_vm0, %v1117_v13 }
 0x255   : > { %v1184_v14 = vpop.permute.xlu1 %1183 }
 0x256   : > { %2312 = vst.msk [vmem:[%s3093_s21 + $0xbc] sm:$0xf] %vm934_vm0, %v1184_v14  ;;  %v1182_v15 = vpop.permute.xlu0 %1181  ;;  %v1505_v53 = vld [vmem:[%s3093_s21 + $0x78] sm:$0xff] (%p2971_p11)  }
 0x257   : > { %2311 = vst.msk [vmem:[%s3093_s21 + $0xb8] sm:$0xf] %vm934_vm0, %v1182_v15  ;;  %1506 = vst [vmem:[%s3681_s11 + $0xb8] sm:$0xff] (%p2971_p11), %v1505_v53  }
 0x259   : > { %v1249_v16 = vpop.permute.xlu1 %1248 }
 0x25a   : > { %2328 = vst.msk [vmem:[%s3103_s23 + $0xbc] sm:$0xf] %vm934_vm0, %v1249_v16  ;;  %v1247_v17 = vpop.permute.xlu0 %1246 }
 0x25b   : > { %2327 = vst.msk [vmem:[%s3103_s23 + $0xb8] sm:$0xf] %vm934_vm0, %v1247_v17 }
 0x25d   : > { %v1314_v18 = vpop.permute.xlu1 %1313 }
 0x25e   : > { %2344 = vst.msk [vmem:[%s3093_s21 + $0xfc] sm:$0xf] %vm934_vm0, %v1314_v18  ;;  %v1312_v19 = vpop.permute.xlu0 %1311  ;;  %v1537_v1 = vld [vmem:[%s3093_s21 + $0xb8] sm:$0xff] (%p2971_p11)  }
 0x25f   : > { %2343 = vst.msk [vmem:[%s3093_s21 + $0xf8] sm:$0xf] %vm934_vm0, %v1312_v19  ;;  %1538 = vst [vmem:[%s3681_s11 + $0x138] sm:$0xff] (%p2971_p11), %v1537_v1  }
 0x261   : > { %v1050_v20 = vpop.permute.xlu1 %1049 }
 0x262   : > { %2278 = vst.msk [vmem:[%s3093_s21 + $0x74] sm:$0xf] %vm934_vm0, %v1050_v20  ;;  %v1048_v21 = vpop.permute.xlu0 %1047 }
 0x263   : > { %2277 = vst.msk [vmem:[%s3093_s21 + $0x70] sm:$0xf] %vm934_vm0, %v1048_v21 }
 0x265   : > { %v1115_v22 = vpop.permute.xlu1 %1114 }
 0x266   : > { %2294 = vst.msk [vmem:[%s3103_s23 + $0x74] sm:$0xf] %vm934_vm0, %v1115_v22  ;;  %v1113_v23 = vpop.permute.xlu0 %1112  ;;  %v1569_v32 = vld [vmem:[%s3093_s21 + $0xf8] sm:$0xff] (%p2971_p11)  }
 0x267   : > { %2293 = vst.msk [vmem:[%s3103_s23 + $0x70] sm:$0xf] %vm934_vm0, %v1113_v23  ;;  %1570 = vst [vmem:[%s3681_s11 + $0x1b8] sm:$0xff] (%p2971_p11), %v1569_v32  }
 0x269   : > { %v1180_v24 = vpop.permute.xlu1 %1179 }
 0x26a   : > { %2310 = vst.msk [vmem:[%s3093_s21 + $0xb4] sm:$0xf] %vm934_vm0, %v1180_v24  ;;  %v1178_v25 = vpop.permute.xlu0 %1177  ;;  %v1501_v52 = vld [vmem:[%s3093_s21 + $0x70] sm:$0xff] (%p2971_p11)  }
 0x26b   : > { %2309 = vst.msk [vmem:[%s3093_s21 + $0xb0] sm:$0xf] %vm934_vm0, %v1178_v25  ;;  %1502 = vst [vmem:[%s3681_s11 + $0xb0] sm:$0xff] (%p2971_p11), %v1501_v52  }
 0x26d   : > { %v1245_v26 = vpop.permute.xlu1 %1244 }
 0x26e   : > { %2326 = vst.msk [vmem:[%s3103_s23 + $0xb4] sm:$0xf] %vm934_vm0, %v1245_v26  ;;  %v1243_v27 = vpop.permute.xlu0 %1242 }
 0x26f   : > { %2325 = vst.msk [vmem:[%s3103_s23 + $0xb0] sm:$0xf] %vm934_vm0, %v1243_v27 }
 0x271   : > { %v1310_v28 = vpop.permute.xlu1 %1309 }
 0x272   : > { %2342 = vst.msk [vmem:[%s3093_s21 + $0xf4] sm:$0xf] %vm934_vm0, %v1310_v28  ;;  %v1308_v29 = vpop.permute.xlu0 %1307  ;;  %v1533_v0 = vld [vmem:[%s3093_s21 + $0xb0] sm:$0xff] (%p2971_p11)  }
 0x273   : > { %2341 = vst.msk [vmem:[%s3093_s21 + $0xf0] sm:$0xf] %vm934_vm0, %v1308_v29  ;;  %1534 = vst [vmem:[%s3681_s11 + $0x130] sm:$0xff] (%p2971_p11), %v1533_v0  }
 0x275   : > { %v1375_v30 = vpop.permute.xlu1 %1374 }
 0x276   : > { %2358 = vst.msk [vmem:[%s3103_s23 + $0xf4] sm:$0xf] %vm934_vm0, %v1375_v30  ;;  %v1373_v31 = vpop.permute.xlu0 %1372 }
 0x277   : > { %2357 = vst.msk [vmem:[%s3103_s23 + $0xf0] sm:$0xf] %vm934_vm0, %v1373_v31  ;;  %1423 = sbr.rel (!%p2971_p11) target bundleno = 636 (0x27c), region = 64 }
 0x279   : > { %v1379_v34 = vpop.permute.xlu1 %1378 }
 0x27a   : > { %2360 = vst.msk [vmem:[%s3103_s23 + $0xfc] sm:$0xf] %vm934_vm0, %v1379_v34  ;;  %v1377_v35 = vpop.permute.xlu0 %1376  ;;  %v1565_v10 = vld [vmem:[%s3093_s21 + $0xf0] sm:$0xff] (%p2971_p11)  }
 0x27b   : > { %2359 = vst.msk [vmem:[%s3103_s23 + $0xf8] sm:$0xf] %vm934_vm0, %v1377_v35  ;;  %1566 = vst [vmem:[%s3681_s11 + $0x1b0] sm:$0xff] (%p2971_p11), %v1565_v10  }
 0x27c PF: > { %1724 = sbr.rel (!%p2971_p11) target bundleno = 660 (0x294), region = 105  ;;  %s2366_s19 = sshll.u32 (%p2971_p11), %s2803_s27, 4  ;;  %v1746_v33 = vld [vmem:[%s3103_s23] sm:$0xff] (%p2971_p11)   ;;  %v1750_v45 = vld [vmem:[%s3103_s23 + $0x8] sm:$0xff] (%p2971_p11)   ;;  %v1754_v48 = vld [vmem:[%s3103_s23 + $0x10] sm:$0xff] (%p2971_p11)  }
 0x27d   : > { %s2367_s9 = sshll.u32 (%p2971_p11), %s2807_s28, 7  ;;  %v1758_v57 = vld [vmem:[%s3103_s23 + $0x18] sm:$0xff] (%p2971_p11)   ;;  %v1762_v60 = vld [vmem:[%s3103_s23 + $0x20] sm:$0xff] (%p2971_p11)   ;;  %v1766_v63 = vld [vmem:[%s3103_s23 + $0x28] sm:$0xff] (%p2971_p11)   ;;  %s3868_s20 = sld [smem:[#allocation21_spill]] (%p2971_p11) }
 0x27e   : > { %s1727_s17 = sadd.s32 (%p2971_p11), %s2367_s9, %s2366_s19  ;;  %v1770_v3 = vld [vmem:[%s3103_s23 + $0x30] sm:$0xff] (%p2971_p11)   ;;  %v1774_v5 = vld [vmem:[%s3103_s23 + $0x38] sm:$0xff] (%p2971_p11)   ;;  %v1778_v9 = vld [vmem:[%s3103_s23 + $0x40] sm:$0xff] (%p2971_p11)  }
 0x27f   : > { %s2368_s10 = sshll.u32 (%p2971_p11), %s1727_s17, 2  ;;  %v1782_v11 = vld [vmem:[%s3103_s23 + $0x48] sm:$0xff] (%p2971_p11)   ;;  %v1786_v12 = vld [vmem:[%s3103_s23 + $0x50] sm:$0xff] (%p2971_p11)   ;;  %v1790_v13 = vld [vmem:[%s3103_s23 + $0x58] sm:$0xff] (%p2971_p11)  }
 0x280   : > { %v1794_v14 = vld [vmem:[%s3103_s23 + $0x60] sm:$0xff] (%p2971_p11)   ;;  %v1798_v15 = vld [vmem:[%s3103_s23 + $0x68] sm:$0xff] (%p2971_p11)   ;;  %v1802_v16 = vld [vmem:[%s3103_s23 + $0x70] sm:$0xff] (%p2971_p11)  }
 0x281   : > { %v1806_v17 = vld [vmem:[%s3103_s23 + $0x78] sm:$0xff]   ;;  %v1810_v18 = vld [vmem:[%s3103_s23 + $0x80] sm:$0xff]   ;;  %v1814_v19 = vld [vmem:[%s3103_s23 + $0x88] sm:$0xff]  }
 0x282   : > { %v1818_v20 = vld [vmem:[%s3103_s23 + $0x90] sm:$0xff]   ;;  %v1822_v21 = vld [vmem:[%s3103_s23 + $0x98] sm:$0xff]   ;;  %v1826_v22 = vld [vmem:[%s3103_s23 + $0xa0] sm:$0xff]  }
 0x283   : > { %s3754_s21 = scalar_lea.vmem %s3868_s20, %s2368_s10  ;;  %v1830_v23 = vld [vmem:[%s3103_s23 + $0xa8] sm:$0xff]   ;;  %v1834_v24 = vld [vmem:[%s3103_s23 + $0xb0] sm:$0xff]   ;;  %v1838_v25 = vld [vmem:[%s3103_s23 + $0xb8] sm:$0xff]  }
 0x284   : > { %1747 = vst [vmem:[%s3754_s21] sm:$0xff] %v1746_v33   ;;  %1751 = vst [vmem:[%s3754_s21 + $0x8] sm:$0xff] %v1750_v45   ;;  %v1842_v26 = vld [vmem:[%s3103_s23 + $0xc0] sm:$0xff]   ;;  %v1846_v27 = vld [vmem:[%s3103_s23 + $0xc8] sm:$0xff]  }
 0x285   : > { %1755 = vst [vmem:[%s3754_s21 + $0x10] sm:$0xff] %v1754_v48   ;;  %1759 = vst [vmem:[%s3754_s21 + $0x18] sm:$0xff] %v1758_v57   ;;  %v1850_v28 = vld [vmem:[%s3103_s23 + $0xd0] sm:$0xff]   ;;  %v1854_v29 = vld [vmem:[%s3103_s23 + $0xd8] sm:$0xff]  }
 0x286   : > { %1763 = vst [vmem:[%s3754_s21 + $0x20] sm:$0xff] %v1762_v60   ;;  %1767 = vst [vmem:[%s3754_s21 + $0x28] sm:$0xff] %v1766_v63   ;;  %v1858_v30 = vld [vmem:[%s3103_s23 + $0xe0] sm:$0xff]   ;;  %v1862_v31 = vld [vmem:[%s3103_s23 + $0xe8] sm:$0xff]  }
 0x287   : > { %1771 = vst [vmem:[%s3754_s21 + $0x30] sm:$0xff] %v1770_v3   ;;  %1775 = vst [vmem:[%s3754_s21 + $0x38] sm:$0xff] %v1774_v5   ;;  %v1866_v34 = vld [vmem:[%s3103_s23 + $0xf0] sm:$0xff]   ;;  %v1870_v35 = vld [vmem:[%s3103_s23 + $0xf8] sm:$0xff]  }
 0x288   : > { %1779 = vst [vmem:[%s3754_s21 + $0x80] sm:$0xff] %v1778_v9   ;;  %1783 = vst [vmem:[%s3754_s21 + $0x88] sm:$0xff] %v1782_v11  }
 0x289   : > { %1787 = vst [vmem:[%s3754_s21 + $0x90] sm:$0xff] %v1786_v12   ;;  %1791 = vst [vmem:[%s3754_s21 + $0x98] sm:$0xff] %v1790_v13  }
 0x28a   : > { %1795 = vst [vmem:[%s3754_s21 + $0xa0] sm:$0xff] %v1794_v14   ;;  %1799 = vst [vmem:[%s3754_s21 + $0xa8] sm:$0xff] %v1798_v15  }
 0x28b   : > { %1803 = vst [vmem:[%s3754_s21 + $0xb0] sm:$0xff] %v1802_v16   ;;  %1807 = vst [vmem:[%s3754_s21 + $0xb8] sm:$0xff] %v1806_v17  }
 0x28c   : > { %1811 = vst [vmem:[%s3754_s21 + $0x100] sm:$0xff] %v1810_v18   ;;  %1815 = vst [vmem:[%s3754_s21 + $0x108] sm:$0xff] %v1814_v19  }
 0x28d   : > { %1819 = vst [vmem:[%s3754_s21 + $0x110] sm:$0xff] %v1818_v20   ;;  %1823 = vst [vmem:[%s3754_s21 + $0x118] sm:$0xff] %v1822_v21  }
 0x28e   : > { %1827 = vst [vmem:[%s3754_s21 + $0x120] sm:$0xff] %v1826_v22   ;;  %1831 = vst [vmem:[%s3754_s21 + $0x128] sm:$0xff] %v1830_v23  }
 0x28f   : > { %1835 = vst [vmem:[%s3754_s21 + $0x130] sm:$0xff] %v1834_v24   ;;  %1839 = vst [vmem:[%s3754_s21 + $0x138] sm:$0xff] %v1838_v25  }
 0x290   : > { %1843 = vst [vmem:[%s3754_s21 + $0x180] sm:$0xff] %v1842_v26   ;;  %1847 = vst [vmem:[%s3754_s21 + $0x188] sm:$0xff] %v1846_v27  }
 0x291   : > { %1851 = vst [vmem:[%s3754_s21 + $0x190] sm:$0xff] %v1850_v28   ;;  %1855 = vst [vmem:[%s3754_s21 + $0x198] sm:$0xff] %v1854_v29  }
 0x292   : > { %1859 = vst [vmem:[%s3754_s21 + $0x1a0] sm:$0xff] %v1858_v30   ;;  %1863 = vst [vmem:[%s3754_s21 + $0x1a8] sm:$0xff] %v1862_v31  }
 0x293   : > { %1867 = vst [vmem:[%s3754_s21 + $0x1b0] sm:$0xff] %v1866_v34   ;;  %1871 = vst [vmem:[%s3754_s21 + $0x1b8] sm:$0xff] %v1870_v35  }
 0x294 PF: > { %s25_s8 = sadd.s32 1, %s2819_s8   ;;  %s3869_s28 = sld [smem:[#allocation15_spill]] }
 0x295   : > { %p22_p1 = scmp.ge.s32.totalorder %s25_s8, 6   ;;  %s3870_s15 = sld [smem:[#allocation16_spill]] }
 0x296   : > { %s3871_s30 = sld [smem:[#allocation17_spill]]  ;;  %s3872_s24 = smov %s2795_s25 }
 0x297   : > { %s3873_s25 = smov %s2799_s26  ;;  %s3874_s26 = smov %s2991_s4 }
 0x298   : > { %s3875_s27 = smov %s2811_s29  ;;  %24 = sbr.rel (!%p22_p1) target bundleno = 13 (0xd), region = 205 }
 0x29b   : > { %s3876_s29 = smov %s3870_s15 }
 0x29d   :  { %2042 = vsyncpa [#allocation3], 1 }
 0x29e   :  { %2044 = vsyncpa [#allocation3 + $0x1], 1 }
 0x29f   :  { %2045 = vsyncpa [#allocation5], 1 }
 0x2a0   :  { %2047 = vsyncpa [#allocation5 + $0x1], 1 }
 0x2a1   :  { %2048 = vsyncpa [#allocation8], 1 }

// kernel: tpu_custom_call.1
= control target key start
LH: loop header
LB: loop body
LE: loop exit
PB: predicated region body
PF: predicated region fallthrough
CT: control target
= control target key end

     0   :  { %s3835_s0 = inlined_call_operand.hbm [shape: bf16[2,256,128], index: 0, kind: input, shape index: {}]   ;;  %s3836_s1 = inlined_call_operand.hbm [shape: bf16[2,256,128], index: 1, kind: input, shape index: {}]   ;;  %s3837_s2 = inlined_call_operand.hbm [shape: bf16[128,128], index: 2, kind: input, shape index: {}]   ;;  %s3838_s3 = inlined_call_operand.vmem [shape: f32[1,128], index: 3, kind: input, shape index: {}]   ;;  %s3839_s4 = inlined_call_operand.hbm [shape: bf16[128,128], index: 4, kind: input, shape index: {}]   ;;  %s3840_s5 = inlined_call_operand.vmem [shape: f32[1,128], index: 5, kind: input, shape index: {}]   ;;  %s3841_s6 = inlined_call_operand.vmem [shape: bf16[2,4,256,32], index: 6, kind: output, shape index: {0}]   ;;  %s3842_s7 = inlined_call_operand.vmem [shape: bf16[2,4,256,32], index: 7, kind: output, shape index: {1}]  }
   0x1   :  { %3850 = sst [smem:[#allocation18_spill]] %s3837_s2 }
   0x2   :  { %3851 = sst [smem:[#allocation19_spill]] %s3839_s4 }
   0x3   :  { %3852 = sst [smem:[#allocation20_spill]] %s3841_s6 }
   0x4   :  { %3853 = sst [smem:[#allocation21_spill]] %s3842_s7 }
   0x5   :  { %13 = vsyncpa [#allocation3], 0 }
   0x6   :  { %15 = vsyncpa [#allocation3 + $0x1], 0 }
   0x7   :  { %16 = vsyncpa [#allocation5], 0 }
   0x8   :  { %18 = vsyncpa [#allocation5 + $0x1], 0 }
   0x9   :  { %19 = vsyncpa [#allocation8], 0  ;;  %s2870_s24 = smov 0   ;;  %s2872_s25 = smov 0  }
   0xa   :  { %s2874_s26 = smov 0   ;;  %s2876_s27 = smov 0  }
   0xb   :  { %s2878_s28 = smov 0   ;;  %s2880_s29 = smov 0  }
   0xc   :  { %s2882_s30 = smov 0   ;;  %s2884_s8 = smov 0  }
   0xd LB: > { %3854 = sst [smem:[#allocation15_spill]] %s2815_s30  ;;  %s2909_s9 = sadd.s32 4294967295, %s2819_s8   ;;  %s2819_s8 = sphi %s2884_s8, %s25_s8   ;;  %s2815_s30 = sphi %s2882_s30, %s3871_s30   ;;  %s2811_s29 = sphi %s2880_s29, %s3876_s29   ;;  %s2807_s28 = sphi %s2878_s28, %s3869_s28   ;;  %s2803_s27 = sphi %s2876_s27, %s3875_s27   ;;  %s2799_s26 = sphi %s2874_s26, %s3874_s26   ;;  %s2795_s25 = sphi %s2872_s25, %s3873_s25   ;;  %s2791_s24 = sphi %s2870_s24, %s3872_s24  }
   0xe   : > { %p59_p0 = scmp.ne.s32.totalorder %s2795_s25, %s2791_s24  ;;  %p60_p1 = scmp.eq.s32.totalorder %s2909_s9, 0 }
   0xf   : > { %p197_p2 = scmp.eq.s32.totalorder %s2909_s9, 3  ;;  %p2180_p3 = scmp.ge.s32.totalorder %s2819_s8, 1 }
  0x10   : > { %p238_p4 = scmp.lt.s32.totalorder %s2819_s8, 5  ;;  %p2918_p5 = por %p60_p1, %p59_p0 }
  0x11   : > { %s2821_s12 = smov [#allocation6]   ;;  %s2822_s15 = smov [#allocation7]  }
  0x12   : > { %p2922_p6 = pnand %p2180_p3, %p238_p4  ;;  %s250_s13 = sshll.u32 %s2821_s12, 4  ;;  %s251_s13 = int_to_ptr.vmem [resolvable:$true] %s250_s13 }
  0x13   : > { %s266_s16 = sshll.u32 %s2822_s15, 4  ;;  %s2644_s17 = scalar_lea.vmem %s251_s13, 1024  ;;  %s267_s16 = int_to_ptr.vmem [resolvable:$true] %s266_s16 }
  0x14   : > { %p2511_p7 = pneg %p2922_p6  ;;  %p2645_p10 = scmp.ne.s32.totalorder %s251_s13, %s2644_s17 }
  0x15   : > { %p2652_p13 = scmp.lt.s32.totalorder %s251_s13, %s251_s13  ;;  %p2653_p0 = scmp.lt.s32.totalorder %s2644_s17, %s2644_s17 }
  0x16   : > { %p2930_p8 = pnand %p2511_p7, %p60_p1 }
  0x17   : > { %p2654_p3 = por %p2653_p0, %p2652_p13 }
  0x18   : > { %p2635_p9 = pneg %p2930_p8 }
  0x1a   : > { %p2647_p11 = pnand %p2645_p10, %p2635_p9 }
  0x1c   : > { %p2648_p12 = pneg %p2647_p11 }
  0x1e   : > { %p2655_p4 = pnand %p2654_p3, %p2648_p12 }
  0x20   : > { %2658 = shalt.err (!%p2655_p4)
}
  0x21   : > { %s3843_s18 = smov 64   ;;  %s3845_s19 = smov 4  }
  0x22   : > { %s3858_s2 = sld [smem:[#allocation18_spill]]  ;;  %s2670_s22 = scalar_lea.vmem %s267_s16, 1024 }
  0x23   : > { %p2671_p7 = scmp.ne.s32.totalorder %s267_s16, %s2670_s22  ;;  %p2678_p12 = scmp.lt.s32.totalorder %s267_s16, %s267_s16 }
  0x24   : > { %p2679_p13 = scmp.lt.s32.totalorder %s2670_s22, %s2670_s22 }
  0x25   : > { %p2673_p10 = pnand %p2671_p7, %p2635_p9 }
  0x26   : > { %p2680_p0 = por %p2679_p13, %p2678_p12 }
  0x27   : > { %p2674_p11 = pneg %p2673_p10 }
  0x28   : > { %2514 = dma.hbm_to_vmem [thread:$0]  (!%p2930_p8), %s3858_s2, 1024, %s251_s13, [#allocation5], %s3843_s18, %s3843_s18, %s3845_s19  }
  0x29   : > { %p2681_p3 = pnand %p2680_p0, %p2674_p11 }
  0x2b   : > { %2684 = shalt.err (!%p2681_p3)
}
  0x2c   : > { %s3859_s4 = sld [smem:[#allocation19_spill]]  ;;  %s34_s12 = sadd.s32 1, %s2811_s29 }
  0x2d   : > { %p35_p9 = scmp.ge.s32.totalorder %s34_s12, 2  ;;  %s37_s13 = sadd.s32 1, %s2815_s30 }
  0x2e   : > { %s46_s14 = sadd.s32 1, %s2799_s26  ;;  %p53_p4 = scmp.ne.s32.totalorder %s2799_s26, %s2795_s25 }
  0x2f   : > { %s3878_s12 = smov (%p35_p9, %s34_s12), 0  ;;  %s3880_s13 = smov (!%p35_p9, %s37_s13), %s2815_s30 }
  0x30   : > { %3860 = sst [smem:[#allocation16_spill]] %s3878_s12  ;;  %s42_s15 = ssub.s32 %s2811_s29, %s3878_s12 }
  0x31   : > { %p54_p7 = scmp.eq.s32.totalorder %s2819_s8, 0  ;;  %p39_p10 = scmp.ge.s32.totalorder %s3880_s13, 2 }
  0x32   : > { %2517 = dma.hbm_to_vmem [thread:$0]  (!%p2930_p8), %s3859_s4, 1024, %s267_s16, [#allocation8], %s3843_s18, %s3843_s18, %s3845_s19  }
  0x33   : > { %p2971_p11 = por %p197_p2, %p53_p4  ;;  %p2975_p8 = por %p54_p7, %p53_p4 }
  0x34   : > { %p2527_p12 = scmp.lt.s32.totalorder %s2819_s8, 4  ;;  %s3882_s13 = smov (%p39_p10, %s3880_s13), 0 }
  0x35   : > { %3863 = sst [smem:[#allocation17_spill]] %s3882_s13  ;;  %s283_s20 = sand.u32 1, %s2799_s26  }
  0x36   : > { %s2185_s21 = sshll.u32 %s2811_s29, 4  ;;  %s41_s22 = ssub.s32 %s2815_s30, %s3882_s13 }
  0x37   : > { %s43_s23 = sor.u32 %s42_s15, %s41_s22  ;;  %s2986_s24 = sshll.u32 %s283_s20, 6 }
  0x38   : > { %p44_p2 = scmp.eq.s32.totalorder %s43_s23, 0  ;;  %s2186_s18 = sshll.u32 %s2815_s30, 5 }
  0x39   : > { %s287_s19 = scalar_lea.vmem [#allocation2], %s2986_s24  ;;  %s293_s12 = sadd.s32 %s2186_s18, %s2185_s21 }
  0x3a   : > { %s296_s2 = sshll.u32 %s287_s19, 4  ;;  %s2187_s7 = sshll.u32 %s293_s12, 6  ;;  %s297_s2 = int_to_ptr.vmem [resolvable:$true] %s296_s2 }
  0x3b   : > { %s2991_s4 = scalar_select %p44_p2, %s2799_s26, %s46_s14  }
  0x3c   : > { %p2997_p13 = pnand %p2527_p12, %p2975_p8  ;;  %s295_s22 = scalar_lea.hbm %s3835_s0, %s2187_s7 }
  0x3d   : > { %s3007_s19 = scalar_lea.hbm %s3836_s1, %s2187_s7  ;;  %s284_s18 = scalar_lea.sflag [#allocation3], %s283_s20 }
  0x3e   : > { %p2687_p0 = pneg %p2997_p13  ;;  %s2698_s12 = scalar_lea.vmem %s297_s2, 1024 }
  0x3f   : > { %p2699_p3 = scmp.ne.s32.totalorder %s297_s2, %s2698_s12  ;;  %s2825_s14 = smov [#allocation2]  }
  0x40   : > { %s2703_s16 = sshll.u32 %s2825_s14, 4  ;;  %s2704_s16 = int_to_ptr.vmem [resolvable:$false] %s2703_s16 }
  0x41   : > { %p2701_p9 = pnand %p2699_p3, %p2687_p0  ;;  %s2705_s13 = scalar_lea.vmem %s2704_s16, 2048 }
  0x42   : > { %p2706_p7 = scmp.lt.s32.totalorder %s297_s2, %s2704_s16  ;;  %p2707_p10 = scmp.lt.s32.totalorder %s2705_s13, %s2698_s12 }
  0x43   : > { %p2702_p4 = pneg %p2701_p9 }
  0x44   : > { %p2708_p8 = por %p2707_p10, %p2706_p7 }
  0x46   : > { %p2709_p12 = pnand %p2708_p8, %p2702_p4 }
  0x48   : > { %2712 = shalt.err (!%p2709_p12)
}
  0x49   : > { %s3865_s7 = smov 4   ;;  %s3866_s30 = smov 64  }
  0x4a   : > { %2521 = dma.hbm_to_vmem [thread:$0]  (!%p2997_p13), %s295_s22, 1024, %s297_s2, %s284_s18, %s3866_s30, %s3866_s30, %s3865_s7  }
  0x4b   : > { %s310_s20 = scalar_lea.vmem [#allocation4], %s2986_s24  ;;  %s306_s15 = sand.u32 1, %s2819_s8  }
  0x4c   : > { %s319_s21 = sshll.u32 %s310_s20, 4  ;;  %s307_s23 = scalar_lea.sflag [#allocation5], %s306_s15  ;;  %s320_s21 = int_to_ptr.vmem [resolvable:$true] %s319_s21 }
  0x4d   : > { %s2726_s14 = scalar_lea.vmem %s320_s21, 1024  ;;  %s2826_s12 = smov [#allocation4]  }
  0x4e   : > { %p2727_p2 = scmp.ne.s32.totalorder %s320_s21, %s2726_s14  ;;  %s2731_s16 = sshll.u32 %s2826_s12, 4  ;;  %s2732_s16 = int_to_ptr.vmem [resolvable:$false] %s2731_s16 }
  0x4f   : > { %s2733_s13 = scalar_lea.vmem %s2732_s16, 2048  ;;  %p2734_p4 = scmp.lt.s32.totalorder %s320_s21, %s2732_s16 }
  0x50   : > { %p2729_p3 = pnand %p2727_p2, %p2687_p0  ;;  %p2735_p7 = scmp.lt.s32.totalorder %s2733_s13, %s2726_s14 }
  0x52   : > { %p2730_p9 = pneg %p2729_p3  ;;  %p2736_p10 = por %p2735_p7, %p2734_p4 }
  0x54   : > { %p2737_p8 = pnand %p2736_p10, %p2730_p9 }
  0x56   : > { %2740 = shalt.err (!%p2737_p8)
}
  0x57   : > { %2524 = dma.hbm_to_vmem [thread:$0]  (!%p2997_p13), %s3007_s19, 1024, %s320_s21, %s307_s23, %s3866_s30, %s3866_s30, %s3865_s7  }
  0x58   : > { %331 = sbr.rel (%p2922_p6) target bundleno = 660 (0x294), region = 44  ;;  %s3033_s2 = sand.u32 (!%p2922_p6), 1, %s2795_s25  }
  0x59   : > { %s2193_s24 = sshll.u32 (!%p2922_p6), %s3033_s2, 6  ;;  %s334_s22 = scalar_lea.sflag (!%p2922_p6), [#allocation3], %s3033_s2 }
  0x5a   : > { %s3037_s18 = scalar_lea.vmem (!%p2922_p6), [#allocation2], %s2193_s24 }
  0x5d   : > { %2774 = dma.done.wait (%p2918_p5), %s334_s22, 1024  }
  0x5e   : > { %2776 = vsyncadd (%p2918_p5), %s334_s22, 4294966272  ;;  %s342_s6 = sand.u32 1, %s2909_s9   ;;  %s3044_s19 = scalar_lea.vmem [#allocation4], %s2193_s24 }
  0x5f   : > { %s343_s11 = scalar_lea.sflag [#allocation5], %s342_s6 }
  0x60   : > { %2778 = dma.done.wait (%p2918_p5), %s343_s11, 1024  }
  0x61   : > { %2780 = vsyncadd (%p2918_p5), %s343_s11, 4294966272 }
  0x62   : > { %2782 = dma.done.wait (%p60_p1), [#allocation5], 1024  }
  0x63   : > { %2784 = vsyncadd (%p60_p1), [#allocation5], 4294966272 }
  0x64   : > { %2786 = dma.done.wait (%p60_p1), [#allocation8], 1024  }
  0x65   : > { %2788 = vsyncadd (%p60_p1), [#allocation8], 4294966272  ;;  %v2601_v0 = vld [vmem:[#allocation6 + $0x38] sm:$0xff]   ;;  %v2603_v2 = vld [vmem:[#allocation6 + $0x30] sm:$0xff]   ;;  %s2197_s7 = sshll.u32 %s3033_s2, 8  ;;  %vm934_vm0 = vcmask 257024  }
  0x66   : > { %v2602_v1 = vld [vmem:[#allocation7 + $0x38] sm:$0xff]   ;;  %2435 = vmatprep.subr.bf16.mxu0 %v2601_v0  ;;  %v2604_v3 = vld [vmem:[#allocation7 + $0x30] sm:$0xff]   ;;  %v2605_v4 = vld [vmem:[#allocation6 + $0x28] sm:$0xff]   ;;  %s3093_s21 = scalar_lea.vmem [#allocation9], %s2197_s7  ;;  %s2827_s15 = smov 96  }
  0x67   : > { %2467 = vmatprep.subr.bf16.mxu1 %v2602_v1  ;;  %2436 = vmatpush3.bf16.msra.mxu0 %v2601_v0  ;;  %v2606_v5 = vld [vmem:[#allocation7 + $0x28] sm:$0xff]   ;;  %v2607_v6 = vld [vmem:[#allocation6 + $0x20] sm:$0xff]   ;;  %v2609_v8 = vld [vmem:[#allocation6 + $0x18] sm:$0xff]   ;;  %s3103_s23 = scalar_lea.vmem [#allocation10], %s2197_s7  ;;  %s2828_s14 = smov 64  }
  0x68   : > { %2468 = vmatpush3.bf16.msra.mxu1 %v2602_v1  ;;  %2437 = vmatprep.subr.bf16.mxu0 %v2603_v2  ;;  %v2608_v7 = vld [vmem:[#allocation7 + $0x20] sm:$0xff]   ;;  %v2610_v9 = vld [vmem:[#allocation7 + $0x18] sm:$0xff]   ;;  %v2611_v10 = vld [vmem:[#allocation6 + $0x10] sm:$0xff]   ;;  %s2829_s12 = smov 32   ;;  %s2363_s16 = sshll.u32 (%p2971_p11), %s2803_s27, 4 }
  0x69   : > { %2469 = vmatprep.subr.bf16.mxu1 %v2604_v3  ;;  %v2612_v11 = vld [vmem:[#allocation7 + $0x10] sm:$0xff]   ;;  %v2617_v12 = vld [vmem:[%s3037_s18] sm:$0xff]   ;;  %v2613_v14 = vld [vmem:[#allocation6 + $0x8] sm:$0xff]   ;;  %s2364_s13 = sshll.u32 (%p2971_p11), %s2807_s28, 7  ;;  %s3867_s6 = sld [smem:[#allocation20_spill]] (%p2971_p11) }
  0x6a   : > { %v2618_v13 = vld [vmem:[%s3044_s19] sm:$0xff]   ;;  %2451 = vmatprep.mubr.bf16.mxu0 %v2617_v12  ;;  %v2614_v15 = vld [vmem:[#allocation7 + $0x8] sm:$0xff]   ;;  %v2621_v20 = vld [vmem:[%s3037_s18 + $0x10] sm:$0xff]   ;;  %s1426_s2 = sadd.s32 (%p2971_p11), %s2364_s13, %s2363_s16 }
  0x6b   : > { %2438 = vmatpush3.bf16.msra.mxu0 %v2603_v2  ;;  %2483 = vmatprep.mubr.bf16.mxu1 %v2618_v13  ;;  %v2615_v16 = vld [vmem:[#allocation6] sm:$0xff]   ;;  %v2619_v18 = vld [vmem:[%s3037_s18 + $0x8] sm:$0xff]   ;;  %v2623_v21 = vld [vmem:[%s3044_s19 + $0x10] sm:$0xff]   ;;  %s2365_s24 = sshll.u32 (%p2971_p11), %s1426_s2, 2 }
  0x6c   : > { %2470 = vmatpush3.bf16.msra.mxu1 %v2604_v3  ;;  %2439 = vmatprep.subr.bf16.mxu0 %v2605_v4  ;;  %v2616_v17 = vld [vmem:[#allocation7] sm:$0xff]   ;;  %v2620_v19 = vld [vmem:[%s3044_s19 + $0x8] sm:$0xff]   ;;  %v2622_v22 = vld [vmem:[%s3037_s18 + $0x18] sm:$0xff]  }
  0x6d   : > { %2471 = vmatprep.subr.bf16.mxu1 %v2606_v5  ;;  %v2624_v23 = vld [vmem:[%s3044_s19 + $0x18] sm:$0xff]   ;;  %v2625_v24 = vld [vmem:[%s3037_s18 + $0x20] sm:$0xff]   ;;  %v2626_v26 = vld [vmem:[%s3037_s18 + $0x28] sm:$0xff]  }
  0x6e   : > { %v2627_v25 = vld [vmem:[%s3044_s19 + $0x20] sm:$0xff]   ;;  %v2628_v27 = vld [vmem:[%s3044_s19 + $0x28] sm:$0xff]   ;;  %v2629_v28 = vld [vmem:[%s3037_s18 + $0x30] sm:$0xff]  }
  0x6f   : > { %2440 = vmatpush3.bf16.msra.mxu0 %v2605_v4  ;;  %v2631_v29 = vld [vmem:[%s3044_s19 + $0x30] sm:$0xff]   ;;  %v2630_v30 = vld [vmem:[%s3037_s18 + $0x38] sm:$0xff]   ;;  %v3077_v32 = vld [vmem:[%s3838_s3] ss:$0 sm:$0xff]  ;;  %s3681_s11 = scalar_lea.vmem (%p2971_p11), %s3867_s6, %s2365_s24 }
  0x70   : > { %2472 = vmatpush3.bf16.msra.mxu1 %v2606_v5  ;;  %2441 = vmatprep.subr.bf16.mxu0 %v2607_v6  ;;  %v2632_v31 = vld [vmem:[%s3044_s19 + $0x38] sm:$0xff]   ;;  %v3083_v33 = vld [vmem:[%s3840_s5] ss:$0 sm:$0xff] }
  0x71   : > { %2473 = vmatprep.subr.bf16.mxu1 %v2608_v7 }
  0x73   : > { %2442 = vmatpush3.bf16.msra.mxu0 %v2607_v6 }
  0x74   : > { %2474 = vmatpush3.bf16.msra.mxu1 %v2608_v7  ;;  %2443 = vmatprep.subr.bf16.mxu0 %v2609_v8 }
  0x75   : > { %2475 = vmatprep.subr.bf16.mxu1 %v2610_v9 }
  0x77   : > { %2444 = vmatpush3.bf16.msra.mxu0 %v2609_v8 }
  0x78   : > { %2476 = vmatpush3.bf16.msra.mxu1 %v2610_v9  ;;  %2445 = vmatprep.subr.bf16.mxu0 %v2611_v10 }
  0x79   : > { %2477 = vmatprep.subr.bf16.mxu1 %v2612_v11 }
  0x7b   : > { %2446 = vmatpush3.bf16.msra.mxu0 %v2611_v10 }
  0x7c   : > { %2478 = vmatpush3.bf16.msra.mxu1 %v2612_v11  ;;  %2447 = vmatprep.subr.bf16.mxu0 %v2613_v14 }
  0x7d   : > { %2479 = vmatprep.subr.bf16.mxu1 %v2614_v15 }
  0x7f   : > { %2448 = vmatpush3.bf16.msra.mxu0 %v2613_v14 }
  0x80   : > { %2480 = vmatpush3.bf16.msra.mxu1 %v2614_v15  ;;  %2449 = vmatprep.subr.bf16.mxu0 %v2615_v16 }
  0x81   : > { %2481 = vmatprep.subr.bf16.mxu1 %v2616_v17 }
  0x83   : > { %2450 = vmatpush3.bf16.msra.mxu0 %v2615_v16 }
  0x84   : > { %2482 = vmatpush3.bf16.msra.mxu1 %v2616_v17 }
  0x86   : > { %2452 = vmatmul.mubr.bf16.vlgmr.msra.gmra.mxu0 %v2619_v18 }
  0x87   : > { %2484 = vmatmul.mubr.bf16.vlgmr.msra.gmra.mxu1 %v2620_v19  ;;  %2455 = vmatprep.mubr.bf16.mxu0 %v2621_v20 }
  0x88   : > { %2487 = vmatprep.mubr.bf16.mxu1 %v2623_v21 }
  0x8e   : > { %2456 = vmatmul.mubr.bf16.gmra.mxu0 %v2622_v22 }
  0x8f   : > { %2488 = vmatmul.mubr.bf16.gmra.mxu1 %v2624_v23  ;;  %2459 = vmatprep.mubr.bf16.mxu0 %v2625_v24 }
  0x90   : > { %2491 = vmatprep.mubr.bf16.mxu1 %v2627_v25 }
  0x96   : > { %2460 = vmatmul.mubr.bf16.gmra.mxu0 %v2626_v26 }
  0x97   : > { %2492 = vmatmul.mubr.bf16.gmra.mxu1 %v2628_v27  ;;  %2463 = vmatprep.mubr.bf16.mxu0 %v2629_v28 }
  0x98   : > { %2495 = vmatprep.mubr.bf16.mxu1 %v2631_v29 }
  0x9e   : > { %2464 = vmatmul.mubr.bf16.gmra.mxu0 %v2630_v30 }
  0x9f   : > { %2496 = vmatmul.mubr.bf16.gmra.mxu1 %v2632_v31 }
 0x146   : > { %v2453_v34 = vpop.f32.mrf.mxu0 }
 0x147   : > { %v592_v35 = vadd.f32 %v2453_v34, %v3077_v32  ;;  %v2485_v36 = vpop.f32.mrf.mxu1 }
 0x148   : > { %v816_v37 = vadd.f32 %v2485_v36, %v3083_v33  ;;  %v583_v38 = vpop.f32.mrf.mxu0 }
 0x149   : > { %v3087_v39 = vpack.c.bf16 %v592_v35, %v592_v35  ;;  %v584_v40 = vadd.f32 %v3077_v32, %v583_v38  ;;  %v807_v41 = vpop.f32.mrf.mxu1 }
 0x14a   : > { %v3090_v42 = vpack.c.bf16 %v816_v37, %v816_v37  ;;  %v808_v43 = vadd.f32 %v3083_v33, %v807_v41  ;;  %v2454_v44 = vpop.f32.mrf.mxu0 }
 0x14b   : > { %937 = vst.msk [vmem:[%s3093_s21 + $0x8] sm:$0xf] %vm934_vm0, %v3087_v39  ;;  %v3098_v45 = vpack.c.bf16 %v584_v40, %v584_v40  ;;  %v595_v46 = vadd.f32 %v2454_v44, %v3077_v32  ;;  %v2486_v47 = vpop.f32.mrf.mxu1  ;;  %1027 = vrot.lane.b32.xlu1 %v3087_v39, %s2827_s15 }
 0x14c   : > { %1009 = vst.msk [vmem:[%s3103_s23 + $0x8] sm:$0xf] %vm934_vm0, %v3090_v42  ;;  %v3108_v48 = vpack.c.bf16 %v808_v43, %v808_v43  ;;  %v819_v49 = vadd.f32 %v2486_v47, %v3083_v33  ;;  %1092 = vrot.lane.b32.xlu0 %v3090_v42, %s2827_s15  ;;  %v586_v50 = vpop.f32.mrf.mxu0 }
 0x14d   : > { %935 = vst.msk [vmem:[%s3093_s21] sm:$0xf] %vm934_vm0, %v3098_v45  ;;  %v3116_v51 = vpack.c.bf16 %v595_v46, %v595_v46  ;;  %v587_v52 = vadd.f32 %v3077_v32, %v586_v50  ;;  %v810_v53 = vpop.f32.mrf.mxu1 }
 0x14e   : > { %1007 = vst.msk [vmem:[%s3103_s23] sm:$0xf] %vm934_vm0, %v3108_v48  ;;  %v3122_v54 = vpack.c.bf16 %v819_v49, %v819_v49  ;;  %v811_v55 = vadd.f32 %v3083_v33, %v810_v53  ;;  %v2457_v56 = vpop.f32.mrf.mxu0 }
 0x14f   : > { %938 = vst.msk [vmem:[%s3093_s21 + $0xc] sm:$0xf] %vm934_vm0, %v3116_v51  ;;  %v3128_v57 = vpack.c.bf16 %v587_v52, %v587_v52  ;;  %1029 = vrot.lane.b32.xlu1 %v3116_v51, %s2827_s15  ;;  %v608_v58 = vadd.f32 %v2457_v56, %v3077_v32  ;;  %v2489_v59 = vpop.f32.mrf.mxu1 }
 0x150   : > { %1010 = vst.msk [vmem:[%s3103_s23 + $0xc] sm:$0xf] %vm934_vm0, %v3122_v54  ;;  %v3136_v60 = vpack.c.bf16 %v811_v55, %v811_v55  ;;  %1157 = vrot.lane.b32.xlu0 %v3087_v39, %s2828_s14  ;;  %v599_v61 = vpop.f32.mrf.mxu0  ;;  %v832_v62 = vadd.f32 %v2489_v59, %v3083_v33 }
 0x151   : > { %936 = vst.msk [vmem:[%s3093_s21 + $0x4] sm:$0xf] %vm934_vm0, %v3128_v57  ;;  %v3144_v63 = vpack.c.bf16 %v608_v58, %v608_v58  ;;  %v600_v0 = vadd.f32 %v3077_v32, %v599_v61  ;;  %v823_v1 = vpop.f32.mrf.mxu1 }
 0x152   : > { %1008 = vst.msk [vmem:[%s3103_s23 + $0x4] sm:$0xf] %vm934_vm0, %v3136_v60  ;;  %v2458_v2 = vpop.f32.mrf.mxu0  ;;  %v3150_v3 = vpack.c.bf16 %v832_v62, %v832_v62  ;;  %v824_v4 = vadd.f32 %v3083_v33, %v823_v1 }
 0x153   : > { %1094 = vrot.lane.b32.xlu1 %v3122_v54, %s2827_s15  ;;  %941 = vst.msk [vmem:[%s3093_s21 + $0x18] sm:$0xf] %vm934_vm0, %v3144_v63  ;;  %v3158_v5 = vpack.c.bf16 %v600_v0, %v600_v0  ;;  %v611_v6 = vadd.f32 %v2458_v2, %v3077_v32  ;;  %v2490_v7 = vpop.f32.mrf.mxu1 }
 0x154   : > { %1222 = vrot.lane.b32.xlu0 %v3090_v42, %s2828_s14  ;;  %1013 = vst.msk [vmem:[%s3103_s23 + $0x18] sm:$0xf] %vm934_vm0, %v3150_v3  ;;  %v602_v8 = vpop.f32.mrf.mxu0  ;;  %v3166_v9 = vpack.c.bf16 %v824_v4, %v824_v4  ;;  %v835_v10 = vadd.f32 %v2490_v7, %v3083_v33 }
 0x155   : > { %939 = vst.msk [vmem:[%s3093_s21 + $0x10] sm:$0xf] %vm934_vm0, %v3158_v5  ;;  %v3172_v11 = vpack.c.bf16 %v611_v6, %v611_v6  ;;  %v603_v12 = vadd.f32 %v3077_v32, %v602_v8  ;;  %v826_v13 = vpop.f32.mrf.mxu1 }
 0x156   : > { %1011 = vst.msk [vmem:[%s3103_s23 + $0x10] sm:$0xf] %vm934_vm0, %v3166_v9  ;;  %v3178_v14 = vpack.c.bf16 %v835_v10, %v835_v10  ;;  %v827_v15 = vadd.f32 %v3083_v33, %v826_v13  ;;  %v2461_v16 = vpop.f32.mrf.mxu0 }
 0x157   : > { %1159 = vrot.lane.b32.xlu1 %v3116_v51, %s2828_s14  ;;  %942 = vst.msk [vmem:[%s3093_s21 + $0x1c] sm:$0xf] %vm934_vm0, %v3172_v11  ;;  %v3186_v17 = vpack.c.bf16 %v603_v12, %v603_v12  ;;  %v624_v18 = vadd.f32 %v2461_v16, %v3077_v32  ;;  %v2493_v19 = vpop.f32.mrf.mxu1 }
 0x158   : > { %1287 = vrot.lane.b32.xlu0 %v3087_v39, %s2829_s12  ;;  %1014 = vst.msk [vmem:[%s3103_s23 + $0x1c] sm:$0xf] %vm934_vm0, %v3178_v14  ;;  %v3194_v20 = vpack.c.bf16 %v827_v15, %v827_v15  ;;  %v615_v21 = vpop.f32.mrf.mxu0  ;;  %v848_v22 = vadd.f32 %v2493_v19, %v3083_v33 }
 0x159   : > { %940 = vst.msk [vmem:[%s3093_s21 + $0x14] sm:$0xf] %vm934_vm0, %v3186_v17  ;;  %v3200_v23 = vpack.c.bf16 %v624_v18, %v624_v18  ;;  %v616_v24 = vadd.f32 %v3077_v32, %v615_v21  ;;  %v839_v25 = vpop.f32.mrf.mxu1 }
 0x15a   : > { %1012 = vst.msk [vmem:[%s3103_s23 + $0x14] sm:$0xf] %vm934_vm0, %v3194_v20  ;;  %v2462_v26 = vpop.f32.mrf.mxu0  ;;  %v3206_v27 = vpack.c.bf16 %v848_v22, %v848_v22  ;;  %v840_v28 = vadd.f32 %v3083_v33, %v839_v25 }
 0x15b   : > { %1224 = vrot.lane.b32.xlu1 %v3122_v54, %s2828_s14  ;;  %945 = vst.msk [vmem:[%s3093_s21 + $0x28] sm:$0xf] %vm934_vm0, %v3200_v23  ;;  %v3214_v29 = vpack.c.bf16 %v616_v24, %v616_v24  ;;  %v627_v30 = vadd.f32 %v2462_v26, %v3077_v32  ;;  %v2494_v31 = vpop.f32.mrf.mxu1 }
 0x15c   : > { %1352 = vrot.lane.b32.xlu0 %v3090_v42, %s2829_s12  ;;  %1017 = vst.msk [vmem:[%s3103_s23 + $0x28] sm:$0xf] %vm934_vm0, %v3206_v27  ;;  %v618_v34 = vpop.f32.mrf.mxu0  ;;  %v3222_v35 = vpack.c.bf16 %v840_v28, %v840_v28  ;;  %v851_v36 = vadd.f32 %v2494_v31, %v3083_v33 }
 0x15d   : > { %943 = vst.msk [vmem:[%s3093_s21 + $0x20] sm:$0xf] %vm934_vm0, %v3214_v29  ;;  %v3228_v37 = vpack.c.bf16 %v627_v30, %v627_v30  ;;  %v619_v38 = vadd.f32 %v3077_v32, %v618_v34  ;;  %v842_v39 = vpop.f32.mrf.mxu1 }
 0x15e   : > { %1015 = vst.msk [vmem:[%s3103_s23 + $0x20] sm:$0xf] %vm934_vm0, %v3222_v35  ;;  %v3234_v40 = vpack.c.bf16 %v851_v36, %v851_v36  ;;  %v843_v41 = vadd.f32 %v3083_v33, %v842_v39  ;;  %v2465_v42 = vpop.f32.mrf.mxu0 }
 0x15f   : > { %1289 = vrot.lane.b32.xlu1 %v3116_v51, %s2829_s12  ;;  %946 = vst.msk [vmem:[%s3093_s21 + $0x2c] sm:$0xf] %vm934_vm0, %v3228_v37  ;;  %v3242_v43 = vpack.c.bf16 %v619_v38, %v619_v38  ;;  %v640_v44 = vadd.f32 %v2465_v42, %v3077_v32  ;;  %v2497_v46 = vpop.f32.mrf.mxu1 }
 0x160   : > { %1023 = vrot.lane.b32.xlu0 %v3098_v45, %s2827_s15  ;;  %1018 = vst.msk [vmem:[%s3103_s23 + $0x2c] sm:$0xf] %vm934_vm0, %v3234_v40  ;;  %v3250_v47 = vpack.c.bf16 %v843_v41, %v843_v41  ;;  %v631_v49 = vpop.f32.mrf.mxu0  ;;  %v864_v50 = vadd.f32 %v2497_v46, %v3083_v33 }
 0x161   : > { %944 = vst.msk [vmem:[%s3093_s21 + $0x24] sm:$0xf] %vm934_vm0, %v3242_v43  ;;  %v3256_v51 = vpack.c.bf16 %v640_v44, %v640_v44  ;;  %v632_v52 = vadd.f32 %v3077_v32, %v631_v49  ;;  %v855_v53 = vpop.f32.mrf.mxu1 }
 0x162   : > { %1016 = vst.msk [vmem:[%s3103_s23 + $0x24] sm:$0xf] %vm934_vm0, %v3250_v47  ;;  %v2466_v55 = vpop.f32.mrf.mxu0  ;;  %v3262_v56 = vpack.c.bf16 %v864_v50, %v864_v50  ;;  %v856_v58 = vadd.f32 %v3083_v33, %v855_v53 }
 0x163   : > { %1354 = vrot.lane.b32.xlu1 %v3122_v54, %s2829_s12  ;;  %949 = vst.msk [vmem:[%s3093_s21 + $0x38] sm:$0xf] %vm934_vm0, %v3256_v51  ;;  %v3270_v59 = vpack.c.bf16 %v632_v52, %v632_v52  ;;  %v643_v61 = vadd.f32 %v2466_v55, %v3077_v32  ;;  %v2498_v62 = vpop.f32.mrf.mxu1 }
 0x164   : > { %1088 = vrot.lane.b32.xlu0 %v3108_v48, %s2827_s15  ;;  %1021 = vst.msk [vmem:[%s3103_s23 + $0x38] sm:$0xf] %vm934_vm0, %v3262_v56  ;;  %v634_v0 = vpop.f32.mrf.mxu0  ;;  %v3278_v1 = vpack.c.bf16 %v856_v58, %v856_v58  ;;  %v867_v54 = vadd.f32 %v2498_v62, %v3083_v33 }
 0x165   : > { %947 = vst.msk [vmem:[%s3093_s21 + $0x30] sm:$0xf] %vm934_vm0, %v3270_v59  ;;  %v3284_v2 = vpack.c.bf16 %v643_v61, %v643_v61  ;;  %v635_v4 = vadd.f32 %v3077_v32, %v634_v0  ;;  %v858_v6 = vpop.f32.mrf.mxu1 }
 0x166   : > { %1019 = vst.msk [vmem:[%s3103_s23 + $0x30] sm:$0xf] %vm934_vm0, %v3278_v1  ;;  %v3290_v7 = vpack.c.bf16 %v867_v54, %v867_v54  ;;  %v859_v8 = vadd.f32 %v3083_v33, %v858_v6 }
 0x167   : > { %1090 = vrot.lane.b32.xlu1 %v3136_v60, %s2827_s15  ;;  %950 = vst.msk [vmem:[%s3093_s21 + $0x3c] sm:$0xf] %vm934_vm0, %v3284_v2  ;;  %v3298_v10 = vpack.c.bf16 %v635_v4, %v635_v4 }
 0x168   : > { %1153 = vrot.lane.b32.xlu0 %v3098_v45, %s2828_s14  ;;  %1022 = vst.msk [vmem:[%s3103_s23 + $0x3c] sm:$0xf] %vm934_vm0, %v3290_v7  ;;  %v3305_v32 = vpack.c.bf16 %v859_v8, %v859_v8 }
 0x169   : > { %948 = vst.msk [vmem:[%s3093_s21 + $0x34] sm:$0xf] %vm934_vm0, %v3298_v10 }
 0x16a   : > { %1020 = vst.msk [vmem:[%s3103_s23 + $0x34] sm:$0xf] %vm934_vm0, %v3305_v32 }
 0x16b   : > { %1155 = vrot.lane.b32.xlu1 %v3128_v57, %s2828_s14 }
 0x16c   : > { %1218 = vrot.lane.b32.xlu0 %v3108_v48, %s2828_s14 }
 0x16f   : > { %1220 = vrot.lane.b32.xlu1 %v3136_v60, %s2828_s14 }
 0x170   : > { %1283 = vrot.lane.b32.xlu0 %v3098_v45, %s2829_s12 }
 0x173   : > { %1285 = vrot.lane.b32.xlu1 %v3128_v57, %s2829_s12 }
 0x174   : > { %1348 = vrot.lane.b32.xlu0 %v3108_v48, %s2829_s12 }
 0x177   : > { %1350 = vrot.lane.b32.xlu1 %v3136_v60, %s2829_s12 }
 0x178   : > { %1025 = vrot.lane.b32.xlu0 %v3128_v57, %s2827_s15 }
 0x17b   : > { %1037 = vrot.lane.b32.xlu1 %v3172_v11, %s2827_s15 }
 0x17c   : > { %1035 = vrot.lane.b32.xlu0 %v3144_v63, %s2827_s15 }
 0x17f   : > { %1102 = vrot.lane.b32.xlu1 %v3178_v14, %s2827_s15 }
 0x180   : > { %1100 = vrot.lane.b32.xlu0 %v3150_v3, %s2827_s15 }
 0x183   : > { %1167 = vrot.lane.b32.xlu1 %v3172_v11, %s2828_s14 }
 0x184   : > { %1165 = vrot.lane.b32.xlu0 %v3144_v63, %s2828_s14 }
 0x187   : > { %1232 = vrot.lane.b32.xlu1 %v3178_v14, %s2828_s14 }
 0x188   : > { %1230 = vrot.lane.b32.xlu0 %v3150_v3, %s2828_s14 }
 0x18b   : > { %1297 = vrot.lane.b32.xlu1 %v3172_v11, %s2829_s12 }
 0x18c   : > { %1295 = vrot.lane.b32.xlu0 %v3144_v63, %s2829_s12 }
 0x18f   : > { %1362 = vrot.lane.b32.xlu1 %v3178_v14, %s2829_s12 }
 0x190   : > { %1360 = vrot.lane.b32.xlu0 %v3150_v3, %s2829_s12 }
 0x193   : > { %1033 = vrot.lane.b32.xlu1 %v3186_v17, %s2827_s15 }
 0x194   : > { %1031 = vrot.lane.b32.xlu0 %v3158_v5, %s2827_s15 }
 0x197   : > { %1098 = vrot.lane.b32.xlu1 %v3194_v20, %s2827_s15 }
 0x198   : > { %1096 = vrot.lane.b32.xlu0 %v3166_v9, %s2827_s15 }
 0x19b   : > { %1163 = vrot.lane.b32.xlu1 %v3186_v17, %s2828_s14 }
 0x19c   : > { %1161 = vrot.lane.b32.xlu0 %v3158_v5, %s2828_s14 }
 0x19f   : > { %1228 = vrot.lane.b32.xlu1 %v3194_v20, %s2828_s14 }
 0x1a0   : > { %1226 = vrot.lane.b32.xlu0 %v3166_v9, %s2828_s14 }
 0x1a3   : > { %1293 = vrot.lane.b32.xlu1 %v3186_v17, %s2829_s12 }
 0x1a4   : > { %1291 = vrot.lane.b32.xlu0 %v3158_v5, %s2829_s12 }
 0x1a7   : > { %1358 = vrot.lane.b32.xlu1 %v3194_v20, %s2829_s12 }
 0x1a8   : > { %1356 = vrot.lane.b32.xlu0 %v3166_v9, %s2829_s12 }
 0x1ab   : > { %1045 = vrot.lane.b32.xlu1 %v3228_v37, %s2827_s15 }
 0x1ac   : > { %1043 = vrot.lane.b32.xlu0 %v3200_v23, %s2827_s15 }
 0x1af   : > { %1110 = vrot.lane.b32.xlu1 %v3234_v40, %s2827_s15 }
 0x1b0   : > { %1108 = vrot.lane.b32.xlu0 %v3206_v27, %s2827_s15 }
 0x1b3   : > { %1175 = vrot.lane.b32.xlu1 %v3228_v37, %s2828_s14 }
 0x1b4   : > { %1173 = vrot.lane.b32.xlu0 %v3200_v23, %s2828_s14 }
 0x1b7   : > { %1240 = vrot.lane.b32.xlu1 %v3234_v40, %s2828_s14 }
 0x1b8   : > { %1238 = vrot.lane.b32.xlu0 %v3206_v27, %s2828_s14 }
 0x1bb   : > { %1305 = vrot.lane.b32.xlu1 %v3228_v37, %s2829_s12 }
 0x1bc   : > { %1303 = vrot.lane.b32.xlu0 %v3200_v23, %s2829_s12 }
 0x1bd   : > { %v1028_v33 = vpop.permute.xlu1 %1027 }
 0x1be   : > { %v1093_v45 = vpop.permute.xlu0 %1092  ;;  %2267 = vst.msk [vmem:[%s3093_s21 + $0x48] sm:$0xf] %vm934_vm0, %v1028_v33 }
 0x1bf   : > { %2283 = vst.msk [vmem:[%s3103_s23 + $0x48] sm:$0xf] %vm934_vm0, %v1093_v45  ;;  %1370 = vrot.lane.b32.xlu1 %v3234_v40, %s2829_s12 }
 0x1c0   : > { %1368 = vrot.lane.b32.xlu0 %v3206_v27, %s2829_s12 }
 0x1c1   : > { %v1030_v48 = vpop.permute.xlu1 %1029 }
 0x1c2   : > { %v1158_v57 = vpop.permute.xlu0 %1157  ;;  %2268 = vst.msk [vmem:[%s3093_s21 + $0x4c] sm:$0xf] %vm934_vm0, %v1030_v48 }
 0x1c3   : > { %2299 = vst.msk [vmem:[%s3093_s21 + $0x88] sm:$0xf] %vm934_vm0, %v1158_v57  ;;  %1041 = vrot.lane.b32.xlu1 %v3242_v43, %s2827_s15 }
 0x1c4   : > { %1039 = vrot.lane.b32.xlu0 %v3214_v29, %s2827_s15 }
 0x1c5   : > { %v1095_v60 = vpop.permute.xlu1 %1094 }
 0x1c6   : > { %v1223_v63 = vpop.permute.xlu0 %1222  ;;  %2284 = vst.msk [vmem:[%s3103_s23 + $0x4c] sm:$0xf] %vm934_vm0, %v1095_v60 }
 0x1c7   : > { %2315 = vst.msk [vmem:[%s3103_s23 + $0x88] sm:$0xf] %vm934_vm0, %v1223_v63  ;;  %1106 = vrot.lane.b32.xlu1 %v3250_v47, %s2827_s15 }
 0x1c8   : > { %1104 = vrot.lane.b32.xlu0 %v3222_v35, %s2827_s15 }
 0x1c9   : > { %v1160_v3 = vpop.permute.xlu1 %1159 }
 0x1ca   : > { %v1288_v5 = vpop.permute.xlu0 %1287  ;;  %2300 = vst.msk [vmem:[%s3093_s21 + $0x8c] sm:$0xf] %vm934_vm0, %v1160_v3 }
 0x1cb   : > { %2331 = vst.msk [vmem:[%s3093_s21 + $0xc8] sm:$0xf] %vm934_vm0, %v1288_v5  ;;  %1171 = vrot.lane.b32.xlu1 %v3242_v43, %s2828_s14 }
 0x1cc   : > { %1169 = vrot.lane.b32.xlu0 %v3214_v29, %s2828_s14 }
 0x1cd   : > { %v1225_v9 = vpop.permute.xlu1 %1224 }
 0x1ce   : > { %v1353_v11 = vpop.permute.xlu0 %1352  ;;  %2316 = vst.msk [vmem:[%s3103_s23 + $0x8c] sm:$0xf] %vm934_vm0, %v1225_v9 }
 0x1cf   : > { %2347 = vst.msk [vmem:[%s3103_s23 + $0xc8] sm:$0xf] %vm934_vm0, %v1353_v11  ;;  %1236 = vrot.lane.b32.xlu1 %v3250_v47, %s2828_s14 }
 0x1d0   : > { %1234 = vrot.lane.b32.xlu0 %v3222_v35, %s2828_s14 }
 0x1d1   : > { %v1290_v12 = vpop.permute.xlu1 %1289 }
 0x1d2   : > { %2332 = vst.msk [vmem:[%s3093_s21 + $0xcc] sm:$0xf] %vm934_vm0, %v1290_v12  ;;  %v1024_v13 = vpop.permute.xlu0 %1023 }
 0x1d3   : > { %2265 = vst.msk [vmem:[%s3093_s21 + $0x40] sm:$0xf] %vm934_vm0, %v1024_v13  ;;  %1301 = vrot.lane.b32.xlu1 %v3242_v43, %s2829_s12 }
 0x1d4   : > { %1299 = vrot.lane.b32.xlu0 %v3214_v29, %s2829_s12 }
 0x1d5   : > { %v1355_v14 = vpop.permute.xlu1 %1354 }
 0x1d6   : > { %2348 = vst.msk [vmem:[%s3103_s23 + $0xcc] sm:$0xf] %vm934_vm0, %v1355_v14  ;;  %v1089_v15 = vpop.permute.xlu0 %1088 }
 0x1d7   : > { %2281 = vst.msk [vmem:[%s3103_s23 + $0x40] sm:$0xf] %vm934_vm0, %v1089_v15  ;;  %1366 = vrot.lane.b32.xlu1 %v3250_v47, %s2829_s12 }
 0x1d8   : > { %1364 = vrot.lane.b32.xlu0 %v3222_v35, %s2829_s12 }
 0x1d9   : > { %v1091_v16 = vpop.permute.xlu1 %1090 }
 0x1da   : > { %2282 = vst.msk [vmem:[%s3103_s23 + $0x44] sm:$0xf] %vm934_vm0, %v1091_v16  ;;  %v1154_v17 = vpop.permute.xlu0 %1153 }
 0x1db   : > { %2297 = vst.msk [vmem:[%s3093_s21 + $0x80] sm:$0xf] %vm934_vm0, %v1154_v17  ;;  %1053 = vrot.lane.b32.xlu1 %v3284_v2, %s2827_s15 }
 0x1dc   : > { %1051 = vrot.lane.b32.xlu0 %v3256_v51, %s2827_s15 }
 0x1dd   : > { %v1156_v18 = vpop.permute.xlu1 %1155 }
 0x1de   : > { %2298 = vst.msk [vmem:[%s3093_s21 + $0x84] sm:$0xf] %vm934_vm0, %v1156_v18  ;;  %v1219_v19 = vpop.permute.xlu0 %1218 }
 0x1df   : > { %2313 = vst.msk [vmem:[%s3103_s23 + $0x80] sm:$0xf] %vm934_vm0, %v1219_v19  ;;  %1118 = vrot.lane.b32.xlu1 %v3290_v7, %s2827_s15 }
 0x1e0   : > { %1116 = vrot.lane.b32.xlu0 %v3262_v56, %s2827_s15 }
 0x1e1   : > { %v1221_v20 = vpop.permute.xlu1 %1220 }
 0x1e2   : > { %2314 = vst.msk [vmem:[%s3103_s23 + $0x84] sm:$0xf] %vm934_vm0, %v1221_v20  ;;  %v1284_v21 = vpop.permute.xlu0 %1283 }
 0x1e3   : > { %2329 = vst.msk [vmem:[%s3093_s21 + $0xc0] sm:$0xf] %vm934_vm0, %v1284_v21  ;;  %1183 = vrot.lane.b32.xlu1 %v3284_v2, %s2828_s14 }
 0x1e4   : > { %1181 = vrot.lane.b32.xlu0 %v3256_v51, %s2828_s14 }
 0x1e5   : > { %v1286_v22 = vpop.permute.xlu1 %1285 }
 0x1e6   : > { %2330 = vst.msk [vmem:[%s3093_s21 + $0xc4] sm:$0xf] %vm934_vm0, %v1286_v22  ;;  %v1349_v23 = vpop.permute.xlu0 %1348 }
 0x1e7   : > { %2345 = vst.msk [vmem:[%s3103_s23 + $0xc0] sm:$0xf] %vm934_vm0, %v1349_v23  ;;  %1248 = vrot.lane.b32.xlu1 %v3290_v7, %s2828_s14 }
 0x1e8   : > { %1246 = vrot.lane.b32.xlu0 %v3262_v56, %s2828_s14 }
 0x1e9   : > { %v1351_v24 = vpop.permute.xlu1 %1350 }
 0x1ea   : > { %2346 = vst.msk [vmem:[%s3103_s23 + $0xc4] sm:$0xf] %vm934_vm0, %v1351_v24  ;;  %v1026_v25 = vpop.permute.xlu0 %1025 }
 0x1eb   : > { %2266 = vst.msk [vmem:[%s3093_s21 + $0x44] sm:$0xf] %vm934_vm0, %v1026_v25  ;;  %1313 = vrot.lane.b32.xlu1 %v3284_v2, %s2829_s12 }
 0x1ec   : > { %1311 = vrot.lane.b32.xlu0 %v3256_v51, %s2829_s12 }
 0x1ed   : > { %v1038_v26 = vpop.permute.xlu1 %1037 }
 0x1ee   : > { %2272 = vst.msk [vmem:[%s3093_s21 + $0x5c] sm:$0xf] %vm934_vm0, %v1038_v26  ;;  %v1036_v27 = vpop.permute.xlu0 %1035 }
 0x1ef   : > { %2271 = vst.msk [vmem:[%s3093_s21 + $0x58] sm:$0xf] %vm934_vm0, %v1036_v27  ;;  %1049 = vrot.lane.b32.xlu1 %v3298_v10, %s2827_s15 }
 0x1f0   : > { %1047 = vrot.lane.b32.xlu0 %v3270_v59, %s2827_s15 }
 0x1f1   : > { %v1103_v28 = vpop.permute.xlu1 %1102 }
 0x1f2   : > { %2288 = vst.msk [vmem:[%s3103_s23 + $0x5c] sm:$0xf] %vm934_vm0, %v1103_v28  ;;  %v1101_v29 = vpop.permute.xlu0 %1100 }
 0x1f3   : > { %2287 = vst.msk [vmem:[%s3103_s23 + $0x58] sm:$0xf] %vm934_vm0, %v1101_v29  ;;  %1114 = vrot.lane.b32.xlu1 %v3305_v32, %s2827_s15 }
 0x1f4   : > { %1112 = vrot.lane.b32.xlu0 %v3278_v1, %s2827_s15 }
 0x1f5   : > { %v1168_v30 = vpop.permute.xlu1 %1167 }
 0x1f6   : > { %2304 = vst.msk [vmem:[%s3093_s21 + $0x9c] sm:$0xf] %vm934_vm0, %v1168_v30  ;;  %v1166_v31 = vpop.permute.xlu0 %1165 }
 0x1f7   : > { %2303 = vst.msk [vmem:[%s3093_s21 + $0x98] sm:$0xf] %vm934_vm0, %v1166_v31  ;;  %1179 = vrot.lane.b32.xlu1 %v3298_v10, %s2828_s14 }
 0x1f8   : > { %1177 = vrot.lane.b32.xlu0 %v3270_v59, %s2828_s14 }
 0x1f9   : > { %v1233_v34 = vpop.permute.xlu1 %1232 }
 0x1fa   : > { %2320 = vst.msk [vmem:[%s3103_s23 + $0x9c] sm:$0xf] %vm934_vm0, %v1233_v34  ;;  %v1231_v35 = vpop.permute.xlu0 %1230 }
 0x1fb   : > { %2319 = vst.msk [vmem:[%s3103_s23 + $0x98] sm:$0xf] %vm934_vm0, %v1231_v35  ;;  %1244 = vrot.lane.b32.xlu1 %v3305_v32, %s2828_s14 }
 0x1fc   : > { %1242 = vrot.lane.b32.xlu0 %v3278_v1, %s2828_s14 }
 0x1fd   : > { %v1298_v36 = vpop.permute.xlu1 %1297 }
 0x1fe   : > { %2336 = vst.msk [vmem:[%s3093_s21 + $0xdc] sm:$0xf] %vm934_vm0, %v1298_v36  ;;  %v1296_v37 = vpop.permute.xlu0 %1295  ;;  %v1445_v36 = vld [vmem:[%s3093_s21] sm:$0xff] (%p2971_p11)  }
 0x1ff   : > { %2335 = vst.msk [vmem:[%s3093_s21 + $0xd8] sm:$0xf] %vm934_vm0, %v1296_v37  ;;  %1309 = vrot.lane.b32.xlu1 %v3298_v10, %s2829_s12  ;;  %v1449_v37 = vld [vmem:[%s3093_s21 + $0x8] sm:$0xff] (%p2971_p11)   ;;  %1446 = vst [vmem:[%s3681_s11] sm:$0xff] (%p2971_p11), %v1445_v36  }
 0x200   : > { %1307 = vrot.lane.b32.xlu0 %v3270_v59, %s2829_s12  ;;  %1450 = vst [vmem:[%s3681_s11 + $0x8] sm:$0xff] (%p2971_p11), %v1449_v37  }
 0x201   : > { %v1363_v38 = vpop.permute.xlu1 %1362 }
 0x202   : > { %2352 = vst.msk [vmem:[%s3103_s23 + $0xdc] sm:$0xf] %vm934_vm0, %v1363_v38  ;;  %v1361_v39 = vpop.permute.xlu0 %1360  ;;  %v1453_v38 = vld [vmem:[%s3093_s21 + $0x10] sm:$0xff] (%p2971_p11)  }
 0x203   : > { %2351 = vst.msk [vmem:[%s3103_s23 + $0xd8] sm:$0xf] %vm934_vm0, %v1361_v39  ;;  %1374 = vrot.lane.b32.xlu1 %v3305_v32, %s2829_s12  ;;  %v1457_v39 = vld [vmem:[%s3093_s21 + $0x18] sm:$0xff] (%p2971_p11)   ;;  %1454 = vst [vmem:[%s3681_s11 + $0x10] sm:$0xff] (%p2971_p11), %v1453_v38  }
 0x204   : > { %1372 = vrot.lane.b32.xlu0 %v3278_v1, %s2829_s12  ;;  %1458 = vst [vmem:[%s3681_s11 + $0x18] sm:$0xff] (%p2971_p11), %v1457_v39  }
 0x205   : > { %v1034_v40 = vpop.permute.xlu1 %1033 }
 0x206   : > { %2270 = vst.msk [vmem:[%s3093_s21 + $0x54] sm:$0xf] %vm934_vm0, %v1034_v40  ;;  %v1032_v41 = vpop.permute.xlu0 %1031  ;;  %v1461_v40 = vld [vmem:[%s3093_s21 + $0x20] sm:$0xff] (%p2971_p11)  }
 0x207   : > { %2269 = vst.msk [vmem:[%s3093_s21 + $0x50] sm:$0xf] %vm934_vm0, %v1032_v41  ;;  %1378 = vrot.lane.b32.xlu1 %v3290_v7, %s2829_s12  ;;  %v1465_v41 = vld [vmem:[%s3093_s21 + $0x28] sm:$0xff] (%p2971_p11)   ;;  %1462 = vst [vmem:[%s3681_s11 + $0x20] sm:$0xff] (%p2971_p11), %v1461_v40  }
 0x208   : > { %1376 = vrot.lane.b32.xlu0 %v3262_v56, %s2829_s12  ;;  %1466 = vst [vmem:[%s3681_s11 + $0x28] sm:$0xff] (%p2971_p11), %v1465_v41  }
 0x209   : > { %v1099_v42 = vpop.permute.xlu1 %1098 }
 0x20a   : > { %2286 = vst.msk [vmem:[%s3103_s23 + $0x54] sm:$0xf] %vm934_vm0, %v1099_v42  ;;  %v1097_v43 = vpop.permute.xlu0 %1096  ;;  %v1469_v42 = vld [vmem:[%s3093_s21 + $0x30] sm:$0xff] (%p2971_p11)  }
 0x20b   : > { %2285 = vst.msk [vmem:[%s3103_s23 + $0x50] sm:$0xf] %vm934_vm0, %v1097_v43  ;;  %v1473_v43 = vld [vmem:[%s3093_s21 + $0x38] sm:$0xff] (%p2971_p11)   ;;  %1470 = vst [vmem:[%s3681_s11 + $0x30] sm:$0xff] (%p2971_p11), %v1469_v42  }
 0x20c   : > { %1474 = vst [vmem:[%s3681_s11 + $0x38] sm:$0xff] (%p2971_p11), %v1473_v43  }
 0x20d   : > { %v1164_v44 = vpop.permute.xlu1 %1163 }
 0x20e   : > { %2302 = vst.msk [vmem:[%s3093_s21 + $0x94] sm:$0xf] %vm934_vm0, %v1164_v44  ;;  %v1162_v46 = vpop.permute.xlu0 %1161  ;;  %v1477_v44 = vld [vmem:[%s3093_s21 + $0x40] sm:$0xff] (%p2971_p11)  }
 0x20f   : > { %2301 = vst.msk [vmem:[%s3093_s21 + $0x90] sm:$0xf] %vm934_vm0, %v1162_v46  ;;  %v1481_v46 = vld [vmem:[%s3093_s21 + $0x48] sm:$0xff] (%p2971_p11)   ;;  %1478 = vst [vmem:[%s3681_s11 + $0x80] sm:$0xff] (%p2971_p11), %v1477_v44  }
 0x210   : > { %1482 = vst [vmem:[%s3681_s11 + $0x88] sm:$0xff] (%p2971_p11), %v1481_v46  }
 0x211   : > { %v1229_v47 = vpop.permute.xlu1 %1228 }
 0x212   : > { %2318 = vst.msk [vmem:[%s3103_s23 + $0x94] sm:$0xf] %vm934_vm0, %v1229_v47  ;;  %v1227_v49 = vpop.permute.xlu0 %1226  ;;  %v1485_v47 = vld [vmem:[%s3093_s21 + $0x50] sm:$0xff] (%p2971_p11)  }
 0x213   : > { %2317 = vst.msk [vmem:[%s3103_s23 + $0x90] sm:$0xf] %vm934_vm0, %v1227_v49  ;;  %v1489_v49 = vld [vmem:[%s3093_s21 + $0x58] sm:$0xff] (%p2971_p11)   ;;  %1486 = vst [vmem:[%s3681_s11 + $0x90] sm:$0xff] (%p2971_p11), %v1485_v47  }
 0x214   : > { %1490 = vst [vmem:[%s3681_s11 + $0x98] sm:$0xff] (%p2971_p11), %v1489_v49  }
 0x215   : > { %v1294_v50 = vpop.permute.xlu1 %1293 }
 0x216   : > { %2334 = vst.msk [vmem:[%s3093_s21 + $0xd4] sm:$0xf] %vm934_vm0, %v1294_v50  ;;  %v1292_v51 = vpop.permute.xlu0 %1291 }
 0x217   : > { %2333 = vst.msk [vmem:[%s3093_s21 + $0xd0] sm:$0xf] %vm934_vm0, %v1292_v51 }
 0x219   : > { %v1359_v52 = vpop.permute.xlu1 %1358 }
 0x21a   : > { %2350 = vst.msk [vmem:[%s3103_s23 + $0xd4] sm:$0xf] %vm934_vm0, %v1359_v52  ;;  %v1357_v53 = vpop.permute.xlu0 %1356 }
 0x21b   : > { %2349 = vst.msk [vmem:[%s3103_s23 + $0xd0] sm:$0xf] %vm934_vm0, %v1357_v53 }
 0x21d   : > { %v1046_v55 = vpop.permute.xlu1 %1045 }
 0x21e   : > { %2276 = vst.msk [vmem:[%s3093_s21 + $0x6c] sm:$0xf] %vm934_vm0, %v1046_v55  ;;  %v1044_v56 = vpop.permute.xlu0 %1043  ;;  %v1509_v55 = vld [vmem:[%s3093_s21 + $0x80] sm:$0xff] (%p2971_p11)  }
 0x21f   : > { %2275 = vst.msk [vmem:[%s3093_s21 + $0x68] sm:$0xf] %vm934_vm0, %v1044_v56  ;;  %v1513_v56 = vld [vmem:[%s3093_s21 + $0x88] sm:$0xff] (%p2971_p11)   ;;  %1510 = vst [vmem:[%s3681_s11 + $0x100] sm:$0xff] (%p2971_p11), %v1509_v55  }
 0x220   : > { %1514 = vst [vmem:[%s3681_s11 + $0x108] sm:$0xff] (%p2971_p11), %v1513_v56  }
 0x221   : > { %v1111_v58 = vpop.permute.xlu1 %1110 }
 0x222   : > { %2292 = vst.msk [vmem:[%s3103_s23 + $0x6c] sm:$0xf] %vm934_vm0, %v1111_v58  ;;  %v1109_v59 = vpop.permute.xlu0 %1108  ;;  %v1517_v58 = vld [vmem:[%s3093_s21 + $0x90] sm:$0xff] (%p2971_p11)  }
 0x223   : > { %2291 = vst.msk [vmem:[%s3103_s23 + $0x68] sm:$0xf] %vm934_vm0, %v1109_v59  ;;  %v1521_v59 = vld [vmem:[%s3093_s21 + $0x98] sm:$0xff] (%p2971_p11)   ;;  %1518 = vst [vmem:[%s3681_s11 + $0x110] sm:$0xff] (%p2971_p11), %v1517_v58  }
 0x224   : > { %1522 = vst [vmem:[%s3681_s11 + $0x118] sm:$0xff] (%p2971_p11), %v1521_v59  }
 0x225   : > { %v1176_v61 = vpop.permute.xlu1 %1175 }
 0x226   : > { %2308 = vst.msk [vmem:[%s3093_s21 + $0xac] sm:$0xf] %vm934_vm0, %v1176_v61  ;;  %v1174_v62 = vpop.permute.xlu0 %1173  ;;  %v1497_v51 = vld [vmem:[%s3093_s21 + $0x68] sm:$0xff] (%p2971_p11)  }
 0x227   : > { %2307 = vst.msk [vmem:[%s3093_s21 + $0xa8] sm:$0xf] %vm934_vm0, %v1174_v62  ;;  %1498 = vst [vmem:[%s3681_s11 + $0xa8] sm:$0xff] (%p2971_p11), %v1497_v51  }
 0x229   : > { %v1241_v0 = vpop.permute.xlu1 %1240 }
 0x22a   : > { %2324 = vst.msk [vmem:[%s3103_s23 + $0xac] sm:$0xf] %vm934_vm0, %v1241_v0  ;;  %v1239_v1 = vpop.permute.xlu0 %1238 }
 0x22b   : > { %2323 = vst.msk [vmem:[%s3103_s23 + $0xa8] sm:$0xf] %vm934_vm0, %v1239_v1 }
 0x22d   : > { %v1306_v54 = vpop.permute.xlu1 %1305 }
 0x22e   : > { %2340 = vst.msk [vmem:[%s3093_s21 + $0xec] sm:$0xf] %vm934_vm0, %v1306_v54  ;;  %v1304_v2 = vpop.permute.xlu0 %1303  ;;  %v1529_v62 = vld [vmem:[%s3093_s21 + $0xa8] sm:$0xff] (%p2971_p11)   ;;  %v1541_v54 = vld [vmem:[%s3093_s21 + $0xc0] sm:$0xff] (%p2971_p11)  }
 0x22f   : > { %2339 = vst.msk [vmem:[%s3093_s21 + $0xe8] sm:$0xf] %vm934_vm0, %v1304_v2  ;;  %1530 = vst [vmem:[%s3681_s11 + $0x128] sm:$0xff] (%p2971_p11), %v1529_v62   ;;  %v1545_v2 = vld [vmem:[%s3093_s21 + $0xc8] sm:$0xff] (%p2971_p11)  }
 0x230   : > { %1542 = vst [vmem:[%s3681_s11 + $0x180] sm:$0xff] (%p2971_p11), %v1541_v54   ;;  %1546 = vst [vmem:[%s3681_s11 + $0x188] sm:$0xff] (%p2971_p11), %v1545_v2  }
 0x231   : > { %v1371_v4 = vpop.permute.xlu1 %1370 }
 0x232   : > { %2356 = vst.msk [vmem:[%s3103_s23 + $0xec] sm:$0xf] %vm934_vm0, %v1371_v4  ;;  %v1369_v6 = vpop.permute.xlu0 %1368  ;;  %v1549_v4 = vld [vmem:[%s3093_s21 + $0xd0] sm:$0xff] (%p2971_p11)  }
 0x233   : > { %2355 = vst.msk [vmem:[%s3103_s23 + $0xe8] sm:$0xf] %vm934_vm0, %v1369_v6  ;;  %1550 = vst [vmem:[%s3681_s11 + $0x190] sm:$0xff] (%p2971_p11), %v1549_v4   ;;  %v1553_v6 = vld [vmem:[%s3093_s21 + $0xd8] sm:$0xff] (%p2971_p11)  }
 0x234   : > { %1554 = vst [vmem:[%s3681_s11 + $0x198] sm:$0xff] (%p2971_p11), %v1553_v6  }
 0x235   : > { %v1042_v7 = vpop.permute.xlu1 %1041 }
 0x236   : > { %2274 = vst.msk [vmem:[%s3093_s21 + $0x64] sm:$0xf] %vm934_vm0, %v1042_v7  ;;  %v1040_v8 = vpop.permute.xlu0 %1039 }
 0x237   : > { %2273 = vst.msk [vmem:[%s3093_s21 + $0x60] sm:$0xf] %vm934_vm0, %v1040_v8  ;;  %v1561_v8 = vld [vmem:[%s3093_s21 + $0xe8] sm:$0xff] (%p2971_p11)  }
 0x238   : > { %1562 = vst [vmem:[%s3681_s11 + $0x1a8] sm:$0xff] (%p2971_p11), %v1561_v8  }
 0x239   : > { %v1107_v10 = vpop.permute.xlu1 %1106 }
 0x23a   : > { %2290 = vst.msk [vmem:[%s3103_s23 + $0x64] sm:$0xf] %vm934_vm0, %v1107_v10  ;;  %v1105_v32 = vpop.permute.xlu0 %1104 }
 0x23b   : > { %2289 = vst.msk [vmem:[%s3103_s23 + $0x60] sm:$0xf] %vm934_vm0, %v1105_v32 }
 0x23d   : > { %v1172_v33 = vpop.permute.xlu1 %1171 }
 0x23e   : > { %2306 = vst.msk [vmem:[%s3093_s21 + $0xa4] sm:$0xf] %vm934_vm0, %v1172_v33  ;;  %v1170_v45 = vpop.permute.xlu0 %1169  ;;  %v1493_v50 = vld [vmem:[%s3093_s21 + $0x60] sm:$0xff] (%p2971_p11)  }
 0x23f   : > { %2305 = vst.msk [vmem:[%s3093_s21 + $0xa0] sm:$0xf] %vm934_vm0, %v1170_v45  ;;  %1494 = vst [vmem:[%s3681_s11 + $0xa0] sm:$0xff] (%p2971_p11), %v1493_v50  }
 0x241   : > { %v1237_v48 = vpop.permute.xlu1 %1236 }
 0x242   : > { %2322 = vst.msk [vmem:[%s3103_s23 + $0xa4] sm:$0xf] %vm934_vm0, %v1237_v48  ;;  %v1235_v57 = vpop.permute.xlu0 %1234 }
 0x243   : > { %2321 = vst.msk [vmem:[%s3103_s23 + $0xa0] sm:$0xf] %vm934_vm0, %v1235_v57 }
 0x245   : > { %v1302_v60 = vpop.permute.xlu1 %1301 }
 0x246   : > { %2338 = vst.msk [vmem:[%s3093_s21 + $0xe4] sm:$0xf] %vm934_vm0, %v1302_v60  ;;  %v1300_v63 = vpop.permute.xlu0 %1299  ;;  %v1525_v61 = vld [vmem:[%s3093_s21 + $0xa0] sm:$0xff] (%p2971_p11)  }
 0x247   : > { %2337 = vst.msk [vmem:[%s3093_s21 + $0xe0] sm:$0xf] %vm934_vm0, %v1300_v63  ;;  %1526 = vst [vmem:[%s3681_s11 + $0x120] sm:$0xff] (%p2971_p11), %v1525_v61  }
 0x249   : > { %v1367_v3 = vpop.permute.xlu1 %1366 }
 0x24a   : > { %2354 = vst.msk [vmem:[%s3103_s23 + $0xe4] sm:$0xf] %vm934_vm0, %v1367_v3  ;;  %v1365_v5 = vpop.permute.xlu0 %1364 }
 0x24b   : > { %2353 = vst.msk [vmem:[%s3103_s23 + $0xe0] sm:$0xf] %vm934_vm0, %v1365_v5 }
 0x24d   : > { %v1054_v9 = vpop.permute.xlu1 %1053 }
 0x24e   : > { %2280 = vst.msk [vmem:[%s3093_s21 + $0x7c] sm:$0xf] %vm934_vm0, %v1054_v9  ;;  %v1052_v11 = vpop.permute.xlu0 %1051  ;;  %v1557_v7 = vld [vmem:[%s3093_s21 + $0xe0] sm:$0xff] (%p2971_p11)  }
 0x24f   : > { %2279 = vst.msk [vmem:[%s3093_s21 + $0x78] sm:$0xf] %vm934_vm0, %v1052_v11  ;;  %1558 = vst [vmem:[%s3681_s11 + $0x1a0] sm:$0xff] (%p2971_p11), %v1557_v7  }
 0x251   : > { %v1119_v12 = vpop.permute.xlu1 %1118 }
 0x252   : > { %2296 = vst.msk [vmem:[%s3103_s23 + $0x7c] sm:$0xf] %vm934_vm0, %v1119_v12  ;;  %v1117_v13 = vpop.permute.xlu0 %1116 }
 0x253   : > { %2295 = vst.msk [vmem:[%s3103_s23 + $0x78] sm:$0xf] %vm934_vm0, %v1117_v13 }
 0x255   : > { %v1184_v14 = vpop.permute.xlu1 %1183 }
 0x256   : > { %2312 = vst.msk [vmem:[%s3093_s21 + $0xbc] sm:$0xf] %vm934_vm0, %v1184_v14  ;;  %v1182_v15 = vpop.permute.xlu0 %1181  ;;  %v1505_v53 = vld [vmem:[%s3093_s21 + $0x78] sm:$0xff] (%p2971_p11)  }
 0x257   : > { %2311 = vst.msk [vmem:[%s3093_s21 + $0xb8] sm:$0xf] %vm934_vm0, %v1182_v15  ;;  %1506 = vst [vmem:[%s3681_s11 + $0xb8] sm:$0xff] (%p2971_p11), %v1505_v53  }
 0x259   : > { %v1249_v16 = vpop.permute.xlu1 %1248 }
 0x25a   : > { %2328 = vst.msk [vmem:[%s3103_s23 + $0xbc] sm:$0xf] %vm934_vm0, %v1249_v16  ;;  %v1247_v17 = vpop.permute.xlu0 %1246 }
 0x25b   : > { %2327 = vst.msk [vmem:[%s3103_s23 + $0xb8] sm:$0xf] %vm934_vm0, %v1247_v17 }
 0x25d   : > { %v1314_v18 = vpop.permute.xlu1 %1313 }
 0x25e   : > { %2344 = vst.msk [vmem:[%s3093_s21 + $0xfc] sm:$0xf] %vm934_vm0, %v1314_v18  ;;  %v1312_v19 = vpop.permute.xlu0 %1311  ;;  %v1537_v1 = vld [vmem:[%s3093_s21 + $0xb8] sm:$0xff] (%p2971_p11)  }
 0x25f   : > { %2343 = vst.msk [vmem:[%s3093_s21 + $0xf8] sm:$0xf] %vm934_vm0, %v1312_v19  ;;  %1538 = vst [vmem:[%s3681_s11 + $0x138] sm:$0xff] (%p2971_p11), %v1537_v1  }
 0x261   : > { %v1050_v20 = vpop.permute.xlu1 %1049 }
 0x262   : > { %2278 = vst.msk [vmem:[%s3093_s21 + $0x74] sm:$0xf] %vm934_vm0, %v1050_v20  ;;  %v1048_v21 = vpop.permute.xlu0 %1047 }
 0x263   : > { %2277 = vst.msk [vmem:[%s3093_s21 + $0x70] sm:$0xf] %vm934_vm0, %v1048_v21 }
 0x265   : > { %v1115_v22 = vpop.permute.xlu1 %1114 }
 0x266   : > { %2294 = vst.msk [vmem:[%s3103_s23 + $0x74] sm:$0xf] %vm934_vm0, %v1115_v22  ;;  %v1113_v23 = vpop.permute.xlu0 %1112  ;;  %v1569_v32 = vld [vmem:[%s3093_s21 + $0xf8] sm:$0xff] (%p2971_p11)  }
 0x267   : > { %2293 = vst.msk [vmem:[%s3103_s23 + $0x70] sm:$0xf] %vm934_vm0, %v1113_v23  ;;  %1570 = vst [vmem:[%s3681_s11 + $0x1b8] sm:$0xff] (%p2971_p11), %v1569_v32  }
 0x269   : > { %v1180_v24 = vpop.permute.xlu1 %1179 }
 0x26a   : > { %2310 = vst.msk [vmem:[%s3093_s21 + $0xb4] sm:$0xf] %vm934_vm0, %v1180_v24  ;;  %v1178_v25 = vpop.permute.xlu0 %1177  ;;  %v1501_v52 = vld [vmem:[%s3093_s21 + $0x70] sm:$0xff] (%p2971_p11)  }
 0x26b   : > { %2309 = vst.msk [vmem:[%s3093_s21 + $0xb0] sm:$0xf] %vm934_vm0, %v1178_v25  ;;  %1502 = vst [vmem:[%s3681_s11 + $0xb0] sm:$0xff] (%p2971_p11), %v1501_v52  }
 0x26d   : > { %v1245_v26 = vpop.permute.xlu1 %1244 }
 0x26e   : > { %2326 = vst.msk [vmem:[%s3103_s23 + $0xb4] sm:$0xf] %vm934_vm0, %v1245_v26  ;;  %v1243_v27 = vpop.permute.xlu0 %1242 }
 0x26f   : > { %2325 = vst.msk [vmem:[%s3103_s23 + $0xb0] sm:$0xf] %vm934_vm0, %v1243_v27 }
 0x271   : > { %v1310_v28 = vpop.permute.xlu1 %1309 }
 0x272   : > { %2342 = vst.msk [vmem:[%s3093_s21 + $0xf4] sm:$0xf] %vm934_vm0, %v1310_v28  ;;  %v1308_v29 = vpop.permute.xlu0 %1307  ;;  %v1533_v0 = vld [vmem:[%s3093_s21 + $0xb0] sm:$0xff] (%p2971_p11)  }
 0x273   : > { %2341 = vst.msk [vmem:[%s3093_s21 + $0xf0] sm:$0xf] %vm934_vm0, %v1308_v29  ;;  %1534 = vst [vmem:[%s3681_s11 + $0x130] sm:$0xff] (%p2971_p11), %v1533_v0  }
 0x275   : > { %v1375_v30 = vpop.permute.xlu1 %1374 }
 0x276   : > { %2358 = vst.msk [vmem:[%s3103_s23 + $0xf4] sm:$0xf] %vm934_vm0, %v1375_v30  ;;  %v1373_v31 = vpop.permute.xlu0 %1372 }
 0x277   : > { %2357 = vst.msk [vmem:[%s3103_s23 + $0xf0] sm:$0xf] %vm934_vm0, %v1373_v31  ;;  %1423 = sbr.rel (!%p2971_p11) target bundleno = 636 (0x27c), region = 64 }
 0x279   : > { %v1379_v34 = vpop.permute.xlu1 %1378 }
 0x27a   : > { %2360 = vst.msk [vmem:[%s3103_s23 + $0xfc] sm:$0xf] %vm934_vm0, %v1379_v34  ;;  %v1377_v35 = vpop.permute.xlu0 %1376  ;;  %v1565_v10 = vld [vmem:[%s3093_s21 + $0xf0] sm:$0xff] (%p2971_p11)  }
 0x27b   : > { %2359 = vst.msk [vmem:[%s3103_s23 + $0xf8] sm:$0xf] %vm934_vm0, %v1377_v35  ;;  %1566 = vst [vmem:[%s3681_s11 + $0x1b0] sm:$0xff] (%p2971_p11), %v1565_v10  }
 0x27c PF: > { %1724 = sbr.rel (!%p2971_p11) target bundleno = 660 (0x294), region = 105  ;;  %s2366_s19 = sshll.u32 (%p2971_p11), %s2803_s27, 4  ;;  %v1746_v33 = vld [vmem:[%s3103_s23] sm:$0xff] (%p2971_p11)   ;;  %v1750_v45 = vld [vmem:[%s3103_s23 + $0x8] sm:$0xff] (%p2971_p11)   ;;  %v1754_v48 = vld [vmem:[%s3103_s23 + $0x10] sm:$0xff] (%p2971_p11)  }
 0x27d   : > { %s2367_s9 = sshll.u32 (%p2971_p11), %s2807_s28, 7  ;;  %v1758_v57 = vld [vmem:[%s3103_s23 + $0x18] sm:$0xff] (%p2971_p11)   ;;  %v1762_v60 = vld [vmem:[%s3103_s23 + $0x20] sm:$0xff] (%p2971_p11)   ;;  %v1766_v63 = vld [vmem:[%s3103_s23 + $0x28] sm:$0xff] (%p2971_p11)   ;;  %s3868_s20 = sld [smem:[#allocation21_spill]] (%p2971_p11) }
 0x27e   : > { %s1727_s17 = sadd.s32 (%p2971_p11), %s2367_s9, %s2366_s19  ;;  %v1770_v3 = vld [vmem:[%s3103_s23 + $0x30] sm:$0xff] (%p2971_p11)   ;;  %v1774_v5 = vld [vmem:[%s3103_s23 + $0x38] sm:$0xff] (%p2971_p11)   ;;  %v1778_v9 = vld [vmem:[%s3103_s23 + $0x40] sm:$0xff] (%p2971_p11)  }
 0x27f   : > { %s2368_s10 = sshll.u32 (%p2971_p11), %s1727_s17, 2  ;;  %v1782_v11 = vld [vmem:[%s3103_s23 + $0x48] sm:$0xff] (%p2971_p11)   ;;  %v1786_v12 = vld [vmem:[%s3103_s23 + $0x50] sm:$0xff] (%p2971_p11)   ;;  %v1790_v13 = vld [vmem:[%s3103_s23 + $0x58] sm:$0xff] (%p2971_p11)  }
 0x280   : > { %v1794_v14 = vld [vmem:[%s3103_s23 + $0x60] sm:$0xff] (%p2971_p11)   ;;  %v1798_v15 = vld [vmem:[%s3103_s23 + $0x68] sm:$0xff] (%p2971_p11)   ;;  %v1802_v16 = vld [vmem:[%s3103_s23 + $0x70] sm:$0xff] (%p2971_p11)  }
 0x281   : > { %v1806_v17 = vld [vmem:[%s3103_s23 + $0x78] sm:$0xff]   ;;  %v1810_v18 = vld [vmem:[%s3103_s23 + $0x80] sm:$0xff]   ;;  %v1814_v19 = vld [vmem:[%s3103_s23 + $0x88] sm:$0xff]  }
 0x282   : > { %v1818_v20 = vld [vmem:[%s3103_s23 + $0x90] sm:$0xff]   ;;  %v1822_v21 = vld [vmem:[%s3103_s23 + $0x98] sm:$0xff]   ;;  %v1826_v22 = vld [vmem:[%s3103_s23 + $0xa0] sm:$0xff]  }
 0x283   : > { %s3754_s21 = scalar_lea.vmem %s3868_s20, %s2368_s10  ;;  %v1830_v23 = vld [vmem:[%s3103_s23 + $0xa8] sm:$0xff]   ;;  %v1834_v24 = vld [vmem:[%s3103_s23 + $0xb0] sm:$0xff]   ;;  %v1838_v25 = vld [vmem:[%s3103_s23 + $0xb8] sm:$0xff]  }
 0x284   : > { %1747 = vst [vmem:[%s3754_s21] sm:$0xff] %v1746_v33   ;;  %1751 = vst [vmem:[%s3754_s21 + $0x8] sm:$0xff] %v1750_v45   ;;  %v1842_v26 = vld [vmem:[%s3103_s23 + $0xc0] sm:$0xff]   ;;  %v1846_v27 = vld [vmem:[%s3103_s23 + $0xc8] sm:$0xff]  }
 0x285   : > { %1755 = vst [vmem:[%s3754_s21 + $0x10] sm:$0xff] %v1754_v48   ;;  %1759 = vst [vmem:[%s3754_s21 + $0x18] sm:$0xff] %v1758_v57   ;;  %v1850_v28 = vld [vmem:[%s3103_s23 + $0xd0] sm:$0xff]   ;;  %v1854_v29 = vld [vmem:[%s3103_s23 + $0xd8] sm:$0xff]  }
 0x286   : > { %1763 = vst [vmem:[%s3754_s21 + $0x20] sm:$0xff] %v1762_v60   ;;  %1767 = vst [vmem:[%s3754_s21 + $0x28] sm:$0xff] %v1766_v63   ;;  %v1858_v30 = vld [vmem:[%s3103_s23 + $0xe0] sm:$0xff]   ;;  %v1862_v31 = vld [vmem:[%s3103_s23 + $0xe8] sm:$0xff]  }
 0x287   : > { %1771 = vst [vmem:[%s3754_s21 + $0x30] sm:$0xff] %v1770_v3   ;;  %1775 = vst [vmem:[%s3754_s21 + $0x38] sm:$0xff] %v1774_v5   ;;  %v1866_v34 = vld [vmem:[%s3103_s23 + $0xf0] sm:$0xff]   ;;  %v1870_v35 = vld [vmem:[%s3103_s23 + $0xf8] sm:$0xff]  }
 0x288   : > { %1779 = vst [vmem:[%s3754_s21 + $0x80] sm:$0xff] %v1778_v9   ;;  %1783 = vst [vmem:[%s3754_s21 + $0x88] sm:$0xff] %v1782_v11  }
 0x289   : > { %1787 = vst [vmem:[%s3754_s21 + $0x90] sm:$0xff] %v1786_v12   ;;  %1791 = vst [vmem:[%s3754_s21 + $0x98] sm:$0xff] %v1790_v13  }
 0x28a   : > { %1795 = vst [vmem:[%s3754_s21 + $0xa0] sm:$0xff] %v1794_v14   ;;  %1799 = vst [vmem:[%s3754_s21 + $0xa8] sm:$0xff] %v1798_v15  }
 0x28b   : > { %1803 = vst [vmem:[%s3754_s21 + $0xb0] sm:$0xff] %v1802_v16   ;;  %1807 = vst [vmem:[%s3754_s21 + $0xb8] sm:$0xff] %v1806_v17  }
 0x28c   : > { %1811 = vst [vmem:[%s3754_s21 + $0x100] sm:$0xff] %v1810_v18   ;;  %1815 = vst [vmem:[%s3754_s21 + $0x108] sm:$0xff] %v1814_v19  }
 0x28d   : > { %1819 = vst [vmem:[%s3754_s21 + $0x110] sm:$0xff] %v1818_v20   ;;  %1823 = vst [vmem:[%s3754_s21 + $0x118] sm:$0xff] %v1822_v21  }
 0x28e   : > { %1827 = vst [vmem:[%s3754_s21 + $0x120] sm:$0xff] %v1826_v22   ;;  %1831 = vst [vmem:[%s3754_s21 + $0x128] sm:$0xff] %v1830_v23  }
 0x28f   : > { %1835 = vst [vmem:[%s3754_s21 + $0x130] sm:$0xff] %v1834_v24   ;;  %1839 = vst [vmem:[%s3754_s21 + $0x138] sm:$0xff] %v1838_v25  }
 0x290   : > { %1843 = vst [vmem:[%s3754_s21 + $0x180] sm:$0xff] %v1842_v26   ;;  %1847 = vst [vmem:[%s3754_s21 + $0x188] sm:$0xff] %v1846_v27  }
 0x291   : > { %1851 = vst [vmem:[%s3754_s21 + $0x190] sm:$0xff] %v1850_v28   ;;  %1855 = vst [vmem:[%s3754_s21 + $0x198] sm:$0xff] %v1854_v29  }
 0x292   : > { %1859 = vst [vmem:[%s3754_s21 + $0x1a0] sm:$0xff] %v1858_v30   ;;  %1863 = vst [vmem:[%s3754_s21 + $0x1a8] sm:$0xff] %v1862_v31  }
 0x293   : > { %1867 = vst [vmem:[%s3754_s21 + $0x1b0] sm:$0xff] %v1866_v34   ;;  %1871 = vst [vmem:[%s3754_s21 + $0x1b8] sm:$0xff] %v1870_v35  }
 0x294 PF: > { %s25_s8 = sadd.s32 1, %s2819_s8   ;;  %s3869_s28 = sld [smem:[#allocation15_spill]] }
 0x295   : > { %p22_p1 = scmp.ge.s32.totalorder %s25_s8, 6   ;;  %s3870_s15 = sld [smem:[#allocation16_spill]] }
 0x296   : > { %s3871_s30 = sld [smem:[#allocation17_spill]]  ;;  %s3872_s24 = smov %s2795_s25 }
 0x297   : > { %s3873_s25 = smov %s2799_s26  ;;  %s3874_s26 = smov %s2991_s4 }
 0x298   : > { %s3875_s27 = smov %s2811_s29  ;;  %24 = sbr.rel (!%p22_p1) target bundleno = 13 (0xd), region = 205 }
 0x29b   : > { %s3876_s29 = smov %s3870_s15 }
 0x29d   :  { %2042 = vsyncpa [#allocation3], 1 }
 0x29e   :  { %2044 = vsyncpa [#allocation3 + $0x1], 1 }
 0x29f   :  { %2045 = vsyncpa [#allocation5], 1 }
 0x2a0   :  { %2047 = vsyncpa [#allocation5 + $0x1], 1 }
 0x2a1   :  { %2048 = vsyncpa [#allocation8], 1 }

</bundles_post_ra>
